<compile_context>
chip_gen: v7x
topology: tpu7x:2x2x1
jax: 0.10.0
libtpu: 0.0.40
codegen_flags: <defaults>
</compile_context>

<pallas_src>
import math
from functools import partial

import jax
import jax.numpy as jnp
from jax import lax
from jax.experimental import pallas as pl
from jax.experimental.pallas import tpu as pltpu

# ----------------------------- static config --------------------------------
N, C_IN, H, W = 2, 4, 16, 16
C_OUT = 8
KH = KW = 3
PAD = 1                      # 'same' padding for k=3, stride=1, dilation=1
H_OUT, W_OUT = H, W
HW = H * W                   # 256 lanes per image
GC = C_OUT * C_IN            # 32 wavelet planes; row order gc = ci*C_OUT + g

_MH_CONST = 2.0 / (math.sqrt(3.0) * math.pi ** 0.25)


def _mexican_hat(xs):
    x2 = xs * xs
    return _MH_CONST * (x2 - 1.0) * jnp.exp(-0.5 * x2)


# ------------------------------- Pallas kernel ------------------------------
def wavelet_conv_kernel(x_ref, inv_s_ref, trans_ref, whi_ref, wlo_ref,
                        mask_ref, o_ref):
    # x_ref    : VMEM (1, C_IN, L)   f32, nb batch images folded into lanes
    # inv_s_ref: VMEM (GC, 1)        1/scale, row = ci*C_OUT + g
    # trans_ref: VMEM (GC, 1)        translation, same row order
    # whi_ref  : VMEM (KH*KW, C_OUT, GC) f32, bf16-exact hi part of W_eff
    # wlo_ref  : VMEM (KH*KW, C_OUT, GC) f32, residual (lo) part of W_eff
    # mask_ref : VMEM (KH*KW, 1, L)  1.0 where the shifted tap is in-bounds
    # o_ref    : VMEM (1, C_OUT, L)  lane-dense output slab
    L = x_ref.shape[-1]
    xin = x_ref[0]                                            # (C_IN, L)

    # Replicate each input channel row across the C_OUT wavelet groups with
    # aligned sublane broadcasts (8x less input DMA than HBM-side tiling).
    x_rep = jnp.concatenate(
        [jnp.broadcast_to(xin[c:c + 1, :], (C_OUT, L)) for c in range(C_IN)],
        axis=0)                                               # (GC, L)

    # Lane-dense affine + wavelet over all (ci, g) planes at once.
    xs = (x_rep - trans_ref[...]) * inv_s_ref[...]            # (GC, L)
    wav = _mexican_hat(xs)                                    # (GC, L) f32

    # One-time hi/lo split.  hi is exactly bf16-representable, so the MXU's
    # DEFAULT-precision operand rounding is exact; lo is ~2^-9 of wav, so its
    # rounding is negligible.  3 single-pass dots ~= bf16_3x accuracy.
    wav_hi = wav.astype(jnp.bfloat16).astype(jnp.float32)
    wav_lo = wav - wav_hi

    # Conv (3x3, zero-pad of the wavelet) + folded 1x1 mix as shifted MXU dots:
    #   out[co, p] += sum_{gc} W_eff[k][co, gc] * wav[gc, p + d]
    # with d = (kh-PAD)*W + (kw-PAD); out-of-bounds taps masked on the result.
    acc = jnp.zeros((C_OUT, L), jnp.float32)
    for k in range(KH * KW):
        kh, kw = divmod(k, KW)
        d = (kh - PAD) * W + (kw - PAD)
        if d == 0:
            s_hi, s_lo = wav_hi, wav_lo
        else:
            s_hi = pltpu.roll(wav_hi, shift=(-d) % L, axis=1)  # XLU rotate, 32-bit
            s_lo = pltpu.roll(wav_lo, shift=(-d) % L, axis=1)
        y = (jnp.dot(whi_ref[k], s_hi, preferred_element_type=jnp.float32)
             + jnp.dot(whi_ref[k], s_lo, preferred_element_type=jnp.float32)
             + jnp.dot(wlo_ref[k], s_hi, preferred_element_type=jnp.float32))
        if d != 0:
            # Mask the (C_OUT, L) result, not the (GC, L) operand: the conv's
            # zero-pad mask depends only on the output lane position.
            y = y * mask_ref[k]
        acc = acc + y
    o_ref[0] = acc                                            # one lane-dense store


# ------------------------------- wrapper -------------------------------------
def _pick_batch_chunks(n):
    """v7x has 2 TensorCores -> keep a parallel batch axis so both get work;
    single-TC v5e/v6e -> fold all batches into one grid step (into lanes)."""
    try:
        kind = jax.devices()[0].device_kind.lower()
    except Exception:
        kind = ""
    if ("v7" in kind) and n >= 2 and n % 2 == 0:
        return 2
    return 1


@partial(jax.jit, static_argnames=("batch_chunks",))
def wavelet_conv_nd(x, scale, translation, wconv, wout, *, batch_chunks=1):
    """x: (N, C_IN, H, W); scale/translation: (C_OUT, C_IN);
    wconv: (C_IN, KH, KW); wout: (C_OUT, C_OUT) with wout[co, g]."""
    assert N % batch_chunks == 0
    nb = N // batch_chunks
    L = nb * HW

    # Fold nb batch images into the lane axis: (chunks, C_IN, nb*HW).
    x_l = (x.reshape(batch_chunks, nb, C_IN, HW)
             .transpose(0, 2, 1, 3)
             .reshape(batch_chunks, C_IN, L))

    # Row order gc = ci*C_OUT + g (so in-kernel replication is tile-aligned).
    inv_scale = (1.0 / scale).T.reshape(GC, 1)                 # precompute 1/s
    trans = translation.T.reshape(GC, 1)

    # Fold the 1x1 output conv into the (shared) 3x3 group-conv weight:
    #   W_eff[kh,kw][co, ci*C_OUT+g] = wout[co,g] * wconv[ci,kh,kw]
    # and split into a bf16-exact hi part + residual lo part (kept in f32).
    weff = jnp.einsum("og,ckl->klocg", wout, wconv).reshape(KH * KW, C_OUT, GC)
    weff_hi = weff.astype(jnp.bfloat16).astype(jnp.float32)
    weff_lo = weff - weff_hi

    # Per-image zero-pad masks per (kh, kw) tap, tiled across folded batches.
    # They also zero every roll wrap-around across image/batch boundaries.
    pp = jnp.arange(HW, dtype=jnp.int32)
    hh, ww = pp // W, pp % W
    masks = []
    for kh in range(KH):
        for kw in range(KW):
            dh, dw = kh - PAD, kw - PAD
            m = ((hh + dh >= 0) & (hh + dh < H) &
                 (ww + dw >= 0) & (ww + dw < W)).astype(jnp.float32)
            masks.append(jnp.tile(m, nb))
    mask = jnp.stack(masks).reshape(KH * KW, 1, L)

    out = pl.pallas_call(
        wavelet_conv_kernel,
        out_shape=jax.ShapeDtypeStruct((batch_chunks, C_OUT, L), jnp.float32),
        grid=(batch_chunks,),
        in_specs=[
            pl.BlockSpec((1, C_IN, L), lambda c: (c, 0, 0)),
            pl.BlockSpec((GC, 1), lambda c: (0, 0)),
            pl.BlockSpec((GC, 1), lambda c: (0, 0)),
            pl.BlockSpec((KH * KW, C_OUT, GC), lambda c: (0, 0, 0)),
            pl.BlockSpec((KH * KW, C_OUT, GC), lambda c: (0, 0, 0)),
            pl.BlockSpec((KH * KW, 1, L), lambda c: (0, 0, 0)),
        ],
        out_specs=pl.BlockSpec((1, C_OUT, L), lambda c: (c, 0, 0)),
        compiler_params=pltpu.CompilerParams(
            dimension_semantics=("parallel",)),
    )(x_l, inv_scale, trans, weff_hi, weff_lo, mask)

    out = (out.reshape(batch_chunks, C_OUT, nb, HW)
              .transpose(0, 2, 1, 3)
              .reshape(N, C_OUT, H_OUT, W_OUT))
    return out


# ------------------------------ pure-JAX reference ---------------------------
def _reference(x, scale, translation, wconv, wout):
    xs = (x[:, None] - translation[None, :, :, None, None]) / \
        scale[None, :, :, None, None]                       # (N, G, C, H, W)
    wav = _mexican_hat(xs)
    wav2 = wav.reshape(N * C_OUT, C_IN, H, W)
    y = lax.conv_general_dilated(
        wav2, wconv[None], window_strides=(1, 1),
        padding=((PAD, PAD), (PAD, PAD)),
        dimension_numbers=("NCHW", "OIHW", "NCHW"),
        precision=lax.Precision.HIGHEST)                     # (N*G, 1, H, W)
    y = y.reshape(N, C_OUT, H_OUT, W_OUT)
    return jnp.einsum("og,nghw->nohw", wout, y,
                      precision=lax.Precision.HIGHEST)


# TODO(synk): only the default 'mexican_hat' wavelet branch is implemented;
# morlet/dog/meyer/shannon are the same elementwise pattern in the kernel.
# TODO(synk): the enclosing WavKANConvNDLayer extras (SiLU + base_conv branch,
# per-group layer_norm, dropout) are outside this kernel, same scope as before.

if __name__ == "__main__":
    key = jax.random.PRNGKey(0)
    kx, ks, kt, kw1, kw2 = jax.random.split(key, 5)

    x = jax.random.normal(kx, (N, C_IN, H, W), jnp.float32)

    # Parameter shapes from __init__ (ndim=2 trailing singleton dims squeezed):
    #   scale/translation: (1, C_OUT, C_IN, 1, 1) -> (C_OUT, C_IN)
    #   shared group conv weight: (1, C_IN, KH, KW) -> (C_IN, KH, KW)
    #   wavelet_out weight: (C_OUT, C_OUT, 1, 1) -> (C_OUT, C_OUT)
    scale = 1.0 + 0.1 * jax.random.uniform(ks, (C_OUT, C_IN), jnp.float32, -1.0, 1.0)
    translation = 0.1 * jax.random.uniform(kt, (C_OUT, C_IN), jnp.float32, -1.0, 1.0)
    b1 = math.sqrt(3.0 / (C_IN * KH * KW))       # kaiming_uniform, gain=1
    wconv = jax.random.uniform(kw1, (C_IN, KH, KW), jnp.float32, -b1, b1)
    b2 = math.sqrt(3.0 / C_OUT)
    wout = jax.random.uniform(kw2, (C_OUT, C_OUT), jnp.float32, -b2, b2)

    chunks = _pick_batch_chunks(N)               # 1 on v5e/v6e, 2 on v7x
    out = wavelet_conv_nd(x, scale, translation, wconv, wout,
                          batch_chunks=chunks)
    out = jax.block_until_ready(out)

    ref = _reference(x, scale, translation, wconv, wout)
    assert out.shape == (N, C_OUT, H_OUT, W_OUT), out.shape
    max_err = float(jnp.max(jnp.abs(out - ref)))
    assert jnp.allclose(out, ref, rtol=1e-3, atol=1e-3), max_err
    print("KERNEL_OK")
</pallas_src>

<mosaic_0001>
module attributes {stable_mosaic.version = 11 : i64} {
  func.func @wavelet_conv_kernel(%arg0: i32, %arg1: memref<1x4x512xf32, #tpu.memory_space<vmem>>, %arg2: memref<32x1xf32, #tpu.memory_space<vmem>>, %arg3: memref<32x1xf32, #tpu.memory_space<vmem>>, %arg4: memref<9x8x32xf32, #tpu.memory_space<vmem>>, %arg5: memref<9x8x32xf32, #tpu.memory_space<vmem>>, %arg6: memref<9x1x512xf32, #tpu.memory_space<vmem>>, %arg7: memref<1x8x512xf32, #tpu.memory_space<vmem>>) attributes {dimension_semantics = [#tpu.dimension_semantics<parallel>], iteration_bounds = array<i64: 1>, scalar_prefetch = 0 : i64, scratch_operands = 0 : i64, tpu.core_type = #tpu.core_type<tc>, window_params = [{transform_indices = @transform_0, window_bounds = array<i64: 1, 4, 512>}, {pipeline_mode = #tpu.pipeline_mode<synchronous>, transform_indices = @transform_1, window_bounds = array<i64: 32, 1>}, {pipeline_mode = #tpu.pipeline_mode<synchronous>, transform_indices = @transform_2, window_bounds = array<i64: 32, 1>}, {pipeline_mode = #tpu.pipeline_mode<synchronous>, transform_indices = @transform_3, window_bounds = array<i64: 9, 8, 32>}, {pipeline_mode = #tpu.pipeline_mode<synchronous>, transform_indices = @transform_4, window_bounds = array<i64: 9, 8, 32>}, {pipeline_mode = #tpu.pipeline_mode<synchronous>, transform_indices = @transform_5, window_bounds = array<i64: 9, 1, 512>}, {transform_indices = @transform_6, window_bounds = array<i64: 1, 8, 512>}]} {
    %c0 = arith.constant 0 : index
    %c0_0 = arith.constant 0 : index
    %c0_1 = arith.constant 0 : index
    %0 = vector.load %arg1[%c0, %c0_0, %c0_1] : memref<1x4x512xf32, #tpu.memory_space<vmem>>, vector<1x4x512xf32>
    %1 = vector.shape_cast %0 : vector<1x4x512xf32> to vector<4x512xf32>
    %2 = vector.extract_strided_slice %1 {offsets = [0, 0], sizes = [1, 512], strides = [1, 1]} : vector<4x512xf32> to vector<1x512xf32>
    %3 = vector.shape_cast %2 : vector<1x512xf32> to vector<1x512xf32>
    %4 = vector.broadcast %3 : vector<1x512xf32> to vector<8x512xf32>
    %5 = vector.extract_strided_slice %1 {offsets = [1, 0], sizes = [1, 512], strides = [1, 1]} : vector<4x512xf32> to vector<1x512xf32>
    %6 = vector.shape_cast %5 : vector<1x512xf32> to vector<1x512xf32>
    %7 = vector.broadcast %6 : vector<1x512xf32> to vector<8x512xf32>
    %8 = vector.extract_strided_slice %1 {offsets = [2, 0], sizes = [1, 512], strides = [1, 1]} : vector<4x512xf32> to vector<1x512xf32>
    %9 = vector.shape_cast %8 : vector<1x512xf32> to vector<1x512xf32>
    %10 = vector.broadcast %9 : vector<1x512xf32> to vector<8x512xf32>
    %11 = vector.extract_strided_slice %1 {offsets = [3, 0], sizes = [1, 512], strides = [1, 1]} : vector<4x512xf32> to vector<1x512xf32>
    %12 = vector.shape_cast %11 : vector<1x512xf32> to vector<1x512xf32>
    %13 = vector.broadcast %12 : vector<1x512xf32> to vector<8x512xf32>
    %14 = tpu.concatenate %4, %7, %10, %13 in 0 : vector<8x512xf32>, vector<8x512xf32>, vector<8x512xf32>, vector<8x512xf32> -> vector<32x512xf32>
    %c0_2 = arith.constant 0 : index
    %c0_3 = arith.constant 0 : index
    %15 = vector.load %arg3[%c0_2, %c0_3] : memref<32x1xf32, #tpu.memory_space<vmem>>, vector<32x1xf32>
    %16 = vector.broadcast %15 : vector<32x1xf32> to vector<32x512xf32>
    %17 = arith.subf %14, %16 : vector<32x512xf32>
    %c0_4 = arith.constant 0 : index
    %c0_5 = arith.constant 0 : index
    %18 = vector.load %arg2[%c0_4, %c0_5] : memref<32x1xf32, #tpu.memory_space<vmem>>, vector<32x1xf32>
    %19 = vector.broadcast %18 : vector<32x1xf32> to vector<32x512xf32>
    %20 = arith.mulf %17, %19 : vector<32x512xf32>
    %21 = arith.mulf %20, %20 : vector<32x512xf32>
    %cst = arith.constant 1.000000e+00 : f32
    %22 = vector.broadcast %cst : f32 to vector<32x512xf32>
    %23 = arith.subf %21, %22 : vector<32x512xf32>
    %cst_6 = arith.constant 0.867325068 : f32
    %24 = vector.broadcast %cst_6 : f32 to vector<32x512xf32>
    %25 = arith.mulf %24, %23 : vector<32x512xf32>
    %cst_7 = arith.constant -5.000000e-01 : f32
    %26 = vector.broadcast %cst_7 : f32 to vector<32x512xf32>
    %27 = arith.mulf %26, %21 : vector<32x512xf32>
    %28 = math.exp %27 : vector<32x512xf32>
    %29 = arith.mulf %25, %28 : vector<32x512xf32>
    %30 = arith.truncf %29 : vector<32x512xf32> to vector<32x512xbf16>
    %31 = arith.extf %30 : vector<32x512xbf16> to vector<32x512xf32>
    %32 = arith.subf %29, %31 : vector<32x512xf32>
    %cst_8 = arith.constant 0.000000e+00 : f32
    %33 = vector.broadcast %cst_8 : f32 to vector<8x512xf32>
    %c17_i32 = arith.constant 17 : i32
    %34 = tpu.dynamic_rotate %31 by %c17_i32 dim 1 : vector<32x512xf32>, i32 -> vector<32x512xf32>
    %c17_i32_9 = arith.constant 17 : i32
    %35 = tpu.dynamic_rotate %32 by %c17_i32_9 dim 1 : vector<32x512xf32>, i32 -> vector<32x512xf32>
    %c0_10 = arith.constant 0 : index
    %c0_11 = arith.constant 0 : index
    %c0_12 = arith.constant 0 : index
    %36 = vector.load %arg4[%c0_10, %c0_11, %c0_12] : memref<9x8x32xf32, #tpu.memory_space<vmem>>, vector<1x8x32xf32>
    %37 = vector.shape_cast %36 : vector<1x8x32xf32> to vector<8x32xf32>
    %cst_13 = arith.constant dense<0.000000e+00> : vector<8x512xf32>
    %38 = tpu.matmul %37, %34, %cst_13 {dimension_numbers = #tpu.dot_dimension_numbers<[1], [0], [0], [1], [0, 0, 1, 1], [], []>} : vector<8x32xf32>, vector<32x512xf32>, vector<8x512xf32> -> vector<8x512xf32>
    %c0_14 = arith.constant 0 : index
    %c0_15 = arith.constant 0 : index
    %c0_16 = arith.constant 0 : index
    %39 = vector.load %arg4[%c0_14, %c0_15, %c0_16] : memref<9x8x32xf32, #tpu.memory_space<vmem>>, vector<1x8x32xf32>
    %40 = vector.shape_cast %39 : vector<1x8x32xf32> to vector<8x32xf32>
    %cst_17 = arith.constant dense<0.000000e+00> : vector<8x512xf32>
    %41 = tpu.matmul %40, %35, %cst_17 {dimension_numbers = #tpu.dot_dimension_numbers<[1], [0], [0], [1], [0, 0, 1, 1], [], []>} : vector<8x32xf32>, vector<32x512xf32>, vector<8x512xf32> -> vector<8x512xf32>
    %42 = arith.addf %38, %41 : vector<8x512xf32>
    %c0_18 = arith.constant 0 : index
    %c0_19 = arith.constant 0 : index
    %c0_20 = arith.constant 0 : index
    %43 = vector.load %arg5[%c0_18, %c0_19, %c0_20] : memref<9x8x32xf32, #tpu.memory_space<vmem>>, vector<1x8x32xf32>
    %44 = vector.shape_cast %43 : vector<1x8x32xf32> to vector<8x32xf32>
    %cst_21 = arith.constant dense<0.000000e+00> : vector<8x512xf32>
    %45 = tpu.matmul %44, %34, %cst_21 {dimension_numbers = #tpu.dot_dimension_numbers<[1], [0], [0], [1], [0, 0, 1, 1], [], []>} : vector<8x32xf32>, vector<32x512xf32>, vector<8x512xf32> -> vector<8x512xf32>
    %46 = arith.addf %42, %45 : vector<8x512xf32>
    %c0_22 = arith.constant 0 : index
    %c0_23 = arith.constant 0 : index
    %c0_24 = arith.constant 0 : index
    %47 = vector.load %arg6[%c0_22, %c0_23, %c0_24] : memref<9x1x512xf32, #tpu.memory_space<vmem>>, vector<1x1x512xf32>
    %48 = vector.shape_cast %47 : vector<1x1x512xf32> to vector<1x512xf32>
    %49 = vector.broadcast %48 : vector<1x512xf32> to vector<8x512xf32>
    %50 = arith.mulf %46, %49 : vector<8x512xf32>
    %51 = arith.addf %33, %50 : vector<8x512xf32>
    %c16_i32 = arith.constant 16 : i32
    %52 = tpu.dynamic_rotate %31 by %c16_i32 dim 1 : vector<32x512xf32>, i32 -> vector<32x512xf32>
    %c16_i32_25 = arith.constant 16 : i32
    %53 = tpu.dynamic_rotate %32 by %c16_i32_25 dim 1 : vector<32x512xf32>, i32 -> vector<32x512xf32>
    %c1 = arith.constant 1 : index
    %c0_26 = arith.constant 0 : index
    %c0_27 = arith.constant 0 : index
    %54 = vector.load %arg4[%c1, %c0_26, %c0_27] : memref<9x8x32xf32, #tpu.memory_space<vmem>>, vector<1x8x32xf32>
    %55 = vector.shape_cast %54 : vector<1x8x32xf32> to vector<8x32xf32>
    %cst_28 = arith.constant dense<0.000000e+00> : vector<8x512xf32>
    %56 = tpu.matmul %55, %52, %cst_28 {dimension_numbers = #tpu.dot_dimension_numbers<[1], [0], [0], [1], [0, 0, 1, 1], [], []>} : vector<8x32xf32>, vector<32x512xf32>, vector<8x512xf32> -> vector<8x512xf32>
    %c1_29 = arith.constant 1 : index
    %c0_30 = arith.constant 0 : index
    %c0_31 = arith.constant 0 : index
    %57 = vector.load %arg4[%c1_29, %c0_30, %c0_31] : memref<9x8x32xf32, #tpu.memory_space<vmem>>, vector<1x8x32xf32>
    %58 = vector.shape_cast %57 : vector<1x8x32xf32> to vector<8x32xf32>
    %cst_32 = arith.constant dense<0.000000e+00> : vector<8x512xf32>
    %59 = tpu.matmul %58, %53, %cst_32 {dimension_numbers = #tpu.dot_dimension_numbers<[1], [0], [0], [1], [0, 0, 1, 1], [], []>} : vector<8x32xf32>, vector<32x512xf32>, vector<8x512xf32> -> vector<8x512xf32>
    %60 = arith.addf %56, %59 : vector<8x512xf32>
    %c1_33 = arith.constant 1 : index
    %c0_34 = arith.constant 0 : index
    %c0_35 = arith.constant 0 : index
    %61 = vector.load %arg5[%c1_33, %c0_34, %c0_35] : memref<9x8x32xf32, #tpu.memory_space<vmem>>, vector<1x8x32xf32>
    %62 = vector.shape_cast %61 : vector<1x8x32xf32> to vector<8x32xf32>
    %cst_36 = arith.constant dense<0.000000e+00> : vector<8x512xf32>
    %63 = tpu.matmul %62, %52, %cst_36 {dimension_numbers = #tpu.dot_dimension_numbers<[1], [0], [0], [1], [0, 0, 1, 1], [], []>} : vector<8x32xf32>, vector<32x512xf32>, vector<8x512xf32> -> vector<8x512xf32>
    %64 = arith.addf %60, %63 : vector<8x512xf32>
    %c1_37 = arith.constant 1 : index
    %c0_38 = arith.constant 0 : index
    %c0_39 = arith.constant 0 : index
    %65 = vector.load %arg6[%c1_37, %c0_38, %c0_39] : memref<9x1x512xf32, #tpu.memory_space<vmem>>, vector<1x1x512xf32>
    %66 = vector.shape_cast %65 : vector<1x1x512xf32> to vector<1x512xf32>
    %67 = vector.broadcast %66 : vector<1x512xf32> to vector<8x512xf32>
    %68 = arith.mulf %64, %67 : vector<8x512xf32>
    %69 = arith.addf %51, %68 : vector<8x512xf32>
    %c15_i32 = arith.constant 15 : i32
    %70 = tpu.dynamic_rotate %31 by %c15_i32 dim 1 : vector<32x512xf32>, i32 -> vector<32x512xf32>
    %c15_i32_40 = arith.constant 15 : i32
    %71 = tpu.dynamic_rotate %32 by %c15_i32_40 dim 1 : vector<32x512xf32>, i32 -> vector<32x512xf32>
    %c2 = arith.constant 2 : index
    %c0_41 = arith.constant 0 : index
    %c0_42 = arith.constant 0 : index
    %72 = vector.load %arg4[%c2, %c0_41, %c0_42] : memref<9x8x32xf32, #tpu.memory_space<vmem>>, vector<1x8x32xf32>
    %73 = vector.shape_cast %72 : vector<1x8x32xf32> to vector<8x32xf32>
    %cst_43 = arith.constant dense<0.000000e+00> : vector<8x512xf32>
    %74 = tpu.matmul %73, %70, %cst_43 {dimension_numbers = #tpu.dot_dimension_numbers<[1], [0], [0], [1], [0, 0, 1, 1], [], []>} : vector<8x32xf32>, vector<32x512xf32>, vector<8x512xf32> -> vector<8x512xf32>
    %c2_44 = arith.constant 2 : index
    %c0_45 = arith.constant 0 : index
    %c0_46 = arith.constant 0 : index
    %75 = vector.load %arg4[%c2_44, %c0_45, %c0_46] : memref<9x8x32xf32, #tpu.memory_space<vmem>>, vector<1x8x32xf32>
    %76 = vector.shape_cast %75 : vector<1x8x32xf32> to vector<8x32xf32>
    %cst_47 = arith.constant dense<0.000000e+00> : vector<8x512xf32>
    %77 = tpu.matmul %76, %71, %cst_47 {dimension_numbers = #tpu.dot_dimension_numbers<[1], [0], [0], [1], [0, 0, 1, 1], [], []>} : vector<8x32xf32>, vector<32x512xf32>, vector<8x512xf32> -> vector<8x512xf32>
    %78 = arith.addf %74, %77 : vector<8x512xf32>
    %c2_48 = arith.constant 2 : index
    %c0_49 = arith.constant 0 : index
    %c0_50 = arith.constant 0 : index
    %79 = vector.load %arg5[%c2_48, %c0_49, %c0_50] : memref<9x8x32xf32, #tpu.memory_space<vmem>>, vector<1x8x32xf32>
    %80 = vector.shape_cast %79 : vector<1x8x32xf32> to vector<8x32xf32>
    %cst_51 = arith.constant dense<0.000000e+00> : vector<8x512xf32>
    %81 = tpu.matmul %80, %70, %cst_51 {dimension_numbers = #tpu.dot_dimension_numbers<[1], [0], [0], [1], [0, 0, 1, 1], [], []>} : vector<8x32xf32>, vector<32x512xf32>, vector<8x512xf32> -> vector<8x512xf32>
    %82 = arith.addf %78, %81 : vector<8x512xf32>
    %c2_52 = arith.constant 2 : index
    %c0_53 = arith.constant 0 : index
    %c0_54 = arith.constant 0 : index
    %83 = vector.load %arg6[%c2_52, %c0_53, %c0_54] : memref<9x1x512xf32, #tpu.memory_space<vmem>>, vector<1x1x512xf32>
    %84 = vector.shape_cast %83 : vector<1x1x512xf32> to vector<1x512xf32>
    %85 = vector.broadcast %84 : vector<1x512xf32> to vector<8x512xf32>
    %86 = arith.mulf %82, %85 : vector<8x512xf32>
    %87 = arith.addf %69, %86 : vector<8x512xf32>
    %c1_i32 = arith.constant 1 : i32
    %88 = tpu.dynamic_rotate %31 by %c1_i32 dim 1 : vector<32x512xf32>, i32 -> vector<32x512xf32>
    %c1_i32_55 = arith.constant 1 : i32
    %89 = tpu.dynamic_rotate %32 by %c1_i32_55 dim 1 : vector<32x512xf32>, i32 -> vector<32x512xf32>
    %c3 = arith.constant 3 : index
    %c0_56 = arith.constant 0 : index
    %c0_57 = arith.constant 0 : index
    %90 = vector.load %arg4[%c3, %c0_56, %c0_57] : memref<9x8x32xf32, #tpu.memory_space<vmem>>, vector<1x8x32xf32>
    %91 = vector.shape_cast %90 : vector<1x8x32xf32> to vector<8x32xf32>
    %cst_58 = arith.constant dense<0.000000e+00> : vector<8x512xf32>
    %92 = tpu.matmul %91, %88, %cst_58 {dimension_numbers = #tpu.dot_dimension_numbers<[1], [0], [0], [1], [0, 0, 1, 1], [], []>} : vector<8x32xf32>, vector<32x512xf32>, vector<8x512xf32> -> vector<8x512xf32>
    %c3_59 = arith.constant 3 : index
    %c0_60 = arith.constant 0 : index
    %c0_61 = arith.constant 0 : index
    %93 = vector.load %arg4[%c3_59, %c0_60, %c0_61] : memref<9x8x32xf32, #tpu.memory_space<vmem>>, vector<1x8x32xf32>
    %94 = vector.shape_cast %93 : vector<1x8x32xf32> to vector<8x32xf32>
    %cst_62 = arith.constant dense<0.000000e+00> : vector<8x512xf32>
    %95 = tpu.matmul %94, %89, %cst_62 {dimension_numbers = #tpu.dot_dimension_numbers<[1], [0], [0], [1], [0, 0, 1, 1], [], []>} : vector<8x32xf32>, vector<32x512xf32>, vector<8x512xf32> -> vector<8x512xf32>
    %96 = arith.addf %92, %95 : vector<8x512xf32>
    %c3_63 = arith.constant 3 : index
    %c0_64 = arith.constant 0 : index
    %c0_65 = arith.constant 0 : index
    %97 = vector.load %arg5[%c3_63, %c0_64, %c0_65] : memref<9x8x32xf32, #tpu.memory_space<vmem>>, vector<1x8x32xf32>
    %98 = vector.shape_cast %97 : vector<1x8x32xf32> to vector<8x32xf32>
    %cst_66 = arith.constant dense<0.000000e+00> : vector<8x512xf32>
    %99 = tpu.matmul %98, %88, %cst_66 {dimension_numbers = #tpu.dot_dimension_numbers<[1], [0], [0], [1], [0, 0, 1, 1], [], []>} : vector<8x32xf32>, vector<32x512xf32>, vector<8x512xf32> -> vector<8x512xf32>
    %100 = arith.addf %96, %99 : vector<8x512xf32>
    %c3_67 = arith.constant 3 : index
    %c0_68 = arith.constant 0 : index
    %c0_69 = arith.constant 0 : index
    %101 = vector.load %arg6[%c3_67, %c0_68, %c0_69] : memref<9x1x512xf32, #tpu.memory_space<vmem>>, vector<1x1x512xf32>
    %102 = vector.shape_cast %101 : vector<1x1x512xf32> to vector<1x512xf32>
    %103 = vector.broadcast %102 : vector<1x512xf32> to vector<8x512xf32>
    %104 = arith.mulf %100, %103 : vector<8x512xf32>
    %105 = arith.addf %87, %104 : vector<8x512xf32>
    %c4 = arith.constant 4 : index
    %c0_70 = arith.constant 0 : index
    %c0_71 = arith.constant 0 : index
    %106 = vector.load %arg4[%c4, %c0_70, %c0_71] : memref<9x8x32xf32, #tpu.memory_space<vmem>>, vector<1x8x32xf32>
    %107 = vector.shape_cast %106 : vector<1x8x32xf32> to vector<8x32xf32>
    %cst_72 = arith.constant dense<0.000000e+00> : vector<8x512xf32>
    %108 = tpu.matmul %107, %31, %cst_72 {dimension_numbers = #tpu.dot_dimension_numbers<[1], [0], [0], [1], [0, 0, 1, 1], [], []>} : vector<8x32xf32>, vector<32x512xf32>, vector<8x512xf32> -> vector<8x512xf32>
    %c4_73 = arith.constant 4 : index
    %c0_74 = arith.constant 0 : index
    %c0_75 = arith.constant 0 : index
    %109 = vector.load %arg4[%c4_73, %c0_74, %c0_75] : memref<9x8x32xf32, #tpu.memory_space<vmem>>, vector<1x8x32xf32>
    %110 = vector.shape_cast %109 : vector<1x8x32xf32> to vector<8x32xf32>
    %cst_76 = arith.constant dense<0.000000e+00> : vector<8x512xf32>
    %111 = tpu.matmul %110, %32, %cst_76 {dimension_numbers = #tpu.dot_dimension_numbers<[1], [0], [0], [1], [0, 0, 1, 1], [], []>} : vector<8x32xf32>, vector<32x512xf32>, vector<8x512xf32> -> vector<8x512xf32>
    %112 = arith.addf %108, %111 : vector<8x512xf32>
    %c4_77 = arith.constant 4 : index
    %c0_78 = arith.constant 0 : index
    %c0_79 = arith.constant 0 : index
    %113 = vector.load %arg5[%c4_77, %c0_78, %c0_79] : memref<9x8x32xf32, #tpu.memory_space<vmem>>, vector<1x8x32xf32>
    %114 = vector.shape_cast %113 : vector<1x8x32xf32> to vector<8x32xf32>
    %cst_80 = arith.constant dense<0.000000e+00> : vector<8x512xf32>
    %115 = tpu.matmul %114, %31, %cst_80 {dimension_numbers = #tpu.dot_dimension_numbers<[1], [0], [0], [1], [0, 0, 1, 1], [], []>} : vector<8x32xf32>, vector<32x512xf32>, vector<8x512xf32> -> vector<8x512xf32>
    %116 = arith.addf %112, %115 : vector<8x512xf32>
    %117 = arith.addf %105, %116 : vector<8x512xf32>
    %c511_i32 = arith.constant 511 : i32
    %118 = tpu.dynamic_rotate %31 by %c511_i32 dim 1 : vector<32x512xf32>, i32 -> vector<32x512xf32>
    %c511_i32_81 = arith.constant 511 : i32
    %119 = tpu.dynamic_rotate %32 by %c511_i32_81 dim 1 : vector<32x512xf32>, i32 -> vector<32x512xf32>
    %c5 = arith.constant 5 : index
    %c0_82 = arith.constant 0 : index
    %c0_83 = arith.constant 0 : index
    %120 = vector.load %arg4[%c5, %c0_82, %c0_83] : memref<9x8x32xf32, #tpu.memory_space<vmem>>, vector<1x8x32xf32>
    %121 = vector.shape_cast %120 : vector<1x8x32xf32> to vector<8x32xf32>
    %cst_84 = arith.constant dense<0.000000e+00> : vector<8x512xf32>
    %122 = tpu.matmul %121, %118, %cst_84 {dimension_numbers = #tpu.dot_dimension_numbers<[1], [0], [0], [1], [0, 0, 1, 1], [], []>} : vector<8x32xf32>, vector<32x512xf32>, vector<8x512xf32> -> vector<8x512xf32>
    %c5_85 = arith.constant 5 : index
    %c0_86 = arith.constant 0 : index
    %c0_87 = arith.constant 0 : index
    %123 = vector.load %arg4[%c5_85, %c0_86, %c0_87] : memref<9x8x32xf32, #tpu.memory_space<vmem>>, vector<1x8x32xf32>
    %124 = vector.shape_cast %123 : vector<1x8x32xf32> to vector<8x32xf32>
    %cst_88 = arith.constant dense<0.000000e+00> : vector<8x512xf32>
    %125 = tpu.matmul %124, %119, %cst_88 {dimension_numbers = #tpu.dot_dimension_numbers<[1], [0], [0], [1], [0, 0, 1, 1], [], []>} : vector<8x32xf32>, vector<32x512xf32>, vector<8x512xf32> -> vector<8x512xf32>
    %126 = arith.addf %122, %125 : vector<8x512xf32>
    %c5_89 = arith.constant 5 : index
    %c0_90 = arith.constant 0 : index
    %c0_91 = arith.constant 0 : index
    %127 = vector.load %arg5[%c5_89, %c0_90, %c0_91] : memref<9x8x32xf32, #tpu.memory_space<vmem>>, vector<1x8x32xf32>
    %128 = vector.shape_cast %127 : vector<1x8x32xf32> to vector<8x32xf32>
    %cst_92 = arith.constant dense<0.000000e+00> : vector<8x512xf32>
    %129 = tpu.matmul %128, %118, %cst_92 {dimension_numbers = #tpu.dot_dimension_numbers<[1], [0], [0], [1], [0, 0, 1, 1], [], []>} : vector<8x32xf32>, vector<32x512xf32>, vector<8x512xf32> -> vector<8x512xf32>
    %130 = arith.addf %126, %129 : vector<8x512xf32>
    %c5_93 = arith.constant 5 : index
    %c0_94 = arith.constant 0 : index
    %c0_95 = arith.constant 0 : index
    %131 = vector.load %arg6[%c5_93, %c0_94, %c0_95] : memref<9x1x512xf32, #tpu.memory_space<vmem>>, vector<1x1x512xf32>
    %132 = vector.shape_cast %131 : vector<1x1x512xf32> to vector<1x512xf32>
    %133 = vector.broadcast %132 : vector<1x512xf32> to vector<8x512xf32>
    %134 = arith.mulf %130, %133 : vector<8x512xf32>
    %135 = arith.addf %117, %134 : vector<8x512xf32>
    %c497_i32 = arith.constant 497 : i32
    %136 = tpu.dynamic_rotate %31 by %c497_i32 dim 1 : vector<32x512xf32>, i32 -> vector<32x512xf32>
    %c497_i32_96 = arith.constant 497 : i32
    %137 = tpu.dynamic_rotate %32 by %c497_i32_96 dim 1 : vector<32x512xf32>, i32 -> vector<32x512xf32>
    %c6 = arith.constant 6 : index
    %c0_97 = arith.constant 0 : index
    %c0_98 = arith.constant 0 : index
    %138 = vector.load %arg4[%c6, %c0_97, %c0_98] : memref<9x8x32xf32, #tpu.memory_space<vmem>>, vector<1x8x32xf32>
    %139 = vector.shape_cast %138 : vector<1x8x32xf32> to vector<8x32xf32>
    %cst_99 = arith.constant dense<0.000000e+00> : vector<8x512xf32>
    %140 = tpu.matmul %139, %136, %cst_99 {dimension_numbers = #tpu.dot_dimension_numbers<[1], [0], [0], [1], [0, 0, 1, 1], [], []>} : vector<8x32xf32>, vector<32x512xf32>, vector<8x512xf32> -> vector<8x512xf32>
    %c6_100 = arith.constant 6 : index
    %c0_101 = arith.constant 0 : index
    %c0_102 = arith.constant 0 : index
    %141 = vector.load %arg4[%c6_100, %c0_101, %c0_102] : memref<9x8x32xf32, #tpu.memory_space<vmem>>, vector<1x8x32xf32>
    %142 = vector.shape_cast %141 : vector<1x8x32xf32> to vector<8x32xf32>
    %cst_103 = arith.constant dense<0.000000e+00> : vector<8x512xf32>
    %143 = tpu.matmul %142, %137, %cst_103 {dimension_numbers = #tpu.dot_dimension_numbers<[1], [0], [0], [1], [0, 0, 1, 1], [], []>} : vector<8x32xf32>, vector<32x512xf32>, vector<8x512xf32> -> vector<8x512xf32>
    %144 = arith.addf %140, %143 : vector<8x512xf32>
    %c6_104 = arith.constant 6 : index
    %c0_105 = arith.constant 0 : index
    %c0_106 = arith.constant 0 : index
    %145 = vector.load %arg5[%c6_104, %c0_105, %c0_106] : memref<9x8x32xf32, #tpu.memory_space<vmem>>, vector<1x8x32xf32>
    %146 = vector.shape_cast %145 : vector<1x8x32xf32> to vector<8x32xf32>
    %cst_107 = arith.constant dense<0.000000e+00> : vector<8x512xf32>
    %147 = tpu.matmul %146, %136, %cst_107 {dimension_numbers = #tpu.dot_dimension_numbers<[1], [0], [0], [1], [0, 0, 1, 1], [], []>} : vector<8x32xf32>, vector<32x512xf32>, vector<8x512xf32> -> vector<8x512xf32>
    %148 = arith.addf %144, %147 : vector<8x512xf32>
    %c6_108 = arith.constant 6 : index
    %c0_109 = arith.constant 0 : index
    %c0_110 = arith.constant 0 : index
    %149 = vector.load %arg6[%c6_108, %c0_109, %c0_110] : memref<9x1x512xf32, #tpu.memory_space<vmem>>, vector<1x1x512xf32>
    %150 = vector.shape_cast %149 : vector<1x1x512xf32> to vector<1x512xf32>
    %151 = vector.broadcast %150 : vector<1x512xf32> to vector<8x512xf32>
    %152 = arith.mulf %148, %151 : vector<8x512xf32>
    %153 = arith.addf %135, %152 : vector<8x512xf32>
    %c496_i32 = arith.constant 496 : i32
    %154 = tpu.dynamic_rotate %31 by %c496_i32 dim 1 : vector<32x512xf32>, i32 -> vector<32x512xf32>
    %c496_i32_111 = arith.constant 496 : i32
    %155 = tpu.dynamic_rotate %32 by %c496_i32_111 dim 1 : vector<32x512xf32>, i32 -> vector<32x512xf32>
    %c7 = arith.constant 7 : index
    %c0_112 = arith.constant 0 : index
    %c0_113 = arith.constant 0 : index
    %156 = vector.load %arg4[%c7, %c0_112, %c0_113] : memref<9x8x32xf32, #tpu.memory_space<vmem>>, vector<1x8x32xf32>
    %157 = vector.shape_cast %156 : vector<1x8x32xf32> to vector<8x32xf32>
    %cst_114 = arith.constant dense<0.000000e+00> : vector<8x512xf32>
    %158 = tpu.matmul %157, %154, %cst_114 {dimension_numbers = #tpu.dot_dimension_numbers<[1], [0], [0], [1], [0, 0, 1, 1], [], []>} : vector<8x32xf32>, vector<32x512xf32>, vector<8x512xf32> -> vector<8x512xf32>
    %c7_115 = arith.constant 7 : index
    %c0_116 = arith.constant 0 : index
    %c0_117 = arith.constant 0 : index
    %159 = vector.load %arg4[%c7_115, %c0_116, %c0_117] : memref<9x8x32xf32, #tpu.memory_space<vmem>>, vector<1x8x32xf32>
    %160 = vector.shape_cast %159 : vector<1x8x32xf32> to vector<8x32xf32>
    %cst_118 = arith.constant dense<0.000000e+00> : vector<8x512xf32>
    %161 = tpu.matmul %160, %155, %cst_118 {dimension_numbers = #tpu.dot_dimension_numbers<[1], [0], [0], [1], [0, 0, 1, 1], [], []>} : vector<8x32xf32>, vector<32x512xf32>, vector<8x512xf32> -> vector<8x512xf32>
    %162 = arith.addf %158, %161 : vector<8x512xf32>
    %c7_119 = arith.constant 7 : index
    %c0_120 = arith.constant 0 : index
    %c0_121 = arith.constant 0 : index
    %163 = vector.load %arg5[%c7_119, %c0_120, %c0_121] : memref<9x8x32xf32, #tpu.memory_space<vmem>>, vector<1x8x32xf32>
    %164 = vector.shape_cast %163 : vector<1x8x32xf32> to vector<8x32xf32>
    %cst_122 = arith.constant dense<0.000000e+00> : vector<8x512xf32>
    %165 = tpu.matmul %164, %154, %cst_122 {dimension_numbers = #tpu.dot_dimension_numbers<[1], [0], [0], [1], [0, 0, 1, 1], [], []>} : vector<8x32xf32>, vector<32x512xf32>, vector<8x512xf32> -> vector<8x512xf32>
    %166 = arith.addf %162, %165 : vector<8x512xf32>
    %c7_123 = arith.constant 7 : index
    %c0_124 = arith.constant 0 : index
    %c0_125 = arith.constant 0 : index
    %167 = vector.load %arg6[%c7_123, %c0_124, %c0_125] : memref<9x1x512xf32, #tpu.memory_space<vmem>>, vector<1x1x512xf32>
    %168 = vector.shape_cast %167 : vector<1x1x512xf32> to vector<1x512xf32>
    %169 = vector.broadcast %168 : vector<1x512xf32> to vector<8x512xf32>
    %170 = arith.mulf %166, %169 : vector<8x512xf32>
    %171 = arith.addf %153, %170 : vector<8x512xf32>
    %c495_i32 = arith.constant 495 : i32
    %172 = tpu.dynamic_rotate %31 by %c495_i32 dim 1 : vector<32x512xf32>, i32 -> vector<32x512xf32>
    %c495_i32_126 = arith.constant 495 : i32
    %173 = tpu.dynamic_rotate %32 by %c495_i32_126 dim 1 : vector<32x512xf32>, i32 -> vector<32x512xf32>
    %c8 = arith.constant 8 : index
    %c0_127 = arith.constant 0 : index
    %c0_128 = arith.constant 0 : index
    %174 = vector.load %arg4[%c8, %c0_127, %c0_128] : memref<9x8x32xf32, #tpu.memory_space<vmem>>, vector<1x8x32xf32>
    %175 = vector.shape_cast %174 : vector<1x8x32xf32> to vector<8x32xf32>
    %cst_129 = arith.constant dense<0.000000e+00> : vector<8x512xf32>
    %176 = tpu.matmul %175, %172, %cst_129 {dimension_numbers = #tpu.dot_dimension_numbers<[1], [0], [0], [1], [0, 0, 1, 1], [], []>} : vector<8x32xf32>, vector<32x512xf32>, vector<8x512xf32> -> vector<8x512xf32>
    %c8_130 = arith.constant 8 : index
    %c0_131 = arith.constant 0 : index
    %c0_132 = arith.constant 0 : index
    %177 = vector.load %arg4[%c8_130, %c0_131, %c0_132] : memref<9x8x32xf32, #tpu.memory_space<vmem>>, vector<1x8x32xf32>
    %178 = vector.shape_cast %177 : vector<1x8x32xf32> to vector<8x32xf32>
    %cst_133 = arith.constant dense<0.000000e+00> : vector<8x512xf32>
    %179 = tpu.matmul %178, %173, %cst_133 {dimension_numbers = #tpu.dot_dimension_numbers<[1], [0], [0], [1], [0, 0, 1, 1], [], []>} : vector<8x32xf32>, vector<32x512xf32>, vector<8x512xf32> -> vector<8x512xf32>
    %180 = arith.addf %176, %179 : vector<8x512xf32>
    %c8_134 = arith.constant 8 : index
    %c0_135 = arith.constant 0 : index
    %c0_136 = arith.constant 0 : index
    %181 = vector.load %arg5[%c8_134, %c0_135, %c0_136] : memref<9x8x32xf32, #tpu.memory_space<vmem>>, vector<1x8x32xf32>
    %182 = vector.shape_cast %181 : vector<1x8x32xf32> to vector<8x32xf32>
    %cst_137 = arith.constant dense<0.000000e+00> : vector<8x512xf32>
    %183 = tpu.matmul %182, %172, %cst_137 {dimension_numbers = #tpu.dot_dimension_numbers<[1], [0], [0], [1], [0, 0, 1, 1], [], []>} : vector<8x32xf32>, vector<32x512xf32>, vector<8x512xf32> -> vector<8x512xf32>
    %184 = arith.addf %180, %183 : vector<8x512xf32>
    %c8_138 = arith.constant 8 : index
    %c0_139 = arith.constant 0 : index
    %c0_140 = arith.constant 0 : index
    %185 = vector.load %arg6[%c8_138, %c0_139, %c0_140] : memref<9x1x512xf32, #tpu.memory_space<vmem>>, vector<1x1x512xf32>
    %186 = vector.shape_cast %185 : vector<1x1x512xf32> to vector<1x512xf32>
    %187 = vector.broadcast %186 : vector<1x512xf32> to vector<8x512xf32>
    %188 = arith.mulf %184, %187 : vector<8x512xf32>
    %189 = arith.addf %171, %188 : vector<8x512xf32>
    %c0_141 = arith.constant 0 : index
    %c0_142 = arith.constant 0 : index
    %c0_143 = arith.constant 0 : index
    %190 = vector.load %arg7[%c0_141, %c0_142, %c0_143] : memref<1x8x512xf32, #tpu.memory_space<vmem>>, vector<1x8x512xf32>
    %191 = vector.shape_cast %190 : vector<1x8x512xf32> to vector<8x512xf32>
    %192 = vector.shape_cast %189 : vector<8x512xf32> to vector<1x8x512xf32>
    tpu.vector_store %arg7[%c0_141, %c0_142, %c0_143], %192 {strides = array<i32>} : memref<1x8x512xf32, #tpu.memory_space<vmem>>, vector<1x8x512xf32>,
    return
  }
  func.func @transform_0(%arg0: i32) -> (i32, i32, i32) {
    %c0_i32 = arith.constant 0 : i32
    %c0_i32_0 = arith.constant 0 : i32
    %c0_i32_1 = arith.constant 0 : i32
    return %arg0, %c0_i32, %c0_i32_0 : i32, i32, i32
  }
  func.func @transform_1(%arg0: i32) -> (i32, i32) {
    %c0_i32 = arith.constant 0 : i32
    %c0_i32_0 = arith.constant 0 : i32
    %c0_i32_1 = arith.constant 0 : i32
    return %c0_i32, %c0_i32_0 : i32, i32
  }
  func.func @transform_2(%arg0: i32) -> (i32, i32) {
    %c0_i32 = arith.constant 0 : i32
    %c0_i32_0 = arith.constant 0 : i32
    %c0_i32_1 = arith.constant 0 : i32
    return %c0_i32, %c0_i32_0 : i32, i32
  }
  func.func @transform_3(%arg0: i32) -> (i32, i32, i32) {
    %c0_i32 = arith.constant 0 : i32
    %c0_i32_0 = arith.constant 0 : i32
    %c0_i32_1 = arith.constant 0 : i32
    %c0_i32_2 = arith.constant 0 : i32
    return %c0_i32, %c0_i32_0, %c0_i32_1 : i32, i32, i32
  }
  func.func @transform_4(%arg0: i32) -> (i32, i32, i32) {
    %c0_i32 = arith.constant 0 : i32
    %c0_i32_0 = arith.constant 0 : i32
    %c0_i32_1 = arith.constant 0 : i32
    %c0_i32_2 = arith.constant 0 : i32
    return %c0_i32, %c0_i32_0, %c0_i32_1 : i32, i32, i32
  }
  func.func @transform_5(%arg0: i32) -> (i32, i32, i32) {
    %c0_i32 = arith.constant 0 : i32
    %c0_i32_0 = arith.constant 0 : i32
    %c0_i32_1 = arith.constant 0 : i32
    %c0_i32_2 = arith.constant 0 : i32
    return %c0_i32, %c0_i32_0, %c0_i32_1 : i32, i32, i32
  }
  func.func @transform_6(%arg0: i32) -> (i32, i32, i32) {
    %c0_i32 = arith.constant 0 : i32
    %c0_i32_0 = arith.constant 0 : i32
    %c0_i32_1 = arith.constant 0 : i32
    return %arg0, %c0_i32, %c0_i32_0 : i32, i32, i32
  }
}

</mosaic_0001>

<bundles_post_ra>
// kernel: wavelet_conv_nd.1
= control target key start
LH: loop header
LB: loop body
LE: loop exit
PB: predicated region body
PF: predicated region fallthrough
CT: control target
= control target key end

     0   :  { %v6680_v0 = vmov 0   ;;  %v8696_v9 = vlaneseq  ;;  %s6683_s16 = smov 15   ;;  %s6685_s17 = smov 1   ;;  %vm503_vm1 = vcmask 261120   ;;  %s8687_s2 = inlined_call_operand.vmem [shape: f32[32,1], index: 2, kind: input, shape index: {}]   ;;  %s8688_s1 = inlined_call_operand.vmem [shape: f32[32,1], index: 1, kind: input, shape index: {}]   ;;  %s8689_s0 = inlined_call_operand.vmem [shape: f32[1,4,512], index: 0, kind: input, shape index: {}]   ;;  %s8690_s3 = inlined_call_operand.vmem [shape: f32[9,8,32], index: 3, kind: input, shape index: {}]   ;;  %s8691_s4 = inlined_call_operand.vmem [shape: f32[9,8,32], index: 4, kind: input, shape index: {}]   ;;  %s8692_s5 = inlined_call_operand.vmem [shape: f32[9,1,512], index: 5, kind: input, shape index: {}]   ;;  %s8693_s6 = inlined_call_operand.vmem [shape: f32[1,8,512], index: 6, kind: output, shape index: {}]  }
   0x1   :  { %6007 = vset.pattern.permute.xlu1 %v6680_v0  ;;  %6006 = vset.pattern.permute.xlu0 %v6680_v0  ;;  %v171_v1 = vld [vmem:[%s8687_s2] sm:$0xff]  ;;  %v172_v3 = vld [vmem:[%s8687_s2 + $0x8] sm:$0xff]  ;;  %v173_v5 = vld [vmem:[%s8687_s2 + $0x10] sm:$0xff]  ;;  %s6686_s18 = smov 127   ;;  %s6687_s19 = smov 113  }
   0x2   :  { %v211_v2 = vld [vmem:[%s8688_s1] sm:$0xff]  ;;  %177 = vperm.xlu0 %6006, %v171_v1   ;;  %v212_v4 = vld [vmem:[%s8688_s1 + $0x8] sm:$0xff]  ;;  %v174_v6 = vld [vmem:[%s8687_s2 + $0x18] sm:$0xff]  ;;  %v6750_v10 = vshrl.u32 %v8696_v9, 7  ;;  %s6688_s22 = smov 112   ;;  %s6689_s29 = smov 111  }
   0x3   :  { %217 = vperm.xlu1 %6007, %v211_v2   ;;  %v213_v7 = vld [vmem:[%s8688_s1 + $0x10] sm:$0xff]  ;;  %v214_v8 = vld [vmem:[%s8688_s1 + $0x18] sm:$0xff]  ;;  %v6759_v13 = vld [vmem:[%s8689_s0] sm:$0xff]  ;;  %s6682_s1 = smov 16  }
   0x4   :  { %v6753_v11 = vsub.s32 0, %v6750_v10  ;;  %v33_v12 = vsub.s32 4, %v6750_v10  ;;  %v6764_v14 = vld [vmem:[%s8689_s0 + $0x8] sm:$0xff]  ;;  %v6772_v18 = vsub.s32 1, %v6750_v10  ;;  %v69_v19 = vsub.s32 5, %v6750_v10  ;;  %s6681_s0 = smov 17  }
   0x5   :  { %v6787_v29 = vsub.s32 2, %v6750_v10  ;;  %v105_v34 = vsub.s32 6, %v6750_v10  ;;  %v6797_v46 = vsub.s32 3, %v6750_v10  ;;  %v141_v53 = vsub.s32 7, %v6750_v10 }
   0x6   :  { %182 = vperm.xlu0 %6006, %v172_v3   ;;  %8747 = vst [vmem:[#allocation2_spill] sm:$0xff] %v6753_v11  ;;  %v30_v15 = vrot.slane %v6759_v13, %v6753_v11  ;;  %v34_v16 = vrot.slane %v6759_v13, %v33_v12  ;;  %v38_v17 = vrot.slane %v6764_v14, %v6753_v11  ;;  %8748 = vst [vmem:[#allocation3_spill] sm:$0xff] %v6772_v18 }
   0x7   :  { %222 = vperm.xlu1 %6007, %v212_v4   ;;  %v42_v20 = vrot.slane %v6764_v14, %v33_v12  ;;  %v66_v24 = vrot.slane %v6759_v13, %v6772_v18  ;;  %v70_v25 = vrot.slane %v6759_v13, %v69_v19  ;;  %v74_v26 = vrot.slane %v6764_v14, %v6772_v18 }
   0x8   :  { %v50_v21 = vrot.slane %v30_v15, %v6753_v11  ;;  %v54_v22 = vrot.slane %v34_v16, %v6753_v11  ;;  %v58_v23 = vrot.slane %v38_v17, %v6753_v11  ;;  %v78_v27 = vrot.slane %v6764_v14, %v69_v19  ;;  %8749 = vst [vmem:[#allocation4_spill] sm:$0xff] %v6787_v29 }
   0x9   :  { %v62_v28 = vrot.slane %v42_v20, %v6753_v11  ;;  %v86_v36 = vrot.slane %v66_v24, %v6772_v18  ;;  %v90_v37 = vrot.slane %v70_v25, %v6772_v18  ;;  %v94_v38 = vrot.slane %v74_v26, %v6772_v18  ;;  %8750 = vst [vmem:[#allocation5_spill] sm:$0xff] %v6797_v46 }
   0xa   :  { %187 = vperm.xlu0 %6006, %v173_v5   ;;  %v98_v39 = vrot.slane %v78_v27, %v6772_v18  ;;  %v102_v45 = vrot.slane %v6759_v13, %v6787_v29  ;;  %v106_v49 = vrot.slane %v6759_v13, %v105_v34  ;;  %v110_v59 = vrot.slane %v6764_v14, %v6787_v29 }
   0xb   :  { %192 = vperm.xlu1 %6007, %v174_v6   ;;  %v114_v60 = vrot.slane %v6764_v14, %v105_v34  ;;  %v138_v1 = vrot.slane %v6759_v13, %v6797_v46  ;;  %v6812_v4 = vrot.slane %v6759_v13, %v141_v53  ;;  %v146_v5 = vrot.slane %v6764_v14, %v6797_v46 }
   0xc   :  { %v122_v61 = vrot.slane %v102_v45, %v6787_v29  ;;  %v126_v0 = vrot.slane %v106_v49, %v6787_v29  ;;  %v6817_v12 = vrot.slane %v6764_v14, %v141_v53  ;;  %v130_v19 = vrot.slane %v110_v59, %v6787_v29 }
   0xd   :  { %v134_v13 = vrot.slane %v114_v60, %v6787_v29  ;;  %v158_v25 = vrot.slane %v138_v1, %v6797_v46  ;;  %v162_v26 = vrot.slane %v6812_v4, %v6797_v46  ;;  %v8775_v29 = vlaneseq }
   0xe   :  { %227 = vperm.xlu0 %6006, %v213_v7  }
   0xf   :  { %232 = vperm.xlu1 %6007, %v214_v8   ;;  %v7191_v18 = vand.u32 127, %v8775_v29 }
  0x11   :  { %vm437_vm0 = vcmp.lt.s32.totalorder %v7191_v18, 17  ;;  %vm1003_vm2 = vcmp.lt.s32.totalorder %v7191_v18, 16  ;;  %vm1571_vm3 = vcmp.lt.s32.totalorder %v7191_v18, 15  ;;  %vm2139_vm4 = vcmp.lt.s32.totalorder %v7191_v18, 1 }
  0x12   :  { %vm3151_vm5 = vcmp.lt.s32.totalorder %v7191_v18, 127  ;;  %vm3719_vm6 = vcmp.lt.s32.totalorder %v7191_v18, 113  ;;  %vm4287_vm7 = vcmp.lt.s32.totalorder %v7191_v18, 112  ;;  %vm4855_vm8 = vcmp.lt.s32.totalorder %v7191_v18, 111  ;;  %v5488_v18 = vld [vmem:[%s8691_s4 + $0x40] sm:$0xff] }
  0x81   :  { %v178_v30 = vpop.permute.xlu0 %177 }
  0x82   :  { %v195_v31 = vsub.f32 %v50_v21, %v178_v30  ;;  %v196_v32 = vsub.f32 %v54_v22, %v178_v30  ;;  %v197_v33 = vsub.f32 %v58_v23, %v178_v30  ;;  %v218_v35 = vpop.permute.xlu1 %217  ;;  %v198_v40 = vsub.f32 %v62_v28, %v178_v30 }
  0x83   :  { %v6825_v28 = vrot.slane %v146_v5, %v6797_v46  ;;  %v170_v30 = vrot.slane %v6817_v12, %v6797_v46 }
  0x84   :  { %v235_v41 = vmul.f32 %v218_v35, %v195_v31  ;;  %v236_v42 = vmul.f32 %v218_v35, %v196_v32  ;;  %v237_v43 = vmul.f32 %v218_v35, %v197_v33  ;;  %v238_v54 = vmul.f32 %v218_v35, %v198_v40 }
  0x85   :  { %v183_v44 = vpop.permute.xlu0 %182 }
  0x86   :  { %v251_v47 = vmul.f32 %v235_v41, %v235_v41  ;;  %v252_v48 = vmul.f32 %v236_v42, %v236_v42  ;;  %v6800_v50 = vmul.f32 %v237_v43, %v237_v43  ;;  %v199_v51 = vsub.f32 %v86_v36, %v183_v44  ;;  %v223_v58 = vpop.permute.xlu1 %222 }
  0x87   :  { %v200_v52 = vsub.f32 %v90_v37, %v183_v44  ;;  %v201_v55 = vsub.f32 %v94_v38, %v183_v44  ;;  %v202_v56 = vsub.f32 %v98_v39, %v183_v44  ;;  %v254_v6 = vmul.f32 %v238_v54, %v238_v54 }
  0x88   :  { %v299_v57 = vmul.f32 -0.5, %v251_v47  ;;  %v300_v62 = vmul.f32 -0.5, %v252_v48  ;;  %v239_v63 = vmul.f32 %v223_v58, %v199_v51  ;;  %v301_v2 = vmul.f32 -0.5, %v6800_v50 }
  0x89   :  { %v240_v3 = vmul.f32 %v223_v58, %v200_v52  ;;  %v241_v7 = vmul.f32 %v223_v58, %v201_v55  ;;  %v242_v8 = vmul.f32 %v223_v58, %v202_v56  ;;  %v188_v10 = vpop.permute.xlu0 %187  ;;  %v302_v27 = vmul.f32 -0.5, %v254_v6 }
  0x8a   :  { %v315_v15 = vmul.f32 1.442695, %v299_v57  ;;  %v255_v16 = vmul.f32 %v239_v63, %v239_v63  ;;  %v317_v20 = vmul.f32 1.442695, %v300_v62  ;;  %v319_v23 = vmul.f32 1.442695, %v301_v2  ;;  %v193_v37 = vpop.permute.xlu1 %192 }
  0x8b   :  { %v256_v17 = vmul.f32 %v240_v3, %v240_v3  ;;  %v257_v21 = vmul.f32 %v241_v7, %v241_v7  ;;  %v258_v22 = vmul.f32 %v242_v8, %v242_v8  ;;  %v5399_v31 = vadd.f32 -1.0, %v251_v47 }
  0x8c   :  { %v303_v24 = vmul.f32 -0.5, %v255_v16  ;;  %6648 = vpow2.f32 %v315_v15  ;;  %v203_v35 = vsub.f32 %v122_v61, %v188_v10  ;;  %v204_v36 = vsub.f32 %v126_v0, %v188_v10 }
  0x8d   :  { %v304_v14 = vmul.f32 -0.5, %v256_v17  ;;  %v305_v32 = vmul.f32 -0.5, %v257_v21  ;;  %v306_v33 = vmul.f32 -0.5, %v258_v22  ;;  %6650 = vpow2.f32 %v317_v20  ;;  %v228_v38 = vpop.permute.xlu0 %227 }
  0x8e   :  { %v323_v34 = vmul.f32 1.442695, %v303_v24  ;;  %6652 = vpow2.f32 %v319_v23  ;;  %v321_v42 = vmul.f32 1.442695, %v302_v27  ;;  %v205_v43 = vsub.f32 %v130_v19, %v188_v10  ;;  %v233_v60 = vpop.permute.xlu1 %232 }
  0x8f   :  { %v325_v39 = vmul.f32 1.442695, %v304_v14  ;;  %v327_v40 = vmul.f32 1.442695, %v305_v32  ;;  %v329_v41 = vmul.f32 1.442695, %v306_v33  ;;  %v206_v44 = vsub.f32 %v134_v13, %v188_v10 }
  0x90   :  { %6654 = vpow2.f32 %v323_v34  ;;  %v5400_v45 = vadd.f32 -1.0, %v252_v48  ;;  %v243_v47 = vmul.f32 %v228_v38, %v203_v35  ;;  %v244_v49 = vmul.f32 %v228_v38, %v204_v36 }
  0x91   :  { %6656 = vpow2.f32 %v325_v39  ;;  %v5401_v51 = vadd.f32 -1.0, %v6800_v50  ;;  %v245_v52 = vmul.f32 %v228_v38, %v205_v43  ;;  %v246_v53 = vmul.f32 %v228_v38, %v206_v44 }
  0x92   :  { %6658 = vpow2.f32 %v327_v40  ;;  %v5402_v54 = vadd.f32 -1.0, %v254_v6  ;;  %v259_v55 = vmul.f32 %v243_v47, %v243_v47  ;;  %v260_v56 = vmul.f32 %v244_v49, %v244_v49 }
  0x93   :  { %6660 = vpow2.f32 %v329_v41  ;;  %v283_v57 = vmul.f32 0.86732507, %v5399_v31  ;;  %v5403_v58 = vadd.f32 -1.0, %v255_v16  ;;  %v261_v59 = vmul.f32 %v245_v52, %v245_v52 }
  0x94   :  { %6662 = vpow2.f32 %v321_v42  ;;  %v5404_v61 = vadd.f32 -1.0, %v256_v17  ;;  %v5405_v62 = vadd.f32 -1.0, %v257_v21  ;;  %v207_v48 = vsub.f32 %v158_v25, %v193_v37 }
  0x95   :  { %v262_v63 = vmul.f32 %v246_v53, %v246_v53  ;;  %v284_v0 = vmul.f32 0.86732507, %v5400_v45  ;;  %v285_v1 = vmul.f32 0.86732507, %v5401_v51  ;;  %v307_v2 = vmul.f32 -0.5, %v259_v55 }
  0x96   :  { %v6649_v50 = vpop.eup %6648  ;;  %v286_v3 = vmul.f32 0.86732507, %v5402_v54  ;;  %v5406_v4 = vadd.f32 -1.0, %v258_v22  ;;  %v308_v5 = vmul.f32 -0.5, %v260_v56  ;;  %v247_v6 = vmul.f32 %v233_v60, %v207_v48 }
  0x97   :  { %v6651_v7 = vpop.eup %6650  ;;  %v287_v8 = vmul.f32 0.86732507, %v5403_v58  ;;  %v208_v10 = vsub.f32 %v162_v26, %v193_v37  ;;  %v209_v12 = vsub.f32 %v6825_v28, %v193_v37  ;;  %v309_v15 = vmul.f32 -0.5, %v261_v59 }
  0x98   :  { %v6653_v16 = vpop.eup %6652  ;;  %v288_v19 = vmul.f32 0.86732507, %v5404_v61  ;;  %v289_v17 = vmul.f32 0.86732507, %v5405_v62  ;;  %v210_v20 = vsub.f32 %v170_v30, %v193_v37  ;;  %v310_v21 = vmul.f32 -0.5, %v262_v63 }
  0x99   :  { %v6831_v23 = vmul.f32 %v6649_v50, %v283_v57  ;;  %v331_v24 = vmul.f32 1.442695, %v307_v2  ;;  %v248_v25 = vmul.f32 %v233_v60, %v208_v10  ;;  %v249_v27 = vmul.f32 %v233_v60, %v209_v12 }
  0x9a   :  { %v6655_v13 = vpop.eup %6654  ;;  %v333_v31 = vmul.f32 1.442695, %v308_v5  ;;  %v250_v32 = vmul.f32 %v233_v60, %v210_v20  ;;  %v263_v26 = vmul.f32 %v247_v6, %v247_v6  ;;  %v6835_v28 = vmul.f32 %v6651_v7, %v284_v0 }
  0x9b   :  { %v6657_v22 = vpop.eup %6656  ;;  %v6833_v14 = vmul.f32 %v6655_v13, %v287_v8  ;;  %v290_v34 = vmul.f32 0.86732507, %v5406_v4  ;;  %v335_v36 = vmul.f32 1.442695, %v309_v15  ;;  %v6837_v37 = vmul.f32 %v6653_v16, %v285_v1 }
  0x9c   :  { %v6659_v33 = vpop.eup %6658  ;;  %v352_v35 = vmul.f32 %v6657_v22, %v288_v19  ;;  %v5407_v39 = vadd.f32 -1.0, %v259_v55  ;;  %v337_v40 = vmul.f32 1.442695, %v310_v21  ;;  %6664 = vpow2.f32 %v331_v24 }
  0x9d   :  { %v6661_v30 = vpop.eup %6660  ;;  %v6841_v38 = vpack.c.bf16 %v6833_v14, %v6831_v23  ;;  %v353_v42 = vmul.f32 %v6659_v33, %v289_v17  ;;  %v264_v43 = vmul.f32 %v248_v25, %v248_v25  ;;  %v265_v44 = vmul.f32 %v249_v27, %v249_v27 }
  0x9e   :  { %v6663_v41 = vpop.eup %6662  ;;  %v354_v45 = vmul.f32 %v6661_v30, %v290_v34  ;;  %6666 = vpow2.f32 %v333_v31  ;;  %v266_v47 = vmul.f32 %v250_v32, %v250_v32  ;;  %v311_v49 = vmul.f32 -0.5, %v263_v26 }
  0x9f   :  { %8751 = vst [vmem:[#allocation6_spill] sm:$0xff] %v6841_v38  ;;  %v6844_v51 = vpack.c.bf16 %v352_v35, %v6835_v28  ;;  %v371_v52 = vunpack.c.l.bf16 %v6841_v38  ;;  %v375_v53 = vunpack.c.h.bf16 %v6841_v38  ;;  %6668 = vpow2.f32 %v335_v36 }
  0xa0   :  { %v350_v54 = vmul.f32 %v6663_v41, %v286_v3  ;;  %v5408_v55 = vadd.f32 -1.0, %v260_v56  ;;  %v5409_v57 = vadd.f32 -1.0, %v261_v59  ;;  %6670 = vpow2.f32 %v337_v40 }
  0xa1   :  { %8752 = vst [vmem:[#allocation7_spill] sm:$0xff] %v6844_v51  ;;  %v6849_v58 = vpack.c.bf16 %v353_v42, %v6837_v37  ;;  %v5410_v60 = vadd.f32 -1.0, %v262_v63  ;;  %v291_v61 = vmul.f32 0.86732507, %v5407_v39  ;;  %v312_v62 = vmul.f32 -0.5, %v264_v43 }
  0xa2   :  { %v6851_v48 = vpack.c.bf16 %v354_v45, %v350_v54  ;;  %v313_v0 = vmul.f32 -0.5, %v265_v44  ;;  %v314_v1 = vmul.f32 -0.5, %v266_v47  ;;  %v339_v2 = vmul.f32 1.442695, %v311_v49 }
  0xa3   :  { %8753 = vst [vmem:[#allocation8_spill] sm:$0xff] %v6849_v58  ;;  %v372_v50 = vunpack.c.l.bf16 %v6844_v51  ;;  %v376_v4 = vunpack.c.h.bf16 %v6844_v51  ;;  %v341_v5 = vmul.f32 1.442695, %v312_v62  ;;  %v6855_v3 = vpack.i.bf16 %v375_v53, %v371_v52 }
  0xa4   :  { %8754 = vst [vmem:[#allocation9_spill] sm:$0xff] %v6851_v48  ;;  %v5411_v56 = vadd.f32 -1.0, %v263_v26  ;;  %6672 = vpow2.f32 %v339_v2  ;;  %v343_v59 = vmul.f32 1.442695, %v313_v0  ;;  %v345_v6 = vmul.f32 1.442695, %v314_v1 }
  0xa5   :  { %v6858_v63 = vunpack.c.h.bf16 %v6849_v58  ;;  %v292_v7 = vmul.f32 0.86732507, %v5408_v55  ;;  %v5412_v8 = vadd.f32 -1.0, %v264_v43  ;;  %6674 = vpow2.f32 %v341_v5  ;;  %6009 = vrot.lane.b32.xlu0 %v6855_v3, %s6681_s0 }
  0xa6   :  { %v6863_v10 = vunpack.c.l.bf16 %v6849_v58  ;;  %v374_v12 = vunpack.c.l.bf16 %v6851_v48  ;;  %v378_v15 = vunpack.c.h.bf16 %v6851_v48  ;;  %6676 = vpow2.f32 %v343_v59  ;;  %v6665_v16 = vpop.eup %6664 }
  0xa7   :  { %v5413_v19 = vadd.f32 -1.0, %v265_v44  ;;  %v5414_v17 = vadd.f32 -1.0, %v266_v47  ;;  %6678 = vpow2.f32 %v345_v6  ;;  %v6867_v20 = vpack.i.bf16 %v376_v4, %v372_v50 }
  0xa8   :  { %v6667_v21 = vpop.eup %6666  ;;  %v6870_v13 = vsub.f32 %v6833_v14, %v375_v53  ;;  %v293_v24 = vmul.f32 0.86732507, %v5409_v57  ;;  %v294_v25 = vmul.f32 0.86732507, %v5410_v60  ;;  %v295_v27 = vmul.f32 0.86732507, %v5411_v56 }
  0xa9   :  { %v6669_v22 = vpop.eup %6668  ;;  %v6872_v31 = vsub.f32 %v352_v35, %v376_v4  ;;  %v6875_v32 = vsub.f32 %v353_v42, %v6858_v63  ;;  %6019 = vrot.lane.b32.xlu0 %v6867_v20, %s6681_s0  ;;  %v6880_v26 = vsub.f32 %v6831_v23, %v371_v52  ;;  %v6882_v34 = vsub.f32 %v354_v45, %v378_v15 }
  0xaa   :  { %8755 = vst [vmem:[#allocation10_spill] sm:$0xff] %v6870_v13  ;;  %v6671_v33 = vpop.eup %6670  ;;  %v6886_v14 = vsub.f32 %v6837_v37, %v6863_v10  ;;  %v6889_v36 = vsub.f32 %v6835_v28, %v372_v50  ;;  %v6891_v35 = vsub.f32 %v350_v54, %v374_v12  ;;  %v296_v30 = vmul.f32 0.86732507, %v5412_v8 }
  0xab   :  { %8756 = vst [vmem:[#allocation11_spill] sm:$0xff] %v6872_v31  ;;  %8757 = vst [vmem:[#allocation12_spill] sm:$0xff] %v6875_v32  ;;  %v297_v39 = vmul.f32 0.86732507, %v5413_v19  ;;  %v298_v40 = vmul.f32 0.86732507, %v5414_v17  ;;  %v355_v41 = vmul.f32 %v6665_v16, %v291_v61  ;;  %v6895_v23 = vpack.i.bf16 %v6858_v63, %v6863_v10 }
  0xac   :  { %8758 = vst [vmem:[#allocation13_spill] sm:$0xff] %v6880_v26  ;;  %8759 = vst [vmem:[#allocation14_spill] sm:$0xff] %v6882_v34  ;;  %v6897_v42 = vpack.i.bf16 %v378_v15, %v374_v12  ;;  %v356_v43 = vmul.f32 %v6667_v21, %v292_v7  ;;  %v357_v44 = vmul.f32 %v6669_v22, %v293_v24 }
  0xad   :  { %8760 = vst [vmem:[#allocation15_spill] sm:$0xff] %v6886_v14  ;;  %8761 = vst [vmem:[#allocation16_spill] sm:$0xff] %v6889_v36  ;;  %v358_v45 = vmul.f32 %v6671_v33, %v294_v25  ;;  %v6901_v37 = vpack.i.bf16 %v6870_v13, %v6880_v26  ;;  %v6905_v47 = vpack.i.bf16 %v6875_v32, %v6886_v14 }
  0xae   :  { %8762 = vst [vmem:[#allocation17_spill] sm:$0xff] %v6891_v35  ;;  %v6673_v28 = vpop.eup %6672  ;;  %v6909_v49 = vpack.i.bf16 %v6872_v31, %v6889_v36  ;;  %v6913_v52 = vpack.i.bf16 %v6882_v34, %v6891_v35 }
  0xaf   :  { %v6675_v53 = vpop.eup %6674  ;;  %v359_v54 = vmul.f32 %v6673_v28, %v295_v27 }
  0xb0   :  { %v6677_v55 = vpop.eup %6676  ;;  %v360_v57 = vmul.f32 %v6675_v53, %v296_v30 }
  0xb1   :  { %v6679_v60 = vpop.eup %6678  ;;  %v361_v61 = vmul.f32 %v6677_v55, %v297_v39  ;;  %v6915_v62 = vpack.c.bf16 %v359_v54, %v355_v41 }
  0xb2   :  { %v362_v0 = vmul.f32 %v6679_v60, %v298_v40  ;;  %v6917_v1 = vpack.c.bf16 %v360_v57, %v356_v43 }
  0xb3   :  { %8763 = vst [vmem:[#allocation18_spill] sm:$0xff] %v6915_v62  ;;  %v6919_v2 = vpack.c.bf16 %v361_v61, %v357_v44  ;;  %v379_v50 = vunpack.c.l.bf16 %v6915_v62  ;;  %v383_v4 = vunpack.c.h.bf16 %v6915_v62 }
  0xb4   :  { %8764 = vst [vmem:[#allocation19_spill] sm:$0xff] %v6917_v1  ;;  %v6923_v5 = vpack.c.bf16 %v362_v0, %v358_v45  ;;  %v380_v56 = vunpack.c.l.bf16 %v6917_v1  ;;  %v384_v6 = vunpack.c.h.bf16 %v6917_v1 }
  0xb5   :  { %8765 = vst [vmem:[#allocation20_spill] sm:$0xff] %v6919_v2  ;;  %v381_v59 = vunpack.c.l.bf16 %v6919_v2  ;;  %v385_v7 = vunpack.c.h.bf16 %v6919_v2  ;;  %v6929_v8 = vpack.i.bf16 %v383_v4, %v379_v50  ;;  %v6941_v17 = vsub.f32 %v359_v54, %v383_v4 }
  0xb6   :  { %8766 = vst [vmem:[#allocation21_spill] sm:$0xff] %v6923_v5  ;;  %v382_v15 = vunpack.c.l.bf16 %v6923_v5  ;;  %v386_v16 = vunpack.c.h.bf16 %v6923_v5  ;;  %v6939_v19 = vpack.i.bf16 %v384_v6, %v380_v56  ;;  %v6943_v21 = vsub.f32 %v360_v57, %v384_v6 }
  0xb7   :  { %6014 = vrot.lane.b32.xlu1 %v6929_v8, %s6681_s0  ;;  %v6933_v12 = vpack.i.bf16 %v385_v7, %v381_v59  ;;  %8767 = vst [vmem:[#allocation22_spill] sm:$0xff] %v6941_v17  ;;  %v6945_v24 = vsub.f32 %v361_v61, %v385_v7  ;;  %v6949_v25 = vsub.f32 %v355_v41, %v379_v50 }
  0xb8   :  { %8768 = vst [vmem:[#allocation23_spill] sm:$0xff] %v6943_v21  ;;  %v6951_v27 = vsub.f32 %v357_v44, %v381_v59  ;;  %v6953_v22 = vsub.f32 %v356_v43, %v380_v56  ;;  %v6955_v33 = vsub.f32 %v362_v0, %v386_v16  ;;  %v6957_v30 = vsub.f32 %v358_v45, %v382_v15 }
  0xb9   :  { %6034 = vrot.lane.b32.xlu0 %v6933_v12, %s6681_s0  ;;  %8769 = vst [vmem:[#allocation24_spill] sm:$0xff] %v6945_v24  ;;  %8770 = vst [vmem:[#allocation25_spill] sm:$0xff] %v6949_v25  ;;  %v6961_v39 = vpack.i.bf16 %v386_v16, %v382_v15  ;;  %v6967_v40 = vpack.i.bf16 %v6941_v17, %v6949_v25  ;;  %v6103_v0 = vpack.i.bf16 %v6880_v26, %v6863_v10  ;;  %v8694_v15 = vmov 0.0  }
  0xba   :  { %8771 = vst [vmem:[#allocation26_spill] sm:$0xff] %v6951_v27  ;;  %8772 = vst [vmem:[#allocation27_spill] sm:$0xff] %v6953_v22  ;;  %v6971_v41 = vpack.i.bf16 %v6945_v24, %v6951_v27  ;;  %v6975_v43 = vpack.i.bf16 %v6943_v21, %v6953_v22  ;;  %v6979_v44 = vpack.i.bf16 %v6955_v33, %v6957_v30  ;;  %571 = vmatprep.mubr.f32.mxu0 %v8694_v15 }
  0xbb   :  { %6024 = vrot.lane.b32.xlu1 %v6939_v19, %s6681_s0  ;;  %8773 = vst [vmem:[#allocation28_spill] sm:$0xff] %v6955_v33  ;;  %8774 = vst [vmem:[#allocation29_spill] sm:$0xff] %v6957_v30  ;;  %v6113_v50 = vpack.i.bf16 %v6886_v14, %v6872_v31  ;;  %v6123_v4 = vpack.i.bf16 %v6949_v25, %v6882_v34  ;;  %v6108_v10 = vpack.i.bf16 %v6889_v36, %v6870_v13 }
  0xbc   :  { %v6133_v56 = vpack.i.bf16 %v6951_v27, %v6943_v21  ;;  %v6118_v59 = vpack.i.bf16 %v6891_v35, %v6875_v32  ;;  %v6143_v6 = vpack.i.bf16 %v6858_v63, %v6955_v33  ;;  %v6128_v7 = vpack.i.bf16 %v6953_v22, %v6941_v17  ;;  %642 = vmatprep.mubr.f32.mxu1 %v8694_v15 }
  0xbd   :  { %6044 = vrot.lane.b32.xlu0 %v6855_v3, %s6682_s1  ;;  %v6138_v16 = vpack.i.bf16 %v6957_v30, %v6945_v24 }
  0xbf   :  { %6029 = vrot.lane.b32.xlu1 %v6897_v42, %s6681_s0 }
  0xc1   :  { %6054 = vrot.lane.b32.xlu0 %v6895_v23, %s6682_s1 }
  0xc3   :  { %6039 = vrot.lane.b32.xlu1 %v6961_v39, %s6681_s0 }
  0xc5   :  { %6064 = vrot.lane.b32.xlu0 %v6929_v8, %s6682_s1 }
  0xc7   :  { %6049 = vrot.lane.b32.xlu1 %v6867_v20, %s6682_s1 }
  0xc9   :  { %6074 = vrot.lane.b32.xlu0 %v6933_v12, %s6682_s1 }
  0xcb   :  { %6059 = vrot.lane.b32.xlu1 %v6897_v42, %s6682_s1 }
  0xcd   :  { %6084 = vrot.lane.b32.xlu0 %v6855_v3, %s6683_s16 }
  0xcf   :  { %6069 = vrot.lane.b32.xlu1 %v6939_v19, %s6682_s1 }
  0xd1   :  { %6094 = vrot.lane.b32.xlu0 %v6895_v23, %s6683_s16 }
  0xd3   :  { %6079 = vrot.lane.b32.xlu1 %v6961_v39, %s6682_s1 }
  0xd5   :  { %6104 = vrot.lane.b32.xlu0 %v6103_v0, %s6681_s0 }
  0xd7   :  { %6089 = vrot.lane.b32.xlu1 %v6867_v20, %s6683_s16 }
  0xd9   :  { %6114 = vrot.lane.b32.xlu0 %v6113_v50, %s6681_s0 }
  0xdb   :  { %6099 = vrot.lane.b32.xlu1 %v6897_v42, %s6683_s16 }
  0xdd   :  { %6124 = vrot.lane.b32.xlu0 %v6123_v4, %s6681_s0 }
  0xdf   :  { %6109 = vrot.lane.b32.xlu1 %v6108_v10, %s6681_s0 }
  0xe1   :  { %6134 = vrot.lane.b32.xlu0 %v6133_v56, %s6681_s0 }
  0xe3   :  { %6119 = vrot.lane.b32.xlu1 %v6118_v59, %s6681_s0 }
  0xe5   :  { %6144 = vrot.lane.b32.xlu0 %v6143_v6, %s6681_s0 }
  0xe7   :  { %6129 = vrot.lane.b32.xlu1 %v6128_v7, %s6681_s0 }
  0xe9   :  { %6149 = vrot.lane.b32.xlu0 %v6929_v8, %s6683_s16 }
  0xeb   :  { %6139 = vrot.lane.b32.xlu1 %v6138_v16, %s6681_s0 }
  0xed   :  { %6159 = vrot.lane.b32.xlu0 %v6933_v12, %s6683_s16 }
  0xef   :  { %6154 = vrot.lane.b32.xlu1 %v6939_v19, %s6683_s16 }
  0xf1   :  { %6169 = vrot.lane.b32.xlu0 %v6901_v37, %s6682_s1 }
  0xf3   :  { %6164 = vrot.lane.b32.xlu1 %v6961_v39, %s6683_s16 }
  0xf5   :  { %6179 = vrot.lane.b32.xlu0 %v6905_v47, %s6682_s1 }
  0xf7   :  { %6174 = vrot.lane.b32.xlu1 %v6909_v49, %s6682_s1 }
  0xf9   :  { %6189 = vrot.lane.b32.xlu0 %v6967_v40, %s6682_s1 }
  0xfb   :  { %6184 = vrot.lane.b32.xlu1 %v6913_v52, %s6682_s1 }
  0xfd   :  { %6199 = vrot.lane.b32.xlu0 %v6971_v41, %s6682_s1 }
  0xff   :  { %6194 = vrot.lane.b32.xlu1 %v6975_v43, %s6682_s1 }
 0x101   :  { %6204 = vrot.lane.b32.xlu0 %v6855_v3, %s6685_s17 }
 0x103   :  { %6209 = vrot.lane.b32.xlu1 %v6979_v44, %s6682_s1 }
 0x105   :  { %6219 = vrot.lane.b32.xlu0 %v6895_v23, %s6685_s17 }
 0x107   :  { %6214 = vrot.lane.b32.xlu1 %v6867_v20, %s6685_s17 }
 0x109   :  { %6229 = vrot.lane.b32.xlu0 %v6901_v37, %s6683_s16 }
 0x10b   :  { %6224 = vrot.lane.b32.xlu1 %v6897_v42, %s6685_s17 }
 0x10d   :  { %6239 = vrot.lane.b32.xlu0 %v6905_v47, %s6683_s16 }
 0x10f   :  { %6234 = vrot.lane.b32.xlu1 %v6909_v49, %s6683_s16 }
 0x111   :  { %6249 = vrot.lane.b32.xlu0 %v6967_v40, %s6683_s16 }
 0x113   :  { %6244 = vrot.lane.b32.xlu1 %v6913_v52, %s6683_s16 }
 0x115   :  { %6259 = vrot.lane.b32.xlu0 %v6971_v41, %s6683_s16 }
 0x117   :  { %6254 = vrot.lane.b32.xlu1 %v6975_v43, %s6683_s16  ;;  %v7104_v63 = vpop.permute.xlu0 %6009 }
 0x118   :  { %v8783_v36 = vunpack.i.h.bf16 %v7104_v63 }
 0x119   :  { %6264 = vrot.lane.b32.xlu0 %v6929_v8, %s6685_s17 }
 0x11b   :  { %6269 = vrot.lane.b32.xlu1 %v6979_v44, %s6683_s16  ;;  %v7112_v0 = vpop.permute.xlu0 %6019 }
 0x11c   :  { %v8776_v51 = vunpack.i.l.bf16 %v7112_v0 }
 0x11d   :  { %6279 = vrot.lane.b32.xlu0 %v6933_v12, %s6685_s17 }
 0x11f   :  { %6274 = vrot.lane.b32.xlu1 %v6939_v19, %s6685_s17 }
 0x121   :  { %6289 = vrot.lane.b32.xlu0 %v6901_v37, %s6685_s17 }
 0x123   :  { %6284 = vrot.lane.b32.xlu1 %v6961_v39, %s6685_s17 }
 0x125   :  { %6299 = vrot.lane.b32.xlu0 %v6905_v47, %s6685_s17 }
 0x127   :  { %6294 = vrot.lane.b32.xlu1 %v6909_v49, %s6685_s17 }
 0x129   :  { %v7116_v50 = vpop.permute.xlu1 %6014  ;;  %6309 = vrot.lane.b32.xlu0 %v6967_v40, %s6685_s17 }
 0x12b   :  { %6304 = vrot.lane.b32.xlu1 %v6913_v52, %s6685_s17  ;;  %v7122_v4 = vpop.permute.xlu0 %6034 }
 0x12d   :  { %v7124_v10 = vpop.permute.xlu1 %6024  ;;  %6319 = vrot.lane.b32.xlu0 %v6971_v41, %s6685_s17 }
 0x12f   :  { %6314 = vrot.lane.b32.xlu1 %v6975_v43, %s6685_s17  ;;  %v7130_v56 = vpop.permute.xlu0 %6044 }
 0x131   :  { %v7132_v59 = vpop.permute.xlu1 %6029  ;;  %6329 = vrot.lane.b32.xlu0 %v6901_v37, %s6686_s18 }
 0x133   :  { %6324 = vrot.lane.b32.xlu1 %v6979_v44, %s6685_s17  ;;  %v7138_v6 = vpop.permute.xlu0 %6054 }
 0x135   :  { %v7140_v7 = vpop.permute.xlu1 %6039  ;;  %6339 = vrot.lane.b32.xlu0 %v6905_v47, %s6686_s18 }
 0x137   :  { %6334 = vrot.lane.b32.xlu1 %v6909_v49, %s6686_s18  ;;  %v7146_v16 = vpop.permute.xlu0 %6064 }
 0x139   :  { %v7148_v61 = vpop.permute.xlu1 %6049  ;;  %6349 = vrot.lane.b32.xlu0 %v6967_v40, %s6686_s18 }
 0x13b   :  { %6344 = vrot.lane.b32.xlu1 %v6913_v52, %s6686_s18  ;;  %v7154_v60 = vpop.permute.xlu0 %6074 }
 0x13d   :  { %v7156_v57 = vpop.permute.xlu1 %6059  ;;  %6359 = vrot.lane.b32.xlu0 %v6971_v41, %s6686_s18 }
 0x13f   :  { %6354 = vrot.lane.b32.xlu1 %v6975_v43, %s6686_s18  ;;  %v7162_v55 = vpop.permute.xlu0 %6084 }
 0x141   :  { %v7164_v54 = vpop.permute.xlu1 %6069  ;;  %6364 = vrot.lane.b32.xlu0 %v6855_v3, %s6686_s18 }
 0x143   :  { %6369 = vrot.lane.b32.xlu1 %v6979_v44, %s6686_s18  ;;  %v7170_v53 = vpop.permute.xlu0 %6094 }
 0x145   :  { %v7172_v28 = vpop.permute.xlu1 %6079  ;;  %6379 = vrot.lane.b32.xlu0 %v6895_v23, %s6686_s18 }
 0x147   :  { %6374 = vrot.lane.b32.xlu1 %v6867_v20, %s6686_s18  ;;  %v7178_v45 = vpop.permute.xlu0 %6104 }
 0x148   :  { %v6107_v62 = vunpack.i.h.bf16 %v7178_v45  ;;  %v6106_v34 = vunpack.i.l.bf16 %v7178_v45 }
 0x149   :  { %v7180_v15 = vpop.permute.xlu1 %6089  ;;  %6389 = vrot.lane.b32.xlu0 %v6929_v8, %s6686_s18 }
 0x14b   :  { %6384 = vrot.lane.b32.xlu1 %v6897_v42, %s6686_s18  ;;  %v6115_v9 = vpop.permute.xlu0 %6114 }
 0x14c   :  { %v6116_v5 = vunpack.i.l.bf16 %v6115_v9  ;;  %v6117_v38 = vunpack.i.h.bf16 %v6115_v9  ;;  %v8777_v9 = vunpack.i.h.bf16 %v7112_v0 }
 0x14d   :  { %v7186_v46 = vpop.permute.xlu1 %6099  ;;  %6399 = vrot.lane.b32.xlu0 %v6933_v12, %s6686_s18 }
 0x14f   :  { %6394 = vrot.lane.b32.xlu1 %v6939_v19, %s6686_s18  ;;  %v7195_v11 = vpop.permute.xlu0 %6124 }
 0x150   :  { %v6126_v17 = vunpack.i.l.bf16 %v7195_v11  ;;  %v6127_v14 = vunpack.i.h.bf16 %v7195_v11 }
 0x151   :  { %v6110_v2 = vpop.permute.xlu1 %6109  ;;  %6409 = vrot.lane.b32.xlu0 %v6901_v37, %s6687_s19 }
 0x152   :  { %v6112_v58 = vunpack.i.h.bf16 %v6110_v2  ;;  %v6111_v1 = vunpack.i.l.bf16 %v6110_v2  ;;  %v8731_v2 = vunpack.i.l.bf16 %v7104_v63 }
 0x153   :  { %6404 = vrot.lane.b32.xlu1 %v6961_v39, %s6686_s18  ;;  %v7205_v48 = vpop.permute.xlu0 %6134 }
 0x154   :  { %v494_v27 = vsel %vm437_vm0, %v6107_v62, %v6112_v58  ;;  %v495_v24 = vsel %vm437_vm0, %v6111_v1, %v6116_v5 }
 0x155   :  { %v6120_v25 = vpop.permute.xlu1 %6119  ;;  %6419 = vrot.lane.b32.xlu0 %v6905_v47, %s6687_s19  ;;  %v5492_v29 = vpack.c.bf16 %v495_v24, %v494_v27  ;;  %v446_v24 = vsel %vm437_vm0, %v8731_v2, %v8776_v51  ;;  %v8778_v27 = vunpack.i.h.bf16 %v7104_v63  ;;  %v6136_v51 = vunpack.i.l.bf16 %v7205_v48 }
 0x156   :  { %v6122_v30 = vunpack.i.h.bf16 %v6120_v25  ;;  %v6121_v33 = vunpack.i.l.bf16 %v6120_v25 }
 0x157   :  { %6414 = vrot.lane.b32.xlu1 %v6909_v49, %s6687_s19  ;;  %v7219_v32 = vpop.permute.xlu0 %6144  ;;  %5493 = vmatprep.subr.bf16.mxu0 %v5492_v29  ;;  %v447_v25 = vsel %vm437_vm0, %v8778_v27, %v8777_v9  ;;  %v499_v29 = vsel %vm437_vm0, %v6126_v17, %v6111_v1  ;;  %v490_v1 = vsel %vm437_vm0, %v6112_v58, %v6117_v38 }
 0x158   :  { %v498_v22 = vsel %vm437_vm0, %v6122_v30, %v6107_v62  ;;  %v486_v21 = vsel %vm437_vm0, %v6117_v38, %v6122_v30  ;;  %v487_v9 = vsel %vm437_vm0, %v6121_v33, %v6126_v17  ;;  %v491_v11 = vsel %vm437_vm0, %v6116_v5, %v6121_v33 }
 0x159   :  { %v6130_v2 = vpop.permute.xlu1 %6129  ;;  %6429 = vrot.lane.b32.xlu0 %v6967_v40, %s6687_s19  ;;  %v5494_v26 = vpack.c.bf16 %v499_v29, %v498_v22  ;;  %v5500_v13 = vpack.c.bf16 %v487_v9, %v486_v21  ;;  %v8736_v30 = vunpack.i.l.bf16 %v7116_v50  ;;  %v5502_v17 = vpack.c.bf16 %v491_v11, %v490_v1 }
 0x15a   :  { %v6132_v62 = vunpack.i.h.bf16 %v6130_v2  ;;  %v6131_v27 = vunpack.i.l.bf16 %v6130_v2  ;;  %v7255_v29 = vpack.c.bf16 %v447_v25, %v446_v24  ;;  %v6017_v5 = vunpack.i.h.bf16 %v7116_v50 }
 0x15b   :  { %6424 = vrot.lane.b32.xlu1 %v6913_v52, %s6687_s19  ;;  %v7253_v22 = vpop.permute.xlu0 %6149  ;;  %5495 = vmatpush1.bf16.msra.mxu0 %v5494_v26  ;;  %v6147_v21 = vunpack.i.h.bf16 %v7219_v32  ;;  %v6032_v33 = vunpack.i.h.bf16 %v7132_v59  ;;  %v6031_v2 = vunpack.i.l.bf16 %v7132_v59  ;;  %v8779_v25 = vunpack.i.l.bf16 %v7124_v10 }
 0x15c   :  { %5501 = vmatprep.subr.bf16.mxu1 %v5500_v13  ;;  %v496_v38 = vsel %vm437_vm0, %v6127_v14, %v6132_v62  ;;  %v497_v58 = vsel %vm437_vm0, %v6131_v27, %v6136_v51  ;;  %v6137_v9 = vunpack.i.h.bf16 %v7205_v48  ;;  %v6146_v11 = vunpack.i.l.bf16 %v7219_v32 }
 0x15d   :  { %5503 = vmatpush1.bf16.msra.mxu1 %v5502_v17  ;;  %v6140_v26 = vpop.permute.xlu1 %6139  ;;  %6439 = vrot.lane.b32.xlu0 %v6971_v41, %s6687_s19  ;;  %v5496_v24 = vpack.c.bf16 %v497_v58, %v496_v38  ;;  %v448_v13 = vsel %vm437_vm0, %v8736_v30, %v8779_v25  ;;  %v6042_v59 = vunpack.i.h.bf16 %v7140_v7  ;;  %v6041_v17 = vunpack.i.l.bf16 %v7140_v7 }
 0x15e   :  { %v6142_v1 = vunpack.i.h.bf16 %v6140_v26  ;;  %v6141_v35 = vunpack.i.l.bf16 %v6140_v26  ;;  %v8781_v58 = vunpack.i.h.bf16 %v7124_v10  ;;  %v501_v26 = vsel %vm437_vm0, %v6146_v11, %v6131_v27 }
 0x15f   :  { %6434 = vrot.lane.b32.xlu1 %v6975_v43, %s6687_s19  ;;  %v7280_v38 = vpop.permute.xlu0 %6159  ;;  %5497 = vmatprep.subr.bf16.mxu0 %v5496_v24  ;;  %v439_v7 = vsel %vm437_vm0, %v6147_v21, %v6032_v33  ;;  %v451_v31 = vsel %vm437_vm0, %v6032_v33, %v8783_v36  ;;  %v8784_v36 = vunpack.i.h.bf16 %v7112_v0 }
 0x160   :  { %8780 = vst [vmem:[#allocation30_spill] sm:$0xff] %v7280_v38  ;;  %v449_v48 = vsel %vm437_vm0, %v6017_v5, %v8781_v58  ;;  %v500_v32 = vsel %vm437_vm0, %v6142_v1, %v6127_v14  ;;  %v488_v45 = vsel %vm437_vm0, %v6137_v9, %v6142_v1  ;;  %v489_v58 = vsel %vm437_vm0, %v6141_v35, %v6146_v11 }
 0x161   :  { %v7294_v25 = vpop.permute.xlu1 %6154  ;;  %6449 = vrot.lane.b32.xlu0 %v6855_v3, %s6687_s19  ;;  %v5498_v24 = vpack.c.bf16 %v501_v26, %v500_v32  ;;  %v492_v14 = vsel %vm437_vm0, %v6132_v62, %v6137_v9  ;;  %v493_v27 = vsel %vm437_vm0, %v6136_v51, %v6141_v35  ;;  %v8782_v1 = vunpack.i.l.bf16 %v7104_v63  ;;  %v7323_v63 = vld [vmem:[%s8690_s3] sm:$0xff] }
 0x162   :  { %v5504_v32 = vpack.c.bf16 %v489_v58, %v488_v45  ;;  %v5506_v26 = vpack.c.bf16 %v493_v27, %v492_v14  ;;  %v6037_v11 = vunpack.i.h.bf16 %v7122_v4  ;;  %v6036_v38 = vunpack.i.l.bf16 %v7122_v4 }
 0x163   :  { %v450_v30 = vsel %vm437_vm0, %v6031_v2, %v8782_v1  ;;  %6444 = vrot.lane.b32.xlu1 %v6979_v44, %s6687_s19  ;;  %v7316_v35 = vpop.permute.xlu0 %6169  ;;  %5499 = vmatpush1.bf16.msra.mxu0 %v5498_v24  ;;  %v438_v51 = vsel %vm437_vm0, %v6106_v34, %v6031_v2  ;;  %v443_v4 = vsel %vm437_vm0, %v8784_v36, %v6147_v21  ;;  %v8785_v21 = vunpack.i.l.bf16 %v7116_v50 }
 0x164   :  { %5505 = vmatprep.subr.bf16.mxu1 %v5504_v32  ;;  %5509 = vmatprep.subr.bf16.mxu0 %v7255_v29  ;;  %v5516_v62 = vpack.c.bf16 %v439_v7, %v438_v51  ;;  %v7330_v33 = vpack.c.bf16 %v449_v48, %v448_v13  ;;  %v5510_v2 = vpack.c.bf16 %v451_v31, %v450_v30  ;;  %v8786_v48 = vunpack.i.l.bf16 %v7112_v0 }
 0x165   :  { %5507 = vmatpush1.bf16.msra.mxu1 %v5506_v26  ;;  %v7332_v9 = vpop.permute.xlu1 %6164  ;;  %6459 = vrot.lane.b32.xlu0 %v6895_v23, %s6687_s19  ;;  %v440_v45 = vsel %vm437_vm0, %v6036_v38, %v6041_v17  ;;  %v441_v24 = vsel %vm437_vm0, %v6037_v11, %v6042_v59  ;;  %v452_v7 = vsel %vm437_vm0, %v6041_v17, %v8785_v21  ;;  %v8787_v30 = vunpack.i.l.bf16 %v7124_v10 }
 0x166   :  { %v453_v13 = vsel %vm437_vm0, %v6042_v59, %v6017_v5  ;;  %v442_v58 = vsel %vm437_vm0, %v8786_v48, %v6106_v34  ;;  %5517 = vmatprep.subr.bf16.mxu1 %v5516_v62  ;;  %5415 = vmatmul.mubr.msk.f32.vlgmr.msra.gmra.mrb[0].mxu0 %vm503_vm1, %v7323_v63  ;;  %v8788_v0 = vunpack.i.h.bf16 %v7124_v10  ;;  %v5520_v59 = vpack.c.bf16 %v441_v24, %v440_v45 }
 0x167   :  { %6454 = vrot.lane.b32.xlu1 %v6867_v20, %s6687_s19  ;;  %v7354_v31 = vpop.permute.xlu0 %6179  ;;  %5511 = vmatpush1.bf16.msra.mxu0 %v5510_v2  ;;  %v5518_v50 = vpack.c.bf16 %v443_v4, %v442_v58  ;;  %v444_v5 = vsel %vm437_vm0, %v8787_v30, %v6036_v38  ;;  %v8740_v17 = vunpack.i.h.bf16 %v7148_v61  ;;  %v8741_v14 = vunpack.i.l.bf16 %v7148_v61 }
 0x168   :  { %v445_v34 = vsel %vm437_vm0, %v8788_v0, %v6037_v11  ;;  %5416 = vmatmul.mubr.msk.f32.vlgmr.msra.gmra.mrb[0].mxu1 %vm503_vm1, %v7323_v63  ;;  %5513 = vmatprep.subr.bf16.mxu0 %v7330_v33  ;;  %v5514_v10 = vpack.c.bf16 %v453_v13, %v452_v7  ;;  %v8789_v32 = vmov 0.0   ;;  %v8742_v26 = vunpack.i.h.bf16 %v7130_v56 }
 0x169   :  { %5519 = vmatpush1.bf16.msra.mxu1 %v5518_v50  ;;  %v7369_v27 = vpop.permute.xlu1 %6174  ;;  %6469 = vrot.lane.b32.xlu0 %v6929_v8, %s6687_s19  ;;  %v8743_v11 = vunpack.i.l.bf16 %v7130_v56  ;;  %v5522_v36 = vpack.c.bf16 %v445_v34, %v444_v5  ;;  %v6172_v4 = vunpack.i.h.bf16 %v7316_v35  ;;  %v6171_v45 = vunpack.i.l.bf16 %v7316_v35 }
 0x16a   :  { %v6177_v38 = vunpack.i.h.bf16 %v7369_v27  ;;  %v6176_v1 = vunpack.i.l.bf16 %v7369_v27  ;;  %5521 = vmatprep.subr.bf16.mxu1 %v5520_v59  ;;  %713 = vmatprep.mubr.f32.mxu0 %v8789_v32  ;;  %v6062_v58 = vunpack.i.h.bf16 %v7156_v57  ;;  %v6061_v30 = vunpack.i.l.bf16 %v7156_v57  ;;  %v7522_v57 = vld [vmem:[%s8690_s3 + $0x8] sm:$0xff] }
 0x16b   :  { %6464 = vrot.lane.b32.xlu1 %v6897_v42, %s6687_s19  ;;  %v7381_v51 = vpop.permute.xlu0 %6189  ;;  %5515 = vmatpush1.bf16.msra.mxu0 %v5514_v10  ;;  %v1012_v21 = vsel %vm1003_vm2, %v8743_v11, %v8741_v14  ;;  %v6182_v5 = vunpack.i.h.bf16 %v7354_v31  ;;  %v6181_v0 = vunpack.i.l.bf16 %v7354_v31  ;;  %v6057_v34 = vunpack.i.h.bf16 %v7138_v6 }
 0x16c   :  { %5525 = vmatprep.subr.bf16.mxu0 %v7255_v29  ;;  %784 = vmatprep.mubr.f32.mxu1 %v8789_v32  ;;  %v1013_v29 = vsel %vm1003_vm2, %v8742_v26, %v8740_v17  ;;  %v1060_v13 = vsel %vm1003_vm2, %v6171_v45, %v6176_v1  ;;  %v1061_v48 = vsel %vm1003_vm2, %v6172_v4, %v6177_v38 }
 0x16d   :  { %5523 = vmatpush1.bf16.msra.mxu1 %v5522_v36  ;;  %v6185_v24 = vpop.permute.xlu1 %6184  ;;  %6479 = vrot.lane.b32.xlu0 %v6933_v12, %s6687_s19  ;;  %v7422_v17 = vpack.c.bf16 %v1013_v29, %v1012_v21  ;;  %v6192_v29 = vunpack.i.h.bf16 %v7381_v51 }
 0x16e   :  { %v6187_v35 = vunpack.i.h.bf16 %v6185_v24  ;;  %v6186_v7 = vunpack.i.l.bf16 %v6185_v24  ;;  %5533 = vmatprep.subr.bf16.mxu1 %v5516_v62  ;;  %5417 = vmatmul.mubr.msk.f32.vlgmr.msra.gmra.mrb[0].mxu0 %vm503_vm1, %v7323_v63  ;;  %v8744_v24 = vunpack.i.l.bf16 %v7138_v6 }
 0x16f   :  { %6474 = vrot.lane.b32.xlu1 %v6939_v19, %s6687_s19  ;;  %v7415_v62 = vpop.permute.xlu0 %6199  ;;  %5527 = vmatpush1.bf16.msra.mxu0 %v5510_v2  ;;  %v5540_v2 = vpack.c.bf16 %v1061_v48, %v1060_v13  ;;  %v6191_v13 = vunpack.i.l.bf16 %v7381_v51  ;;  %v1005_v51 = vsel %vm1003_vm2, %v6057_v34, %v6062_v58 }
 0x170   :  { %5418 = vmatmul.mubr.msk.f32.vlgmr.msra.gmra.mrb[0].mxu1 %vm503_vm1, %v7323_v63  ;;  %5529 = vmatprep.subr.bf16.mxu0 %v7330_v33  ;;  %v1052_v26 = vsel %vm1003_vm2, %v6181_v0, %v6186_v7  ;;  %v1053_v11 = vsel %vm1003_vm2, %v6182_v5, %v6187_v35  ;;  %v1064_v63 = vsel %vm1003_vm2, %v6186_v7, %v6171_v45  ;;  %v791_v45 = vld [vmem:[%s8691_s4] sm:$0xff] }
 0x171   :  { %5535 = vmatpush1.bf16.msra.mxu1 %v5518_v50  ;;  %v6195_v31 = vpop.permute.xlu1 %6194  ;;  %6489 = vrot.lane.b32.xlu0 %v6901_v37, %s6688_s22  ;;  %v1065_v33 = vsel %vm1003_vm2, %v6187_v35, %v6172_v4  ;;  %v1056_v4 = vsel %vm1003_vm2, %v6176_v1, %v6181_v0  ;;  %v1057_v35 = vsel %vm1003_vm2, %v6177_v38, %v6182_v5  ;;  %v6202_v38 = vunpack.i.h.bf16 %v7415_v62 }
 0x172   :  { %v6197_v21 = vunpack.i.h.bf16 %v6195_v31  ;;  %v6196_v50 = vunpack.i.l.bf16 %v6195_v31  ;;  %5537 = vmatprep.subr.bf16.mxu1 %v5520_v59  ;;  %859 = vmatprep.mubr.f32.mxu0 %v8789_v32  ;;  %v1004_v59 = vsel %vm1003_vm2, %v8744_v24, %v6061_v30  ;;  %v5548_v7 = vpack.c.bf16 %v1053_v11, %v1052_v26 }
 0x173   :  { %6484 = vrot.lane.b32.xlu1 %v6961_v39, %s6687_s19  ;;  %v7440_v48 = vpop.permute.xlu0 %6204  ;;  %5531 = vmatpush1.bf16.msra.mxu0 %v5514_v10  ;;  %v6066_v10 = vunpack.i.l.bf16 %v7146_v16  ;;  %v5542_v31 = vpack.c.bf16 %v1065_v33, %v1064_v63  ;;  %v6201_v24 = vunpack.i.l.bf16 %v7415_v62  ;;  %v6071_v0 = vunpack.i.l.bf16 %v7164_v54 }
 0x174   :  { %5541 = vmatprep.subr.bf16.mxu0 %v5540_v2  ;;  %930 = vmatprep.mubr.f32.mxu1 %v8789_v32  ;;  %v1062_v1 = vsel %vm1003_vm2, %v6191_v13, %v6196_v50  ;;  %v1063_v27 = vsel %vm1003_vm2, %v6192_v29, %v6197_v21  ;;  %v5550_v2 = vpack.c.bf16 %v1057_v35, %v1056_v4 }
 0x175   :  { %5539 = vmatpush1.bf16.msra.mxu1 %v5522_v36  ;;  %v6210_v14 = vpop.permute.xlu1 %6209  ;;  %6499 = vrot.lane.b32.xlu0 %v6905_v47, %s6688_s22  ;;  %v5544_v11 = vpack.c.bf16 %v1063_v27, %v1062_v1  ;;  %v6072_v36 = vunpack.i.h.bf16 %v7164_v54  ;;  %v1058_v63 = vsel %vm1003_vm2, %v6196_v50, %v6201_v24  ;;  %v1059_v62 = vsel %vm1003_vm2, %v6197_v21, %v6202_v38 }
 0x176   :  { %v6212_v5 = vunpack.i.h.bf16 %v6210_v14  ;;  %v6211_v26 = vunpack.i.l.bf16 %v6210_v14  ;;  %5549 = vmatprep.subr.bf16.mxu1 %v5548_v7  ;;  %5419 = vmatmul.mubr.msk.f32.vlgmr.msra.gmra.mrb[0].mxu0 %vm503_vm1, %v791_v45  ;;  %v6082_v14 = vunpack.i.h.bf16 %v7172_v28  ;;  %v6081_v50 = vunpack.i.l.bf16 %v7172_v28 }
 0x177   :  { %6494 = vrot.lane.b32.xlu1 %v6909_v49, %s6688_s22  ;;  %v7480_v33 = vpop.permute.xlu0 %6219  ;;  %5543 = vmatpush1.bf16.msra.mxu0 %v5542_v31  ;;  %v8791_v31 = vunpack.i.h.bf16 %v7130_v56  ;;  %v6076_v27 = vunpack.i.l.bf16 %v7154_v60 }
 0x178   :  { %v1066_v7 = vsel %vm1003_vm2, %v6211_v26, %v6191_v13  ;;  %v1067_v54 = vsel %vm1003_vm2, %v6212_v5, %v6192_v29  ;;  %5420 = vmatmul.mubr.msk.f32.vlgmr.msra.gmra.mrb[0].mxu1 %vm503_vm1, %v791_v45  ;;  %5545 = vmatprep.subr.bf16.mxu0 %v5544_v11  ;;  %v1054_v21 = vsel %vm1003_vm2, %v6201_v24, %v6211_v26  ;;  %v6077_v29 = vunpack.i.h.bf16 %v7154_v60 }
 0x179   :  { %v5546_v4 = vpack.c.bf16 %v1067_v54, %v1066_v7  ;;  %5551 = vmatpush1.bf16.msra.mxu1 %v5550_v2  ;;  %v7491_v35 = vpop.permute.xlu1 %6214  ;;  %6509 = vrot.lane.b32.xlu0 %v6967_v40, %s6688_s22  ;;  %v1055_v13 = vsel %vm1003_vm2, %v6202_v38, %v6212_v5  ;;  %v8790_v45 = vunpack.i.l.bf16 %v7130_v56  ;;  %v1017_v1 = vsel %vm1003_vm2, %v6062_v58, %v8791_v31 }
 0x17a   :  { %v5552_v24 = vpack.c.bf16 %v1055_v13, %v1054_v21  ;;  %1137 = vmatprep.mubr.f32.mxu0 %v8789_v32  ;;  %1208 = vmatprep.mubr.f32.mxu1 %v8789_v32  ;;  %v5554_v38 = vpack.c.bf16 %v1059_v62, %v1058_v63  ;;  %v1014_v56 = vsel %vm1003_vm2, %v6066_v10, %v6071_v0  ;;  %v8792_v58 = vunpack.i.h.bf16 %v7146_v16 }
 0x17b   :  { %v1016_v28 = vsel %vm1003_vm2, %v6061_v30, %v8790_v45  ;;  %6504 = vrot.lane.b32.xlu1 %v6913_v52, %s6688_s22  ;;  %v7517_v5 = vpop.permute.xlu0 %6229  ;;  %5547 = vmatpush1.bf16.msra.mxu0 %v5546_v4  ;;  %v8793_v30 = vunpack.i.l.bf16 %v7138_v6  ;;  %v8794_v26 = vunpack.i.l.bf16 %v7148_v61  ;;  %v8795_v2 = vunpack.i.h.bf16 %v7148_v61 }
 0x17c   :  { %v1015_v60 = vsel %vm1003_vm2, %v8792_v58, %v6072_v36  ;;  %5553 = vmatprep.subr.bf16.mxu1 %v5552_v24  ;;  %5557 = vmatprep.subr.bf16.mxu0 %v7422_v17  ;;  %v5564_v62 = vpack.c.bf16 %v1005_v51, %v1004_v59  ;;  %v5558_v54 = vpack.c.bf16 %v1017_v1, %v1016_v28  ;;  %v6091_v45 = vunpack.i.l.bf16 %v7180_v15 }
 0x17d   :  { %v1008_v11 = vsel %vm1003_vm2, %v8794_v26, %v8793_v30  ;;  %v1009_v63 = vsel %vm1003_vm2, %v8795_v2, %v6057_v34  ;;  %5555 = vmatpush1.bf16.msra.mxu1 %v5554_v38  ;;  %v7545_v7 = vpop.permute.xlu1 %6224  ;;  %6519 = vrot.lane.b32.xlu0 %v6971_v41, %s6688_s22  ;;  %v1006_v4 = vsel %vm1003_vm2, %v6076_v27, %v6081_v50  ;;  %v6086_v1 = vunpack.i.l.bf16 %v7162_v55 }
 0x17e   :  { %v1007_v61 = vsel %vm1003_vm2, %v6077_v29, %v6082_v14  ;;  %v1018_v6 = vsel %vm1003_vm2, %v6081_v50, %v6066_v10  ;;  %v8796_v34 = vmov %v8792_v58  ;;  %5565 = vmatprep.subr.bf16.mxu1 %v5564_v62  ;;  %5422 = vmatmul.mubr.msk.f32.vlgmr.msra.gmra.mrb[2].mxu0 %vm503_vm1, %v7522_v57  ;;  %v5560_v51 = vpack.c.bf16 %v1015_v60, %v1014_v56 }
 0x17f   :  { %v1019_v59 = vsel %vm1003_vm2, %v6082_v14, %v8796_v34  ;;  %6514 = vrot.lane.b32.xlu1 %v6975_v43, %s6688_s22  ;;  %v7565_v21 = vpop.permute.xlu0 %6239  ;;  %5559 = vmatpush1.bf16.msra.mxu0 %v5558_v54  ;;  %v5566_v13 = vpack.c.bf16 %v1009_v63, %v1008_v11  ;;  %v1010_v10 = vsel %vm1003_vm2, %v6071_v0, %v6076_v27  ;;  %v8745_v50 = vunpack.i.h.bf16 %v7180_v15 }
 0x180   :  { %v1011_v16 = vsel %vm1003_vm2, %v6072_v36, %v6077_v29  ;;  %5423 = vmatmul.mubr.msk.f32.vlgmr.msra.gmra.mrb[2].mxu1 %vm503_vm1, %v7522_v57  ;;  %5561 = vmatprep.subr.bf16.mxu0 %v5560_v51  ;;  %v5568_v14 = vpack.c.bf16 %v1007_v61, %v1006_v4  ;;  %v5562_v31 = vpack.c.bf16 %v1019_v59, %v1018_v6  ;;  %v6087_v29 = vunpack.i.h.bf16 %v7162_v55 }
 0x181   :  { %5567 = vmatpush1.bf16.msra.mxu1 %v5566_v13  ;;  %v7575_v28 = vpop.permute.xlu1 %6234  ;;  %6529 = vrot.lane.b32.xlu0 %v6855_v3, %s6688_s22  ;;  %v5570_v27 = vpack.c.bf16 %v1011_v16, %v1010_v10  ;;  %v6101_v38 = vunpack.i.l.bf16 %v7186_v46  ;;  %v6232_v56 = vunpack.i.h.bf16 %v7517_v5  ;;  %v6231_v58 = vunpack.i.l.bf16 %v7517_v5 }
 0x182   :  { %v6237_v36 = vunpack.i.h.bf16 %v7575_v28  ;;  %v6236_v0 = vunpack.i.l.bf16 %v7575_v28  ;;  %5569 = vmatprep.subr.bf16.mxu1 %v5568_v14  ;;  %1279 = vmatprep.mubr.f32.mxu0 %v8789_v32  ;;  %v6096_v60 = vunpack.i.l.bf16 %v7170_v53  ;;  %v1580_v26 = vsel %vm1571_vm3, %v6086_v1, %v6091_v45 }
 0x183   :  { %6524 = vrot.lane.b32.xlu1 %v6979_v44, %s6688_s22  ;;  %v7587_v24 = vpop.permute.xlu0 %6249  ;;  %5563 = vmatpush1.bf16.msra.mxu0 %v5562_v31  ;;  %v6102_v4 = vunpack.i.h.bf16 %v7186_v46  ;;  %v6242_v61 = vunpack.i.h.bf16 %v7565_v21  ;;  %v6241_v6 = vunpack.i.l.bf16 %v7565_v21  ;;  %v8746_v21 = vunpack.i.h.bf16 %v7170_v53  ;;  %v7725_v46 = vld [vmem:[%s8690_s3 + $0x10] sm:$0xff] }
 0x184   :  { %5573 = vmatprep.subr.bf16.mxu0 %v7422_v17  ;;  %1350 = vmatprep.mubr.f32.mxu1 %v8789_v32  ;;  %v1581_v17 = vsel %vm1571_vm3, %v6087_v29, %v8745_v50  ;;  %v1628_v2 = vsel %vm1571_vm3, %v6231_v58, %v6236_v0  ;;  %v1629_v63 = vsel %vm1571_vm3, %v6232_v56, %v6237_v36 }
 0x185   :  { %5571 = vmatpush1.bf16.msra.mxu1 %v5570_v27  ;;  %v6245_v30 = vpop.permute.xlu1 %6244  ;;  %6539 = vrot.lane.b32.xlu0 %v6895_v23, %s6688_s22  ;;  %v7632_v59 = vsel %vm1571_vm3, %v6096_v60, %v6101_v38 }
 0x186   :  { %v6247_v5 = vunpack.i.h.bf16 %v6245_v30  ;;  %v6246_v11 = vunpack.i.l.bf16 %v6245_v30  ;;  %5581 = vmatprep.subr.bf16.mxu1 %v5564_v62  ;;  %5424 = vmatmul.mubr.msk.f32.vlgmr.msra.gmra.mrb[2].mxu0 %vm503_vm1, %v7522_v57  ;;  %v7624_v62 = vpack.c.bf16 %v1581_v17, %v1580_v26  ;;  %v6252_v17 = vunpack.i.h.bf16 %v7587_v24 }
 0x187   :  { %6534 = vrot.lane.b32.xlu1 %v6867_v20, %s6688_s22  ;;  %v7620_v34 = vpop.permute.xlu0 %6259  ;;  %5575 = vmatpush1.bf16.msra.mxu0 %v5558_v54  ;;  %v5588_v54 = vpack.c.bf16 %v1629_v63, %v1628_v2  ;;  %v6251_v2 = vunpack.i.l.bf16 %v7587_v24  ;;  %v1624_v24 = vsel %vm1571_vm3, %v6236_v0, %v6241_v6 }
 0x188   :  { %5425 = vmatmul.mubr.msk.f32.vlgmr.msra.gmra.mrb[2].mxu1 %vm503_vm1, %v7522_v57  ;;  %5577 = vmatprep.subr.bf16.mxu0 %v5560_v51  ;;  %v1620_v57 = vsel %vm1571_vm3, %v6241_v6, %v6246_v11  ;;  %v1621_v51 = vsel %vm1571_vm3, %v6242_v61, %v6247_v5  ;;  %v1632_v16 = vsel %vm1571_vm3, %v6246_v11, %v6231_v58  ;;  %v6151_v58 = vunpack.i.l.bf16 %v7253_v22 }
 0x189   :  { %5583 = vmatpush1.bf16.msra.mxu1 %v5566_v13  ;;  %v6255_v10 = vpop.permute.xlu1 %6254  ;;  %6549 = vrot.lane.b32.xlu0 %v6929_v8, %s6688_s22  ;;  %v1633_v28 = vsel %vm1571_vm3, %v6247_v5, %v6232_v56  ;;  %v6152_v13 = vunpack.i.h.bf16 %v7253_v22  ;;  %v5426_v56 = vld [vmem:[%s8691_s4 + $0x8] sm:$0xff]  ;;  %v1625_v5 = vsel %vm1571_vm3, %v6237_v36, %v6242_v61  ;;  %v6262_v36 = vunpack.i.h.bf16 %v7620_v34 }
 0x18a   :  { %v6257_v30 = vunpack.i.h.bf16 %v6255_v10  ;;  %v6256_v26 = vunpack.i.l.bf16 %v6255_v10  ;;  %5585 = vmatprep.subr.bf16.mxu1 %v5568_v14  ;;  %1426 = vmatprep.mubr.f32.mxu0 %v8789_v32  ;;  %v1573_v14 = vsel %vm1571_vm3, %v8746_v21, %v6102_v4  ;;  %v5590_v11 = vpack.c.bf16 %v1633_v28, %v1632_v16 }
 0x18b   :  { %6544 = vrot.lane.b32.xlu1 %v6897_v42, %s6688_s22  ;;  %v7651_v63 = vpop.permute.xlu0 %6264  ;;  %5579 = vmatpush1.bf16.msra.mxu0 %v5562_v31  ;;  %v5596_v31 = vpack.c.bf16 %v1621_v51, %v1620_v57  ;;  %v6261_v10 = vunpack.i.l.bf16 %v7620_v34  ;;  %v6156_v57 = vunpack.i.l.bf16 %v7294_v25  ;;  %v5598_v51 = vpack.c.bf16 %v1625_v5, %v1624_v24 }
 0x18c   :  { %5589 = vmatprep.subr.bf16.mxu0 %v5588_v54  ;;  %1497 = vmatprep.mubr.f32.mxu1 %v8789_v32  ;;  %v1630_v21 = vsel %vm1571_vm3, %v6251_v2, %v6256_v26  ;;  %v1631_v0 = vsel %vm1571_vm3, %v6252_v17, %v6257_v30  ;;  %v1627_v34 = vsel %vm1571_vm3, %v6257_v30, %v6262_v36 }
 0x18d   :  { %5587 = vmatpush1.bf16.msra.mxu1 %v5570_v27  ;;  %v6270_v50 = vpop.permute.xlu1 %6269  ;;  %6559 = vrot.lane.b32.xlu0 %v6933_v12, %s6688_s22  ;;  %v5592_v54 = vpack.c.bf16 %v1631_v0, %v1630_v21  ;;  %v6157_v27 = vunpack.i.h.bf16 %v7294_v25  ;;  %v1626_v16 = vsel %vm1571_vm3, %v6256_v26, %v6261_v10  ;;  %v6166_v26 = vunpack.i.l.bf16 %v7332_v9 }
 0x18e   :  { %v6272_v61 = vunpack.i.h.bf16 %v6270_v50  ;;  %v6271_v6 = vunpack.i.l.bf16 %v6270_v50  ;;  %5597 = vmatprep.subr.bf16.mxu1 %v5596_v31  ;;  %5427 = vmatmul.mubr.msk.f32.vlgmr.msra.gmra.mrb[2].mxu0 %vm503_vm1, %v5426_v56  ;;  %v6167_v50 = vunpack.i.h.bf16 %v7332_v9  ;;  %v1584_v9 = vsel %vm1571_vm3, %v6101_v38, %v6086_v1 }
 0x18f   :  { %6554 = vrot.lane.b32.xlu1 %v6939_v19, %s6688_s22  ;;  %v7683_v28 = vpop.permute.xlu0 %6279  ;;  %5591 = vmatpush1.bf16.msra.mxu0 %v5590_v11  ;;  %v1582_v55 = vsel %vm1571_vm3, %v6151_v58, %v6156_v57  ;;  %v1576_v38 = vsel %vm1571_vm3, %v6091_v45, %v6096_v60  ;;  %v8799_v0 = vunpack.i.h.bf16 %v7180_v15  ;;  %v1586_v45 = vsel %vm1571_vm3, %v6166_v26, %v6151_v58 }
 0x190   :  { %v1634_v21 = vsel %vm1571_vm3, %v6271_v6, %v6251_v2  ;;  %v1635_v25 = vsel %vm1571_vm3, %v6272_v61, %v6252_v17  ;;  %5428 = vmatmul.mubr.msk.f32.vlgmr.msra.gmra.mrb[2].mxu1 %vm503_vm1, %v5426_v56  ;;  %5593 = vmatprep.subr.bf16.mxu0 %v5592_v54  ;;  %v1622_v30 = vsel %vm1571_vm3, %v6261_v10, %v6271_v6  ;;  %v8797_v17 = vld [vmem:[#allocation30_spill] sm:$0xff] }
 0x191   :  { %v5594_v24 = vpack.c.bf16 %v1635_v25, %v1634_v21  ;;  %5599 = vmatpush1.bf16.msra.mxu1 %v5598_v51  ;;  %v7694_v5 = vpop.permute.xlu1 %6274  ;;  %6569 = vrot.lane.b32.xlu0 %v6901_v37, %s6689_s29  ;;  %v1623_v2 = vsel %vm1571_vm3, %v6262_v36, %v6272_v61  ;;  %v1585_v37 = vsel %vm1571_vm3, %v6102_v4, %v6087_v29  ;;  %v6162_v56 = vunpack.i.h.bf16 %v8797_v17 }
 0x192   :  { %v5600_v31 = vpack.c.bf16 %v1623_v2, %v1622_v30  ;;  %1705 = vmatprep.mubr.f32.mxu0 %v8789_v32  ;;  %1776 = vmatprep.mubr.f32.mxu1 %v8789_v32  ;;  %v6161_v11 = vunpack.i.l.bf16 %v8797_v17  ;;  %v5602_v10 = vpack.c.bf16 %v1627_v34, %v1626_v16  ;;  %v1583_v29 = vsel %vm1571_vm3, %v6152_v13, %v6157_v27 }
 0x193   :  { %6564 = vrot.lane.b32.xlu1 %v6961_v39, %s6688_s22  ;;  %v7720_v1 = vpop.permute.xlu0 %6289  ;;  %5595 = vmatpush1.bf16.msra.mxu0 %v5594_v24  ;;  %v8798_v4 = vunpack.i.h.bf16 %v7170_v53  ;;  %v5612_v61 = vpack.c.bf16 %v1573_v14, %v7632_v59  ;;  %v5606_v54 = vpack.c.bf16 %v1585_v37, %v1584_v9  ;;  %v1575_v15 = vsel %vm1571_vm3, %v6162_v56, %v6167_v50 }
 0x194   :  { %5601 = vmatprep.subr.bf16.mxu1 %v5600_v31  ;;  %5605 = vmatprep.subr.bf16.mxu0 %v7624_v62  ;;  %v1574_v53 = vsel %vm1571_vm3, %v6161_v11, %v6166_v26  ;;  %v1587_v60 = vsel %vm1571_vm3, %v6167_v50, %v6152_v13  ;;  %v1578_v58 = vsel %vm1571_vm3, %v6156_v57, %v6161_v11  ;;  %v6217_v16 = vunpack.i.h.bf16 %v7491_v35 }
 0x195   :  { %v1577_v36 = vsel %vm1571_vm3, %v8799_v0, %v8798_v4  ;;  %5603 = vmatpush1.bf16.msra.mxu1 %v5602_v10  ;;  %v7749_v6 = vpop.permute.xlu1 %6284  ;;  %6579 = vrot.lane.b32.xlu0 %v6905_v47, %s6689_s29  ;;  %v5608_v47 = vpack.c.bf16 %v1583_v29, %v1582_v55  ;;  %v1579_v22 = vsel %vm1571_vm3, %v6157_v27, %v6162_v56  ;;  %v6207_v34 = vunpack.i.h.bf16 %v7440_v48 }
 0x196   :  { %5613 = vmatprep.subr.bf16.mxu1 %v5612_v61  ;;  %5431 = vmatmul.mubr.msk.f32.vlgmr.msra.gmra.mrb[4].mxu0 %vm503_vm1, %v7725_v46  ;;  %v5614_v14 = vpack.c.bf16 %v1577_v36, %v1576_v38  ;;  %v5616_v13 = vpack.c.bf16 %v1575_v15, %v1574_v53  ;;  %v5610_v51 = vpack.c.bf16 %v1587_v60, %v1586_v45  ;;  %v6206_v21 = vunpack.i.l.bf16 %v7440_v48  ;;  %v5439_v48 = vld [vmem:[%s8690_s3 + $0x18] sm:$0xff] }
 0x197   :  { %6574 = vrot.lane.b32.xlu1 %v6909_v49, %s6689_s29  ;;  %v7769_v59 = vpop.permute.xlu0 %6299  ;;  %5607 = vmatpush1.bf16.msra.mxu0 %v5606_v54  ;;  %v6216_v49 = vunpack.i.l.bf16 %v7491_v35  ;;  %v6226_v26 = vunpack.i.l.bf16 %v7545_v7  ;;  %v6292_v24 = vunpack.i.h.bf16 %v7720_v1  ;;  %v6291_v30 = vunpack.i.l.bf16 %v7720_v1 }
 0x198   :  { %5432 = vmatmul.mubr.msk.f32.vlgmr.msra.gmra.mrb[4].mxu1 %vm503_vm1, %v7725_v46  ;;  %5609 = vmatprep.subr.bf16.mxu0 %v5608_v47  ;;  %v6221_v2 = vunpack.i.l.bf16 %v7480_v33  ;;  %v6227_v31 = vunpack.i.h.bf16 %v7545_v7  ;;  %v6302_v11 = vunpack.i.h.bf16 %v7769_v59  ;;  %v6301_v10 = vunpack.i.l.bf16 %v7769_v59 }
 0x199   :  { %5615 = vmatpush1.bf16.msra.mxu1 %v5614_v14  ;;  %v7779_v50 = vpop.permute.xlu1 %6294  ;;  %6589 = vrot.lane.b32.xlu0 %v6967_v40, %s6689_s29  ;;  %v5618_v40 = vpack.c.bf16 %v1579_v22, %v1578_v58  ;;  %v6222_v38 = vunpack.i.h.bf16 %v7480_v33 }
 0x19a   :  { %v6297_v27 = vunpack.i.h.bf16 %v7779_v50  ;;  %v6296_v57 = vunpack.i.l.bf16 %v7779_v50  ;;  %5617 = vmatprep.subr.bf16.mxu1 %v5616_v13  ;;  %1847 = vmatprep.mubr.f32.mxu0 %v8789_v32  ;;  %v7836_v29 = vsel %vm2139_vm4, %v6221_v2, %v6226_v26 }
 0x19b   :  { %6584 = vrot.lane.b32.xlu1 %v6913_v52, %s6689_s29  ;;  %v7791_v25 = vpop.permute.xlu0 %6309  ;;  %5611 = vmatpush1.bf16.msra.mxu0 %v5610_v51  ;;  %v2148_v52 = vsel %vm2139_vm4, %v6206_v21, %v6216_v49  ;;  %v2141_v59 = vsel %vm2139_vm4, %v6222_v38, %v6227_v31 }
 0x19c   :  { %5621 = vmatprep.subr.bf16.mxu0 %v7624_v62  ;;  %1918 = vmatprep.mubr.f32.mxu1 %v8789_v32  ;;  %v2149_v62 = vsel %vm2139_vm4, %v6207_v34, %v6217_v16  ;;  %v2197_v56 = vsel %vm2139_vm4, %v6292_v24, %v6297_v27  ;;  %v6312_v15 = vunpack.i.h.bf16 %v7791_v25  ;;  %v6311_v45 = vunpack.i.l.bf16 %v7791_v25 }
 0x19d   :  { %5619 = vmatpush1.bf16.msra.mxu1 %v5618_v40  ;;  %v6305_v9 = vpop.permute.xlu1 %6304  ;;  %6599 = vrot.lane.b32.xlu0 %v6971_v41, %s6689_s29  ;;  %v2196_v41 = vsel %vm2139_vm4, %v6291_v30, %v6296_v57  ;;  %v7828_v55 = vpack.c.bf16 %v2149_v62, %v2148_v52  ;;  %v2192_v58 = vsel %vm2139_vm4, %v6296_v57, %v6301_v10  ;;  %v6276_v52 = vunpack.i.l.bf16 %v7694_v5 }
 0x19e   :  { %v6307_v37 = vunpack.i.h.bf16 %v6305_v9  ;;  %v6306_v17 = vunpack.i.l.bf16 %v6305_v9  ;;  %5629 = vmatprep.subr.bf16.mxu1 %v5612_v61  ;;  %5433 = vmatmul.mubr.msk.f32.vlgmr.msra.gmra.mrb[4].mxu0 %vm503_vm1, %v7725_v46  ;;  %v5636_v4 = vpack.c.bf16 %v2197_v56, %v2196_v41 }
 0x19f   :  { %6594 = vrot.lane.b32.xlu1 %v6975_v43, %s6689_s29  ;;  %v7824_v1 = vpop.permute.xlu0 %6319  ;;  %5623 = vmatpush1.bf16.msra.mxu0 %v5606_v54 }
 0x1a0   :  { %5434 = vmatmul.mubr.msk.f32.vlgmr.msra.gmra.mrb[4].mxu1 %vm503_vm1, %v7725_v46  ;;  %5625 = vmatprep.subr.bf16.mxu0 %v5608_v47  ;;  %v2188_v46 = vsel %vm2139_vm4, %v6301_v10, %v6306_v17  ;;  %v2189_v0 = vsel %vm2139_vm4, %v6302_v11, %v6307_v37  ;;  %v2200_v36 = vsel %vm2139_vm4, %v6306_v17, %v6291_v30  ;;  %v5435_v47 = vld [vmem:[%s8691_s4 + $0x10] sm:$0xff]  ;;  %v6287_v17 = vunpack.i.h.bf16 %v7749_v6 }
 0x1a1   :  { %5631 = vmatpush1.bf16.msra.mxu1 %v5614_v14  ;;  %v6315_v43 = vpop.permute.xlu1 %6314  ;;  %6609 = vrot.lane.b32.xlu0 %v6855_v3, %s6689_s29  ;;  %v2201_v61 = vsel %vm2139_vm4, %v6307_v37, %v6292_v24  ;;  %v6267_v3 = vunpack.i.h.bf16 %v7651_v63  ;;  %v6266_v14 = vunpack.i.l.bf16 %v7651_v63  ;;  %v5644_v22 = vpack.c.bf16 %v2189_v0, %v2188_v46 }
 0x1a2   :  { %v6317_v54 = vunpack.i.h.bf16 %v6315_v43  ;;  %v6316_v53 = vunpack.i.l.bf16 %v6315_v43  ;;  %5633 = vmatprep.subr.bf16.mxu1 %v5616_v13  ;;  %1994 = vmatprep.mubr.f32.mxu0 %v8789_v32  ;;  %v5638_v13 = vpack.c.bf16 %v2201_v61, %v2200_v36  ;;  %v6281_v0 = vunpack.i.l.bf16 %v7683_v28 }
 0x1a3   :  { %6604 = vrot.lane.b32.xlu1 %v6979_v44, %s6689_s29  ;;  %v7855_v60 = vpop.permute.xlu0 %6329  ;;  %5627 = vmatpush1.bf16.msra.mxu0 %v5610_v51  ;;  %v2193_v44 = vsel %vm2139_vm4, %v6297_v27, %v6302_v11  ;;  %v6321_v51 = vunpack.i.l.bf16 %v7824_v1  ;;  %v6322_v27 = vunpack.i.h.bf16 %v7824_v1  ;;  %v6286_v11 = vunpack.i.l.bf16 %v7749_v6 }
 0x1a4   :  { %5637 = vmatprep.subr.bf16.mxu0 %v5636_v4  ;;  %2065 = vmatprep.mubr.f32.mxu1 %v8789_v32  ;;  %v2198_v25 = vsel %vm2139_vm4, %v6311_v45, %v6316_v53  ;;  %v2199_v57 = vsel %vm2139_vm4, %v6312_v15, %v6317_v54  ;;  %v5646_v62 = vpack.c.bf16 %v2193_v44, %v2192_v58  ;;  %v6282_v4 = vunpack.i.h.bf16 %v7683_v28  ;;  %v8801_v58 = vld [vmem:[#allocation16_spill] sm:$0xff] }
 0x1a5   :  { %5635 = vmatpush1.bf16.msra.mxu1 %v5618_v40  ;;  %v6325_v50 = vpop.permute.xlu1 %6324  ;;  %6619 = vrot.lane.b32.xlu0 %v6895_v23, %s6689_s29  ;;  %v5640_v9 = vpack.c.bf16 %v2199_v57, %v2198_v25  ;;  %v6277_v40 = vunpack.i.h.bf16 %v7694_v5  ;;  %v2194_v23 = vsel %vm2139_vm4, %v6316_v53, %v6321_v51  ;;  %v2195_v41 = vsel %vm2139_vm4, %v6317_v54, %v6322_v27  ;;  %v8806_v57 = vld [vmem:[#allocation10_spill] sm:$0xff] }
 0x1a6   :  { %v6327_v24 = vunpack.i.h.bf16 %v6325_v50  ;;  %v6326_v30 = vunpack.i.l.bf16 %v6325_v50  ;;  %5645 = vmatprep.subr.bf16.mxu1 %v5644_v22  ;;  %5436 = vmatmul.mubr.msk.f32.vlgmr.msra.gmra.mrb[4].mxu0 %vm503_vm1, %v5435_v47  ;;  %v2152_v6 = vsel %vm2139_vm4, %v6226_v26, %v6206_v21  ;;  %v5650_v36 = vpack.c.bf16 %v2195_v41, %v2194_v23  ;;  %v8815_v41 = vld [vmem:[#allocation28_spill] sm:$0xff] }
 0x1a7   :  { %6614 = vrot.lane.b32.xlu1 %v6867_v20, %s6689_s29  ;;  %v7887_v37 = vpop.permute.xlu0 %6339  ;;  %5639 = vmatpush1.bf16.msra.mxu0 %v5638_v13  ;;  %v2150_v7 = vsel %vm2139_vm4, %v6266_v14, %v6276_v52  ;;  %v2151_v28 = vsel %vm2139_vm4, %v6267_v3, %v6277_v40  ;;  %v5660_v26 = vpack.c.bf16 %v2141_v59, %v7836_v29  ;;  %v5444_v59 = vld [vmem:[%s8691_s4 + $0x18] sm:$0xff]  ;;  %v8803_v13 = vld [vmem:[#allocation14_spill] sm:$0xff] }
 0x1a8   :  { %v2202_v56 = vsel %vm2139_vm4, %v6326_v30, %v6311_v45  ;;  %v2203_v5 = vsel %vm2139_vm4, %v6327_v24, %v6312_v15  ;;  %5437 = vmatmul.mubr.msk.f32.vlgmr.msra.gmra.mrb[4].mxu1 %vm503_vm1, %v5435_v47  ;;  %5641 = vmatprep.subr.bf16.mxu0 %v5640_v9  ;;  %v2190_v1 = vsel %vm2139_vm4, %v6321_v51, %v6326_v30  ;;  %v8804_v51 = vld [vmem:[#allocation17_spill] sm:$0xff]  ;;  %v8809_v30 = vld [vmem:[#allocation23_spill] sm:$0xff] }
 0x1a9   :  { %v5642_v20 = vpack.c.bf16 %v2203_v5, %v2202_v56  ;;  %5647 = vmatpush1.bf16.msra.mxu1 %v5646_v62  ;;  %v7898_v10 = vpop.permute.xlu1 %6334  ;;  %6629 = vrot.lane.b32.xlu0 %v6929_v8, %s6689_s29  ;;  %v2191_v43 = vsel %vm2139_vm4, %v6322_v27, %v6327_v24  ;;  %v2153_v8 = vsel %vm2139_vm4, %v6227_v31, %v6207_v34  ;;  %v8807_v27 = vld [vmem:[#allocation13_spill] sm:$0xff]  ;;  %v8810_v9 = vld [vmem:[#allocation27_spill] sm:$0xff] }
 0x1aa   :  { %v5648_v46 = vpack.c.bf16 %v2191_v43, %v2190_v1  ;;  %2273 = vmatprep.mubr.f32.mxu0 %v8789_v32  ;;  %2344 = vmatprep.mubr.f32.mxu1 %v8789_v32  ;;  %v2145_v34 = vsel %vm2139_vm4, %v6217_v16, %v6222_v38  ;;  %v5654_v31 = vpack.c.bf16 %v2153_v8, %v2152_v6  ;;  %v8813_v62 = vld [vmem:[#allocation15_spill] sm:$0xff]  ;;  %v8816_v56 = vld [vmem:[#allocation29_spill] sm:$0xff]  ;;  %v5448_v6 = vld [vmem:[%s8690_s3 + $0x20] sm:$0xff] }
 0x1ab   :  { %6624 = vrot.lane.b32.xlu1 %v6897_v42, %s6689_s29  ;;  %v7924_v21 = vpop.permute.xlu0 %6349  ;;  %5643 = vmatpush1.bf16.msra.mxu0 %v5642_v20  ;;  %v2144_v42 = vsel %vm2139_vm4, %v6216_v49, %v6221_v2  ;;  %v2142_v33 = vsel %vm2139_vm4, %v6281_v0, %v6286_v11  ;;  %v2143_v35 = vsel %vm2139_vm4, %v6282_v4, %v6287_v17  ;;  %v8818_v20 = vld [vmem:[#allocation22_spill] sm:$0xff]  ;;  %v8819_v1 = vld [vmem:[#allocation25_spill] sm:$0xff]  ;;  %v8821_v8 = vld [vmem:[#allocation7_spill] sm:$0xff] }
 0x1ac   :  { %5649 = vmatprep.subr.bf16.mxu1 %v5648_v46  ;;  %5653 = vmatprep.subr.bf16.mxu0 %v7828_v55  ;;  %v2154_v16 = vsel %vm2139_vm4, %v6286_v11, %v6266_v14  ;;  %v2155_v49 = vsel %vm2139_vm4, %v6287_v17, %v6267_v3  ;;  %v5662_v2 = vpack.c.bf16 %v2145_v34, %v2144_v42  ;;  %v8800_v14 = vld [vmem:[#allocation11_spill] sm:$0xff]  ;;  %v8823_v46 = vld [vmem:[#allocation26_spill] sm:$0xff]  ;;  %v6337_v34 = vunpack.i.h.bf16 %v7898_v10 }
 0x1ad   :  { %5651 = vmatpush1.bf16.msra.mxu1 %v5650_v36  ;;  %v7951_v61 = vpop.permute.xlu1 %6344  ;;  %6639 = vrot.lane.b32.xlu0 %v6933_v12, %s6689_s29  ;;  %v5656_v12 = vpack.c.bf16 %v2151_v28, %v2150_v7  ;;  %v2146_v38 = vsel %vm2139_vm4, %v6276_v52, %v6281_v0  ;;  %v2147_v63 = vsel %vm2139_vm4, %v6277_v40, %v6282_v4  ;;  %v8812_v52 = vld [vmem:[#allocation12_spill] sm:$0xff]  ;;  %v8826_v28 = vld [vmem:[#allocation6_spill] sm:$0xff]  ;;  %v8827_v42 = vld [vmem:[#allocation19_spill] sm:$0xff] }
 0x1ae   :  { %5661 = vmatprep.subr.bf16.mxu1 %v5660_v26  ;;  %5440 = vmatmul.mubr.msk.f32.vlgmr.msra.gmra.mrb[6].mxu0 %vm503_vm1, %v5439_v48  ;;  %v5664_v54 = vpack.c.bf16 %v2143_v35, %v2142_v33  ;;  %v5658_v53 = vpack.c.bf16 %v2155_v49, %v2154_v16  ;;  %v8802_v44 = vpack.c.bf16 %v8800_v14, %v8801_v58  ;;  %v8822_v4 = vld [vmem:[#allocation24_spill] sm:$0xff]  ;;  %v6346_v35 = vunpack.i.l.bf16 %v7951_v61  ;;  %v8829_v16 = vld [vmem:[#allocation21_spill] sm:$0xff] }
 0x1af   :  { %6634 = vrot.lane.b32.xlu1 %v6939_v19, %s6689_s29  ;;  %v7970_v29 = vpop.permute.xlu0 %6359  ;;  %5655 = vmatpush1.bf16.msra.mxu0 %v5654_v31  ;;  %v5666_v19 = vpack.c.bf16 %v2147_v63, %v2146_v38  ;;  %v8805_v50 = vpack.c.bf16 %v8803_v13, %v8804_v51  ;;  %v8808_v24 = vpack.c.bf16 %v8806_v57, %v8807_v27  ;;  %v6332_v49 = vunpack.i.h.bf16 %v7855_v60 }
 0x1b0   :  { %5441 = vmatmul.mubr.msk.f32.vlgmr.msra.gmra.mrb[6].mxu1 %vm503_vm1, %v5439_v48  ;;  %5657 = vmatprep.subr.bf16.mxu0 %v5656_v12  ;;  %v8811_v40 = vpack.c.bf16 %v8809_v30, %v8810_v9  ;;  %v8814_v23 = vpack.c.bf16 %v8812_v52, %v8813_v62  ;;  %v8817_v5 = vpack.c.bf16 %v8815_v41, %v8816_v56  ;;  %v6342_v63 = vunpack.i.h.bf16 %v7887_v37 }
 0x1b1   :  { %5663 = vmatpush1.bf16.msra.mxu1 %v5662_v2  ;;  %v7977_v3 = vpop.permute.xlu1 %6354  ;;  %2415 = vmatprep.mubr.f32.mxu0 %v8789_v32  ;;  %v8820_v43 = vpack.c.bf16 %v8818_v20, %v8819_v1  ;;  %v8824_v0 = vpack.c.bf16 %v8822_v4, %v8823_v46  ;;  %v6351_v30 = vunpack.i.l.bf16 %v7924_v21  ;;  %v6361_v9 = vunpack.i.l.bf16 %v7970_v29  ;;  %v5453_v20 = vld [vmem:[%s8691_s4 + $0x20] sm:$0xff] }
 0x1b2   :  { %5665 = vmatprep.subr.bf16.mxu1 %v5664_v54  ;;  %2486 = vmatprep.mubr.f32.mxu1 %v8789_v32  ;;  %v6356_v14 = vunpack.i.l.bf16 %v7977_v3  ;;  %v3205_v58 = vsel %vm3151_vm5, %v6337_v34, %v6342_v63  ;;  %v6357_v13 = vunpack.i.h.bf16 %v7977_v3  ;;  %v6362_v3 = vunpack.i.h.bf16 %v7970_v29 }
 0x1b3   :  { %6644 = vrot.lane.b32.xlu1 %v6961_v39, %s6689_s29  ;;  %v7983_v15 = vpop.permute.xlu0 %6364  ;;  %5659 = vmatpush1.bf16.msra.mxu0 %v5658_v53 }
 0x1b4   :  { %5669 = vmatprep.subr.bf16.mxu0 %v7828_v55  ;;  %v3206_v1 = vsel %vm3151_vm5, %v6356_v14, %v6361_v9 }
 0x1b5   :  { %5667 = vmatpush1.bf16.msra.mxu1 %v5666_v19  ;;  %v7986_v45 = vpop.permute.xlu1 %6369 }
 0x1b6   :  { %5677 = vmatprep.subr.bf16.mxu1 %v5660_v26  ;;  %5442 = vmatmul.mubr.msk.f32.vlgmr.msra.gmra.mrb[6].mxu0 %vm503_vm1, %v5439_v48  ;;  %v6336_v26 = vunpack.i.l.bf16 %v7898_v10  ;;  %v8830_v10 = vld [vmem:[#allocation18_spill] sm:$0xff]  ;;  %v6371_v52 = vunpack.i.l.bf16 %v7986_v45 }
 0x1b7   :  { %v7989_v47 = vpop.permute.xlu0 %6379  ;;  %5671 = vmatpush1.bf16.msra.mxu0 %v5654_v31  ;;  %2562 = vmatprep.mubr.f32.mxu0 %v8789_v32  ;;  %v8828_v31 = vld [vmem:[#allocation8_spill] sm:$0xff] }
 0x1b8   :  { %5443 = vmatmul.mubr.msk.f32.vlgmr.msra.gmra.mrb[6].mxu1 %vm503_vm1, %v5439_v48  ;;  %5673 = vmatprep.subr.bf16.mxu0 %v5656_v12  ;;  %v8825_v48 = vld [vmem:[#allocation9_spill] sm:$0xff]  ;;  %v6331_v12 = vunpack.i.l.bf16 %v7855_v60  ;;  %v6381_v4 = vunpack.i.l.bf16 %v7989_v47 }
 0x1b9   :  { %5679 = vmatpush1.bf16.msra.mxu1 %v5662_v2  ;;  %v7993_v39 = vpop.permute.xlu1 %6374  ;;  %2633 = vmatprep.mubr.f32.mxu1 %v8789_v32  ;;  %v6347_v2 = vunpack.i.h.bf16 %v7951_v61 }
 0x1ba   :  { %5681 = vmatprep.subr.bf16.mxu1 %v5664_v54  ;;  %v6341_v54 = vunpack.i.l.bf16 %v7887_v37  ;;  %v6377_v56 = vunpack.i.h.bf16 %v7993_v39 }
 0x1bb   :  { %v7996_v55 = vpop.permute.xlu0 %6389  ;;  %5675 = vmatpush1.bf16.msra.mxu0 %v5658_v53  ;;  %v3208_v53 = vsel %vm3151_vm5, %v6331_v12, %v6336_v26  ;;  %v3213_v57 = vsel %vm3151_vm5, %v6347_v2, %v6332_v49 }
 0x1bc   :  { %5685 = vmatprep.subr.bf16.mxu0 %v8802_v44  ;;  %v8078_v61 = vsel %vm3151_vm5, %v6341_v54, %v6346_v35  ;;  %v3204_v37 = vsel %vm3151_vm5, %v6336_v26, %v6341_v54  ;;  %v8089_v44 = vsel %vm3151_vm5, %v6342_v63, %v6347_v2 }
 0x1bd   :  { %5683 = vmatpush1.bf16.msra.mxu1 %v5666_v19  ;;  %v8004_v22 = vpop.permute.xlu1 %6384  ;;  %v3209_v19 = vsel %vm3151_vm5, %v6332_v49, %v6337_v34  ;;  %v5732_v41 = vpack.c.bf16 %v3205_v58, %v3204_v37  ;;  %v6366_v34 = vunpack.i.l.bf16 %v7983_v15  ;;  %v6392_v37 = vunpack.i.h.bf16 %v7996_v55 }
 0x1be   :  { %5693 = vmatprep.subr.bf16.mxu1 %v8805_v50  ;;  %5445 = vmatmul.mubr.msk.f32.vlgmr.msra.gmra.mrb[6].mxu0 %vm503_vm1, %v5444_v59  ;;  %v3212_v50 = vsel %vm3151_vm5, %v6346_v35, %v6331_v12  ;;  %v5734_v27 = vpack.c.bf16 %v3209_v19, %v3208_v53  ;;  %v6387_v46 = vunpack.i.h.bf16 %v8004_v22  ;;  %v6391_v58 = vunpack.i.l.bf16 %v7996_v55 }
 0x1bf   :  { %v8010_v25 = vpop.permute.xlu0 %6399  ;;  %5687 = vmatpush1.bf16.msra.mxu0 %v8808_v24  ;;  %2744 = vmatprep.mubr.f32.mxu0 %v8789_v32  ;;  %v6352_v24 = vunpack.i.h.bf16 %v7924_v21  ;;  %v5742_v21 = vpack.c.bf16 %v8089_v44, %v8078_v61  ;;  %v5740_v29 = vpack.c.bf16 %v3213_v57, %v3212_v50 }
 0x1c0   :  { %5446 = vmatmul.mubr.msk.f32.vlgmr.msra.gmra.mrb[6].mxu1 %vm503_vm1, %v5444_v59  ;;  %5689 = vmatprep.subr.bf16.mxu0 %v8811_v40  ;;  %v8831_v59 = vld [vmem:[#allocation20_spill] sm:$0xff]  ;;  %v6372_v40 = vunpack.i.h.bf16 %v7986_v45  ;;  %v6376_v45 = vunpack.i.l.bf16 %v7993_v39  ;;  %v6382_v39 = vunpack.i.h.bf16 %v7989_v47  ;;  %v3202_v47 = vsel %vm3151_vm5, %v6361_v9, %v6371_v52 }
 0x1c1   :  { %5695 = vmatpush1.bf16.msra.mxu1 %v8814_v23  ;;  %v8023_v17 = vpop.permute.xlu1 %6394  ;;  %2815 = vmatprep.mubr.f32.mxu1 %v8789_v32  ;;  %v3210_v23 = vsel %vm3151_vm5, %v6351_v30, %v6356_v14  ;;  %v6402_v2 = vunpack.i.h.bf16 %v8010_v25 }
 0x1c2   :  { %5697 = vmatprep.subr.bf16.mxu1 %v8817_v5  ;;  %v3203_v26 = vsel %vm3151_vm5, %v6362_v3, %v6372_v40  ;;  %v6396_v35 = vunpack.i.l.bf16 %v8023_v17  ;;  %v3157_v49 = vsel %vm3151_vm5, %v6377_v56, %v6382_v39  ;;  %v3160_v61 = vsel %vm3151_vm5, %v6366_v34, %v6376_v45 }
 0x1c3   :  { %v8029_v11 = vpop.permute.xlu0 %6409  ;;  %5691 = vmatpush1.bf16.msra.mxu0 %v8820_v43  ;;  %v3207_v43 = vsel %vm3151_vm5, %v6357_v13, %v6362_v3  ;;  %v3153_v55 = vsel %vm3151_vm5, %v6382_v39, %v6387_v46 }
 0x1c4   :  { %5701 = vmatprep.subr.bf16.mxu0 %v8821_v8 }
 0x1c5   :  { %5699 = vmatpush1.bf16.msra.mxu1 %v8824_v0  ;;  %v8041_v36 = vpop.permute.xlu1 %6404  ;;  %v6386_v0 = vunpack.i.l.bf16 %v8004_v22  ;;  %v5736_v22 = vpack.c.bf16 %v3207_v43, %v3206_v1 }
 0x1c6   :  { %5709 = vmatprep.subr.bf16.mxu1 %v8825_v48  ;;  %5449 = vmatmul.mubr.msk.f32.vlgmr.msra.gmra.mrb[8].mxu0 %vm503_vm1, %v5448_v6  ;;  %v6407_v63 = vunpack.i.h.bf16 %v8041_v36  ;;  %v6406_v54 = vunpack.i.l.bf16 %v8041_v36 }
 0x1c7   :  { %v8045_v7 = vpop.permute.xlu0 %6419  ;;  %5703 = vmatpush1.bf16.msra.mxu0 %v8826_v28  ;;  %2886 = vmatprep.mubr.f32.mxu0 %v8789_v32  ;;  %v3164_v19 = vsel %vm3151_vm5, %v6386_v0, %v6366_v34 }
 0x1c8   :  { %5450 = vmatmul.mubr.msk.f32.vlgmr.msra.gmra.mrb[8].mxu1 %vm503_vm1, %v5448_v6  ;;  %5705 = vmatprep.subr.bf16.mxu0 %v8827_v42  ;;  %v3166_v9 = vsel %vm3151_vm5, %v6406_v54, %v6391_v58  ;;  %v6421_v34 = vunpack.i.l.bf16 %v8045_v7 }
 0x1c9   :  { %5711 = vmatpush1.bf16.msra.mxu1 %v8828_v31  ;;  %v8054_v33 = vpop.permute.xlu1 %6414  ;;  %2957 = vmatprep.mubr.f32.mxu1 %v8789_v32 }
 0x1ca   :  { %5713 = vmatprep.subr.bf16.mxu1 %v8829_v16  ;;  %v6417_v43 = vunpack.i.h.bf16 %v8054_v33 }
 0x1cb   :  { %v8063_v38 = vpop.permute.xlu0 %6429  ;;  %5707 = vmatpush1.bf16.msra.mxu0 %v8830_v10 }
 0x1cc   :  { %5717 = vmatprep.subr.bf16.mxu0 %v8821_v8  ;;  %v6367_v8 = vunpack.i.h.bf16 %v7983_v15  ;;  %v3156_v15 = vsel %vm3151_vm5, %v6376_v45, %v6381_v4  ;;  %v3155_v45 = vsel %vm3151_vm5, %v6402_v2, %v6407_v63 }
 0x1cd   :  { %5715 = vmatpush1.bf16.msra.mxu1 %v8831_v59  ;;  %v8074_v60 = vpop.permute.xlu1 %6424  ;;  %v5748_v36 = vpack.c.bf16 %v3157_v49, %v3156_v15 }
 0x1ce   :  { %5725 = vmatprep.subr.bf16.mxu1 %v8825_v48  ;;  %5451 = vmatmul.mubr.msk.f32.vlgmr.msra.gmra.mrb[8].mxu0 %vm503_vm1, %v5448_v6  ;;  %v3161_v14 = vsel %vm3151_vm5, %v6367_v8, %v6377_v56  ;;  %v6426_v39 = vunpack.i.l.bf16 %v8074_v60 }
 0x1cf   :  { %v8092_v51 = vpop.permute.xlu0 %6439  ;;  %5719 = vmatpush1.bf16.msra.mxu0 %v8826_v28  ;;  %3033 = vmatprep.mubr.f32.mxu0 %v8789_v32  ;;  %v3214_v28 = vsel %vm3151_vm5, %v6371_v52, %v6351_v30  ;;  %v5750_v30 = vpack.c.bf16 %v3161_v14, %v3160_v61  ;;  %v3162_v52 = vsel %vm3151_vm5, %v6391_v58, %v6396_v35 }
 0x1d0   :  { %5452 = vmatmul.mubr.msk.f32.vlgmr.msra.gmra.mrb[8].mxu1 %vm503_vm1, %v5448_v6  ;;  %5721 = vmatprep.subr.bf16.mxu0 %v8827_v42  ;;  %v3211_v6 = vsel %vm3151_vm5, %v6352_v24, %v6357_v13  ;;  %v3215_v42 = vsel %vm3151_vm5, %v6372_v40, %v6352_v24  ;;  %v8181_v13 = vld [vmem:[%s8690_s3 + $0x28] sm:$0xff]  ;;  %v3167_v40 = vsel %vm3151_vm5, %v6407_v63, %v6392_v37  ;;  %v6431_v63 = vunpack.i.l.bf16 %v8063_v38 }
 0x1d1   :  { %5727 = vmatpush1.bf16.msra.mxu1 %v8828_v31  ;;  %v8109_v62 = vpop.permute.xlu1 %6434  ;;  %3104 = vmatprep.mubr.f32.mxu1 %v8789_v32  ;;  %v6397_v31 = vunpack.i.h.bf16 %v8023_v17  ;;  %v5738_v12 = vpack.c.bf16 %v3211_v6, %v3210_v23  ;;  %v5744_v17 = vpack.c.bf16 %v3215_v42, %v3214_v28  ;;  %v6416_v6 = vunpack.i.l.bf16 %v8054_v33 }
 0x1d2   :  { %5729 = vmatprep.subr.bf16.mxu1 %v8829_v16  ;;  %v6427_v28 = vunpack.i.h.bf16 %v8074_v60  ;;  %v6422_v33 = vunpack.i.h.bf16 %v8045_v7  ;;  %v6436_v60 = vunpack.i.l.bf16 %v8109_v62  ;;  %v6437_v15 = vunpack.i.h.bf16 %v8109_v62 }
 0x1d3   :  { %v8119_v5 = vpop.permute.xlu0 %6449  ;;  %5723 = vmatpush1.bf16.msra.mxu0 %v8830_v10  ;;  %v6401_v10 = vunpack.i.l.bf16 %v8010_v25  ;;  %v5746_v25 = vpack.c.bf16 %v3203_v26, %v3202_v47  ;;  %v3159_v57 = vsel %vm3151_vm5, %v6397_v31, %v6402_v2  ;;  %v3772_v7 = vsel %vm3719_vm6, %v6416_v6, %v6421_v34 }
 0x1d4   :  { %5733 = vmatprep.subr.bf16.mxu0 %v5732_v41  ;;  %v6442_v62 = vunpack.i.h.bf16 %v8092_v51  ;;  %v3778_v61 = vsel %vm3719_vm6, %v6431_v63, %v6436_v60 }
 0x1d5   :  { %5731 = vmatpush1.bf16.msra.mxu1 %v8831_v59  ;;  %v8137_v48 = vpop.permute.xlu1 %6444  ;;  %v3165_v59 = vsel %vm3151_vm5, %v6387_v46, %v6367_v8  ;;  %v3158_v50 = vsel %vm3151_vm5, %v6396_v35, %v6401_v10  ;;  %v3154_v56 = vsel %vm3151_vm5, %v6401_v10, %v6406_v54  ;;  %v6411_v46 = vunpack.i.l.bf16 %v8029_v11 }
 0x1d6   :  { %5741 = vmatprep.subr.bf16.mxu1 %v5740_v29  ;;  %5454 = vmatmul.mubr.msk.f32.vlgmr.msra.gmra.mrb[8].mxu0 %vm503_vm1, %v5453_v20  ;;  %v5756_v24 = vpack.c.bf16 %v3165_v59, %v3164_v19  ;;  %v5752_v23 = vpack.c.bf16 %v3159_v57, %v3158_v50  ;;  %v8245_v35 = vsel %vm3719_vm6, %v6422_v33, %v6427_v28  ;;  %v6441_v54 = vunpack.i.l.bf16 %v8092_v51 }
 0x1d7   :  { %v8151_v16 = vpop.permute.xlu0 %6459  ;;  %5735 = vmatpush1.bf16.msra.mxu0 %v5734_v27  ;;  %3285 = vmatprep.mubr.f32.mxu0 %v8789_v32  ;;  %v3152_v27 = vsel %vm3151_vm5, %v6381_v4, %v6386_v0  ;;  %v6412_v4 = vunpack.i.h.bf16 %v8029_v11  ;;  %v5762_v0 = vpack.c.bf16 %v3155_v45, %v3154_v56  ;;  %v3776_v47 = vsel %vm3719_vm6, %v6411_v46, %v6416_v6 }
 0x1d8   :  { %5455 = vmatmul.mubr.msk.f32.vlgmr.msra.gmra.mrb[8].mxu1 %vm503_vm1, %v5453_v20  ;;  %5737 = vmatprep.subr.bf16.mxu0 %v5736_v22  ;;  %v5758_v41 = vpack.c.bf16 %v3153_v55, %v3152_v27  ;;  %v5760_v20 = vpack.c.bf16 %v3167_v40, %v3166_v9  ;;  %v8234_v11 = vsel %vm3719_vm6, %v6421_v34, %v6426_v39  ;;  %v6447_v19 = vunpack.i.h.bf16 %v8137_v48 }
 0x1d9   :  { %5743 = vmatpush1.bf16.msra.mxu1 %v5742_v21  ;;  %v8163_v53 = vpop.permute.xlu1 %6454  ;;  %3356 = vmatprep.mubr.f32.mxu1 %v8789_v32  ;;  %v3163_v21 = vsel %vm3151_vm5, %v6392_v37, %v6397_v31  ;;  %v3777_v26 = vsel %vm3719_vm6, %v6412_v4, %v6417_v43  ;;  %v3773_v31 = vsel %vm3719_vm6, %v6417_v43, %v6422_v33  ;;  %v6446_v59 = vunpack.i.l.bf16 %v8137_v48  ;;  %v5461_v48 = vld [vmem:[%s8691_s4 + $0x28] sm:$0xff] }
 0x1da   :  { %5745 = vmatprep.subr.bf16.mxu1 %v5744_v17  ;;  %v5754_v1 = vpack.c.bf16 %v3163_v21, %v3162_v52  ;;  %v3781_v2 = vsel %vm3719_vm6, %v6427_v28, %v6412_v4  ;;  %v5782_v10 = vpack.c.bf16 %v3777_v26, %v3776_v47  ;;  %v6432_v17 = vunpack.i.h.bf16 %v8063_v38 }
 0x1db   :  { %v8176_v44 = vpop.permute.xlu0 %6469  ;;  %5739 = vmatpush1.bf16.msra.mxu0 %v5738_v12  ;;  %v3780_v12 = vsel %vm3719_vm6, %v6426_v39, %v6411_v46  ;;  %v5790_v38 = vpack.c.bf16 %v8245_v35, %v8234_v11  ;;  %v5780_v14 = vpack.c.bf16 %v3773_v31, %v3772_v7  ;;  %v6457_v51 = vunpack.i.h.bf16 %v8163_v53 }
 0x1dc   :  { %5749 = vmatprep.subr.bf16.mxu0 %v5748_v36  ;;  %v6456_v37 = vunpack.i.l.bf16 %v8163_v53  ;;  %v3775_v50 = vsel %vm3719_vm6, %v6437_v15, %v6442_v62  ;;  %v3779_v57 = vsel %vm3719_vm6, %v6432_v17, %v6437_v15  ;;  %v6452_v27 = vunpack.i.h.bf16 %v8119_v5 }
 0x1dd   :  { %5747 = vmatpush1.bf16.msra.mxu1 %v5746_v25  ;;  %v8191_v3 = vpop.permute.xlu1 %6464  ;;  %v6462_v53 = vunpack.i.h.bf16 %v8151_v16  ;;  %v6461_v55 = vunpack.i.l.bf16 %v8151_v16  ;;  %v3782_v40 = vsel %vm3719_vm6, %v6446_v59, %v6431_v63  ;;  %v3783_v52 = vsel %vm3719_vm6, %v6447_v19, %v6432_v17 }
 0x1de   :  { %5757 = vmatprep.subr.bf16.mxu1 %v5756_v24  ;;  %5457 = vmatmul.mubr.msk.f32.vlgmr.msra.gmra.mrb[10].mxu0 %vm503_vm1, %v8181_v13  ;;  %v6451_v21 = vunpack.i.l.bf16 %v8119_v5  ;;  %v3771_v16 = vsel %vm3719_vm6, %v6442_v62, %v6447_v19  ;;  %v3729_v34 = vsel %vm3719_vm6, %v6452_v27, %v6457_v51  ;;  %v6472_v26 = vunpack.i.h.bf16 %v8176_v44 }
 0x1df   :  { %v8203_v29 = vpop.permute.xlu0 %6479  ;;  %5751 = vmatpush1.bf16.msra.mxu0 %v5750_v30  ;;  %3427 = vmatprep.mubr.f32.mxu0 %v8789_v32  ;;  %v3724_v5 = vsel %vm3719_vm6, %v6456_v37, %v6461_v55 }
 0x1e0   :  { %5458 = vmatmul.mubr.msk.f32.vlgmr.msra.gmra.mrb[10].mxu1 %vm503_vm1, %v8181_v13  ;;  %5753 = vmatprep.subr.bf16.mxu0 %v5752_v23  ;;  %v6482_v43 = vunpack.i.h.bf16 %v8203_v29  ;;  %v6481_v6 = vunpack.i.l.bf16 %v8203_v29  ;;  %v3728_v33 = vsel %vm3719_vm6, %v6451_v21, %v6456_v37 }
 0x1e1   :  { %5759 = vmatpush1.bf16.msra.mxu1 %v5758_v41  ;;  %v8214_v8 = vpop.permute.xlu1 %6474  ;;  %3498 = vmatprep.mubr.f32.mxu1 %v8789_v32 }
 0x1e2   :  { %5761 = vmatprep.subr.bf16.mxu1 %v5760_v20  ;;  %v6476_v56 = vunpack.i.l.bf16 %v8214_v8 }
 0x1e3   :  { %v8222_v42 = vpop.permute.xlu0 %6489  ;;  %5755 = vmatpush1.bf16.msra.mxu0 %v5754_v1 }
 0x1e4   :  { %5765 = vmatprep.subr.bf16.mxu0 %v5748_v36  ;;  %v5788_v36 = vpack.c.bf16 %v3781_v2, %v3780_v12  ;;  %v3726_v7 = vsel %vm3719_vm6, %v6476_v56, %v6481_v6  ;;  %v5798_v12 = vpack.c.bf16 %v3729_v34, %v3728_v33  ;;  %v5470_v34 = vld [vmem:[%s8691_s4 + $0x30] sm:$0xff] }
 0x1e5   :  { %5763 = vmatpush1.bf16.msra.mxu1 %v5762_v0  ;;  %v8230_v22 = vpop.permute.xlu1 %6484 }
 0x1e6   :  { %5773 = vmatprep.subr.bf16.mxu1 %v5756_v24  ;;  %5459 = vmatmul.mubr.msk.f32.vlgmr.msra.gmra.mrb[10].mxu0 %vm503_vm1, %v8181_v13  ;;  %v6467_v24 = vunpack.i.h.bf16 %v8191_v3  ;;  %v6487_v39 = vunpack.i.h.bf16 %v8230_v22  ;;  %v6486_v4 = vunpack.i.l.bf16 %v8230_v22  ;;  %v6471_v22 = vunpack.i.l.bf16 %v8176_v44 }
 0x1e7   :  { %v8248_v49 = vpop.permute.xlu0 %6499  ;;  %5767 = vmatpush1.bf16.msra.mxu0 %v5750_v30  ;;  %3574 = vmatprep.mubr.f32.mxu0 %v8789_v32  ;;  %v6466_v30 = vunpack.i.l.bf16 %v8191_v3 }
 0x1e8   :  { %5460 = vmatmul.mubr.msk.f32.vlgmr.msra.gmra.mrb[10].mxu1 %vm503_vm1, %v8181_v13  ;;  %5769 = vmatprep.subr.bf16.mxu0 %v5752_v23  ;;  %v3774_v13 = vsel %vm3719_vm6, %v6436_v60, %v6441_v54  ;;  %v3770_v23 = vsel %vm3719_vm6, %v6441_v54, %v6446_v59  ;;  %v3733_v28 = vsel %vm3719_vm6, %v6467_v24, %v6452_v27  ;;  %v8332_v60 = vld [vmem:[%s8690_s3 + $0x30] sm:$0xff] }
 0x1e9   :  { %5775 = vmatpush1.bf16.msra.mxu1 %v5758_v41  ;;  %v8263_v25 = vpop.permute.xlu1 %6494  ;;  %3645 = vmatprep.mubr.f32.mxu1 %v8789_v32  ;;  %v5784_v3 = vpack.c.bf16 %v3775_v50, %v3774_v13  ;;  %v6477_v41 = vunpack.i.h.bf16 %v8214_v8  ;;  %v5792_v8 = vpack.c.bf16 %v3783_v52, %v3782_v40  ;;  %v5794_v29 = vpack.c.bf16 %v3771_v16, %v3770_v23 }
 0x1ea   :  { %5777 = vmatprep.subr.bf16.mxu1 %v5760_v20  ;;  %v3725_v20 = vsel %vm3719_vm6, %v6457_v51, %v6462_v53  ;;  %v3720_v35 = vsel %vm3719_vm6, %v6461_v55, %v6466_v30  ;;  %v3721_v44 = vsel %vm3719_vm6, %v6462_v53, %v6467_v24  ;;  %v3735_v17 = vsel %vm3719_vm6, %v6487_v39, %v6472_v26 }
 0x1eb   :  { %v8272_v58 = vpop.permute.xlu0 %6509  ;;  %5771 = vmatpush1.bf16.msra.mxu0 %v5754_v1  ;;  %v5786_v1 = vpack.c.bf16 %v3779_v57, %v3778_v61  ;;  %v5796_v47 = vpack.c.bf16 %v3725_v20, %v3724_v5  ;;  %v3727_v31 = vsel %vm3719_vm6, %v6477_v41, %v6482_v43  ;;  %v3730_v63 = vsel %vm3719_vm6, %v6471_v22, %v6476_v56 }
 0x1ec   :  { %5781 = vmatprep.subr.bf16.mxu0 %v5780_v14  ;;  %v3731_v62 = vsel %vm3719_vm6, %v6472_v26, %v6477_v41  ;;  %v5800_v54 = vpack.c.bf16 %v3727_v31, %v3726_v7  ;;  %v5806_v19 = vpack.c.bf16 %v3721_v44, %v3720_v35  ;;  %v3723_v61 = vsel %vm3719_vm6, %v6482_v43, %v6487_v39 }
 0x1ed   :  { %5779 = vmatpush1.bf16.msra.mxu1 %v5762_v0  ;;  %v8288_v9 = vpop.permute.xlu1 %6504  ;;  %v3732_v0 = vsel %vm3719_vm6, %v6466_v30, %v6451_v21  ;;  %v6497_v51 = vunpack.i.h.bf16 %v8263_v25  ;;  %v6496_v37 = vunpack.i.l.bf16 %v8263_v25  ;;  %v6492_v50 = vunpack.i.h.bf16 %v8222_v42 }
 0x1ee   :  { %5789 = vmatprep.subr.bf16.mxu1 %v5788_v36  ;;  %5462 = vmatmul.mubr.msk.f32.vlgmr.msra.gmra.mrb[10].mxu0 %vm503_vm1, %v5461_v48  ;;  %v5804_v15 = vpack.c.bf16 %v3733_v28, %v3732_v0  ;;  %v5802_v36 = vpack.c.bf16 %v3731_v62, %v3730_v63  ;;  %v6506_v13 = vunpack.i.l.bf16 %v8288_v9  ;;  %v6491_v57 = vunpack.i.l.bf16 %v8222_v42 }
 0x1ef   :  { %v8302_v45 = vpop.permute.xlu0 %6519  ;;  %5783 = vmatpush1.bf16.msra.mxu0 %v5782_v10  ;;  %3853 = vmatprep.mubr.f32.mxu0 %v8789_v32  ;;  %v3734_v10 = vsel %vm3719_vm6, %v6486_v4, %v6471_v22  ;;  %v6507_v53 = vunpack.i.h.bf16 %v8288_v9  ;;  %v6502_v25 = vunpack.i.h.bf16 %v8248_v49  ;;  %v6501_v24 = vunpack.i.l.bf16 %v8248_v49 }
 0x1f0   :  { %5463 = vmatmul.mubr.msk.f32.vlgmr.msra.gmra.mrb[10].mxu1 %vm503_vm1, %v5461_v48  ;;  %5785 = vmatprep.subr.bf16.mxu0 %v5784_v3  ;;  %v5808_v14 = vpack.c.bf16 %v3735_v17, %v3734_v10  ;;  %v4344_v30 = vsel %vm4287_vm7, %v6491_v57, %v6496_v37  ;;  %v4345_v40 = vsel %vm4287_vm7, %v6492_v50, %v6497_v51  ;;  %v6512_v20 = vunpack.i.h.bf16 %v8272_v58 }
 0x1f1   :  { %5791 = vmatpush1.bf16.msra.mxu1 %v5790_v38  ;;  %v8314_v46 = vpop.permute.xlu1 %6514  ;;  %3924 = vmatprep.mubr.f32.mxu1 %v8789_v32  ;;  %v3722_v38 = vsel %vm3719_vm6, %v6481_v6, %v6486_v4  ;;  %v8385_v42 = vsel %vm4287_vm7, %v6501_v24, %v6506_v13  ;;  %v4340_v49 = vsel %vm4287_vm7, %v6496_v37, %v6501_v24  ;;  %v6522_v43 = vunpack.i.h.bf16 %v8302_v45 }
 0x1f2   :  { %5793 = vmatprep.subr.bf16.mxu1 %v5792_v8  ;;  %v5810_v27 = vpack.c.bf16 %v3723_v61, %v3722_v38  ;;  %v6516_v9 = vunpack.i.l.bf16 %v8314_v46  ;;  %v4341_v21 = vsel %vm4287_vm7, %v6497_v51, %v6502_v25  ;;  %v8396_v23 = vsel %vm4287_vm7, %v6502_v25, %v6507_v53 }
 0x1f3   :  { %v8327_v11 = vpop.permute.xlu0 %6529  ;;  %5787 = vmatpush1.bf16.msra.mxu0 %v5786_v1  ;;  %v6517_v16 = vunpack.i.h.bf16 %v8314_v46  ;;  %v4348_v41 = vsel %vm4287_vm7, %v6506_v13, %v6491_v57  ;;  %v4349_v56 = vsel %vm4287_vm7, %v6507_v53, %v6492_v50  ;;  %v5830_v5 = vpack.c.bf16 %v4345_v40, %v4344_v30 }
 0x1f4   :  { %5797 = vmatprep.subr.bf16.mxu0 %v5796_v47  ;;  %v6511_v1 = vunpack.i.l.bf16 %v8272_v58  ;;  %v6521_v6 = vunpack.i.l.bf16 %v8302_v45  ;;  %v5838_v58 = vpack.c.bf16 %v8396_v23, %v8385_v42  ;;  %v5828_v0 = vpack.c.bf16 %v4341_v21, %v4340_v49  ;;  %v5474_v42 = vld [vmem:[%s8690_s3 + $0x38] sm:$0xff] }
 0x1f5   :  { %5795 = vmatpush1.bf16.msra.mxu1 %v5794_v29  ;;  %v8342_v2 = vpop.permute.xlu1 %6524  ;;  %v5836_v28 = vpack.c.bf16 %v4349_v56, %v4348_v41  ;;  %v4343_v26 = vsel %vm4287_vm7, %v6517_v16, %v6522_v43  ;;  %v4347_v22 = vsel %vm4287_vm7, %v6512_v20, %v6517_v16  ;;  %v6531_v10 = vunpack.i.l.bf16 %v8327_v11 }
 0x1f6   :  { %5805 = vmatprep.subr.bf16.mxu1 %v5804_v15  ;;  %5466 = vmatmul.mubr.msk.f32.vlgmr.msra.gmra.mrb[12].mxu0 %vm503_vm1, %v8332_v60  ;;  %v6527_v8 = vunpack.i.h.bf16 %v8342_v2  ;;  %v6526_v39 = vunpack.i.l.bf16 %v8342_v2  ;;  %v4346_v46 = vsel %vm4287_vm7, %v6511_v1, %v6516_v9 }
 0x1f7   :  { %v8354_v59 = vpop.permute.xlu0 %6539  ;;  %5799 = vmatpush1.bf16.msra.mxu0 %v5798_v12  ;;  %3995 = vmatprep.mubr.f32.mxu0 %v8789_v32  ;;  %v5834_v61 = vpack.c.bf16 %v4347_v22, %v4346_v46 }
 0x1f8   :  { %5467 = vmatmul.mubr.msk.f32.vlgmr.msra.gmra.mrb[12].mxu1 %vm503_vm1, %v8332_v60  ;;  %5801 = vmatprep.subr.bf16.mxu0 %v5800_v54  ;;  %v6542_v7 = vunpack.i.h.bf16 %v8354_v59  ;;  %v6541_v31 = vunpack.i.l.bf16 %v8354_v59  ;;  %v4351_v2 = vsel %vm4287_vm7, %v6527_v8, %v6512_v20  ;;  %v4338_v17 = vsel %vm4287_vm7, %v6521_v6, %v6526_v39 }
 0x1f9   :  { %5807 = vmatpush1.bf16.msra.mxu1 %v5806_v19  ;;  %v8365_v48 = vpop.permute.xlu1 %6534  ;;  %4066 = vmatprep.mubr.f32.mxu1 %v8789_v32  ;;  %v4339_v63 = vsel %vm4287_vm7, %v6522_v43, %v6527_v8 }
 0x1fa   :  { %5809 = vmatprep.subr.bf16.mxu1 %v5808_v14  ;;  %v6537_v45 = vunpack.i.h.bf16 %v8365_v48  ;;  %v6536_v29 = vunpack.i.l.bf16 %v8365_v48 }
 0x1fb   :  { %v8373_v55 = vpop.permute.xlu0 %6549  ;;  %5803 = vmatpush1.bf16.msra.mxu0 %v5802_v36 }
 0x1fc   :  { %5813 = vmatprep.subr.bf16.mxu0 %v5796_v47  ;;  %v4342_v47 = vsel %vm4287_vm7, %v6516_v9, %v6521_v6  ;;  %v4293_v38 = vsel %vm4287_vm7, %v6537_v45, %v6542_v7  ;;  %v4296_v53 = vsel %vm4287_vm7, %v6531_v10, %v6536_v29  ;;  %v6552_v30 = vunpack.i.h.bf16 %v8373_v55 }
 0x1fd   :  { %5811 = vmatpush1.bf16.msra.mxu1 %v5810_v27  ;;  %v8381_v52 = vpop.permute.xlu1 %6544  ;;  %v5832_v62 = vpack.c.bf16 %v4343_v26, %v4342_v47  ;;  %v6551_v40 = vunpack.i.l.bf16 %v8373_v55 }
 0x1fe   :  { %5821 = vmatprep.subr.bf16.mxu1 %v5804_v15  ;;  %5468 = vmatmul.mubr.msk.f32.vlgmr.msra.gmra.mrb[12].mxu0 %vm503_vm1, %v8332_v60  ;;  %v6547_v35 = vunpack.i.h.bf16 %v8381_v52  ;;  %v6546_v44 = vunpack.i.l.bf16 %v8381_v52 }
 0x1ff   :  { %v8399_v3 = vpop.permute.xlu0 %6559  ;;  %5815 = vmatpush1.bf16.msra.mxu0 %v5798_v12  ;;  %4142 = vmatprep.mubr.f32.mxu0 %v8789_v32  ;;  %v4350_v12 = vsel %vm4287_vm7, %v6526_v39, %v6511_v1 }
 0x200   :  { %5469 = vmatmul.mubr.msk.f32.vlgmr.msra.gmra.mrb[12].mxu1 %vm503_vm1, %v8332_v60  ;;  %5817 = vmatprep.subr.bf16.mxu0 %v5800_v54  ;;  %v6532_v60 = vunpack.i.h.bf16 %v8327_v11  ;;  %v4292_v11 = vsel %vm4287_vm7, %v6536_v29, %v6541_v31  ;;  %v5840_v51 = vpack.c.bf16 %v4351_v2, %v4350_v12  ;;  %v4300_v50 = vsel %vm4287_vm7, %v6546_v44, %v6531_v10 }
 0x201   :  { %5823 = vmatpush1.bf16.msra.mxu1 %v5806_v19  ;;  %v8414_v4 = vpop.permute.xlu1 %6554  ;;  %4213 = vmatprep.mubr.f32.mxu1 %v8789_v32  ;;  %v5844_v24 = vpack.c.bf16 %v4293_v38, %v4292_v11  ;;  %v4288_v21 = vsel %vm4287_vm7, %v6541_v31, %v6546_v44  ;;  %v4289_v23 = vsel %vm4287_vm7, %v6542_v7, %v6547_v35 }
 0x202   :  { %5825 = vmatprep.subr.bf16.mxu1 %v5808_v14  ;;  %v6557_v54 = vunpack.i.h.bf16 %v8414_v4  ;;  %v6556_v19 = vunpack.i.l.bf16 %v8414_v4  ;;  %v6562_v14 = vunpack.i.h.bf16 %v8399_v3  ;;  %v4301_v57 = vsel %vm4287_vm7, %v6547_v35, %v6532_v60 }
 0x203   :  { %v8423_v33 = vpop.permute.xlu0 %6569  ;;  %5819 = vmatpush1.bf16.msra.mxu0 %v5802_v36  ;;  %v6561_v36 = vunpack.i.l.bf16 %v8399_v3  ;;  %v4297_v25 = vsel %vm4287_vm7, %v6532_v60, %v6537_v45  ;;  %v5852_v55 = vpack.c.bf16 %v4301_v57, %v4300_v50  ;;  %v5854_v43 = vpack.c.bf16 %v4289_v23, %v4288_v21 }
 0x204   :  { %5829 = vmatprep.subr.bf16.mxu0 %v5828_v0  ;;  %v4295_v49 = vsel %vm4287_vm7, %v6557_v54, %v6562_v14  ;;  %v5846_v16 = vpack.c.bf16 %v4297_v25, %v4296_v53  ;;  %v4299_v20 = vsel %vm4287_vm7, %v6552_v30, %v6557_v54  ;;  %v6571_v45 = vunpack.i.l.bf16 %v8423_v33 }
 0x205   :  { %5827 = vmatpush1.bf16.msra.mxu1 %v5810_v27  ;;  %v6565_v15 = vpop.permute.xlu1 %6564  ;;  %v5842_v27 = vpack.c.bf16 %v4339_v63, %v4338_v17  ;;  %v4294_v9 = vsel %vm4287_vm7, %v6556_v19, %v6561_v36  ;;  %v6572_v7 = vunpack.i.h.bf16 %v8423_v33 }
 0x206   :  { %5837 = vmatprep.subr.bf16.mxu1 %v5836_v28  ;;  %5471 = vmatmul.mubr.msk.f32.vlgmr.msra.gmra.mrb[12].mxu0 %vm503_vm1, %v5470_v34  ;;  %v6567_v37 = vunpack.i.h.bf16 %v6565_v15  ;;  %v6566_v48 = vunpack.i.l.bf16 %v6565_v15  ;;  %v5848_v1 = vpack.c.bf16 %v4295_v49, %v4294_v9 }
 0x207   :  { %v8451_v59 = vpop.permute.xlu0 %6579  ;;  %5831 = vmatpush1.bf16.msra.mxu0 %v5830_v5  ;;  %4421 = vmatprep.mubr.f32.mxu0 %v8789_v32  ;;  %v4298_v5 = vsel %vm4287_vm7, %v6551_v40, %v6556_v19 }
 0x208   :  { %5472 = vmatmul.mubr.msk.f32.vlgmr.msra.gmra.mrb[12].mxu1 %vm503_vm1, %v5470_v34  ;;  %5833 = vmatprep.subr.bf16.mxu0 %v5832_v62  ;;  %v4302_v41 = vsel %vm4287_vm7, %v6566_v48, %v6551_v40  ;;  %v4303_v56 = vsel %vm4287_vm7, %v6567_v37, %v6552_v30  ;;  %v4290_v8 = vsel %vm4287_vm7, %v6561_v36, %v6566_v48  ;;  %v6582_v22 = vunpack.i.h.bf16 %v8451_v59  ;;  %v5479_v30 = vld [vmem:[%s8691_s4 + $0x38] sm:$0xff] }
 0x209   :  { %5839 = vmatpush1.bf16.msra.mxu1 %v5838_v58  ;;  %v8461_v13 = vpop.permute.xlu1 %6574  ;;  %4492 = vmatprep.mubr.f32.mxu1 %v8789_v32  ;;  %v4291_v39 = vsel %vm4287_vm7, %v6562_v14, %v6567_v37  ;;  %v5856_v4 = vpack.c.bf16 %v4303_v56, %v4302_v41  ;;  %v5850_v58 = vpack.c.bf16 %v4299_v20, %v4298_v5  ;;  %v6581_v60 = vunpack.i.l.bf16 %v8451_v59 }
 0x20a   :  { %5841 = vmatprep.subr.bf16.mxu1 %v5840_v51  ;;  %v6576_v46 = vunpack.i.l.bf16 %v8461_v13  ;;  %v6577_v28 = vunpack.i.h.bf16 %v8461_v13  ;;  %v5858_v29 = vpack.c.bf16 %v4291_v39, %v4290_v8 }
 0x20b   :  { %v8474_v52 = vpop.permute.xlu0 %6589  ;;  %5835 = vmatpush1.bf16.msra.mxu0 %v5834_v61 }
 0x20c   :  { %5845 = vmatprep.subr.bf16.mxu0 %v5844_v24  ;;  %v4912_v31 = vsel %vm4855_vm8, %v6571_v45, %v6576_v46  ;;  %v4908_v12 = vsel %vm4855_vm8, %v6576_v46, %v6581_v60  ;;  %v4909_v2 = vsel %vm4855_vm8, %v6577_v28, %v6582_v22  ;;  %v4913_v10 = vsel %vm4855_vm8, %v6572_v7, %v6577_v28 }
 0x20d   :  { %5843 = vmatpush1.bf16.msra.mxu1 %v5842_v27  ;;  %v6585_v3 = vpop.permute.xlu1 %6584  ;;  %v6592_v33 = vunpack.i.h.bf16 %v8474_v52  ;;  %v6591_v38 = vunpack.i.l.bf16 %v8474_v52  ;;  %v5876_v51 = vpack.c.bf16 %v4909_v2, %v4908_v12  ;;  %v5878_v57 = vpack.c.bf16 %v4913_v10, %v4912_v31  ;;  %v5483_v31 = vld [vmem:[%s8690_s3 + $0x40] sm:$0xff] }
 0x20e   :  { %5853 = vmatprep.subr.bf16.mxu1 %v5852_v55  ;;  %5475 = vmatmul.mubr.msk.f32.vlgmr.msra.gmra.mrb[14].mxu0 %vm503_vm1, %v5474_v42  ;;  %v6587_v34 = vunpack.i.h.bf16 %v6585_v3  ;;  %v6586_v47 = vunpack.i.l.bf16 %v6585_v3 }
 0x20f   :  { %v8496_v6 = vpop.permute.xlu0 %6599  ;;  %5847 = vmatpush1.bf16.msra.mxu0 %v5846_v16  ;;  %4563 = vmatprep.mubr.f32.mxu0 %v8789_v32 }
 0x210   :  { %5476 = vmatmul.mubr.msk.f32.vlgmr.msra.gmra.mrb[14].mxu1 %vm503_vm1, %v5474_v42  ;;  %5849 = vmatprep.subr.bf16.mxu0 %v5848_v1  ;;  %v4904_v17 = vsel %vm4855_vm8, %v6581_v60, %v6586_v47  ;;  %v4905_v63 = vsel %vm4855_vm8, %v6582_v22, %v6587_v34  ;;  %v6602_v54 = vunpack.i.h.bf16 %v8496_v6  ;;  %v6601_v19 = vunpack.i.l.bf16 %v8496_v6 }
 0x211   :  { %5855 = vmatpush1.bf16.msra.mxu1 %v5854_v43  ;;  %v6595_v0 = vpop.permute.xlu1 %6594  ;;  %4634 = vmatprep.mubr.f32.mxu1 %v8789_v32  ;;  %v4916_v59 = vsel %vm4855_vm8, %v6586_v47, %v6571_v45  ;;  %v4917_v11 = vsel %vm4855_vm8, %v6587_v34, %v6572_v7  ;;  %v5886_v27 = vpack.c.bf16 %v4905_v63, %v4904_v17 }
 0x212   :  { %5857 = vmatprep.subr.bf16.mxu1 %v5856_v4  ;;  %v6597_v44 = vunpack.i.h.bf16 %v6595_v0  ;;  %v6596_v15 = vunpack.i.l.bf16 %v6595_v0 }
 0x213   :  { %v8509_v26 = vpop.permute.xlu0 %6609  ;;  %5851 = vmatpush1.bf16.msra.mxu0 %v5850_v58 }
 0x214   :  { %5861 = vmatprep.subr.bf16.mxu0 %v5844_v24  ;;  %v4910_v13 = vsel %vm4855_vm8, %v6596_v15, %v6601_v19  ;;  %v4911_v50 = vsel %vm4855_vm8, %v6597_v44, %v6602_v54  ;;  %v4914_v53 = vsel %vm4855_vm8, %v6591_v38, %v6596_v15  ;;  %v5884_v24 = vpack.c.bf16 %v4917_v11, %v4916_v59 }
 0x215   :  { %5859 = vmatpush1.bf16.msra.mxu1 %v5858_v29  ;;  %v6605_v35 = vpop.permute.xlu1 %6604  ;;  %v4915_v40 = vsel %vm4855_vm8, %v6592_v33, %v6597_v44  ;;  %v6612_v52 = vunpack.i.h.bf16 %v8509_v26  ;;  %v6611_v49 = vunpack.i.l.bf16 %v8509_v26  ;;  %v5880_v23 = vpack.c.bf16 %v4911_v50, %v4910_v13 }
 0x216   :  { %5869 = vmatprep.subr.bf16.mxu1 %v5852_v55  ;;  %5477 = vmatmul.mubr.msk.f32.vlgmr.msra.gmra.mrb[14].mxu0 %vm503_vm1, %v5474_v42  ;;  %v6607_v61 = vunpack.i.h.bf16 %v6605_v35  ;;  %v6606_v14 = vunpack.i.l.bf16 %v6605_v35  ;;  %v5882_v20 = vpack.c.bf16 %v4915_v40, %v4914_v53 }
 0x217   :  { %v8528_v62 = vpop.permute.xlu0 %6619  ;;  %5863 = vmatpush1.bf16.msra.mxu0 %v5846_v16  ;;  %4710 = vmatprep.mubr.f32.mxu0 %v8789_v32 }
 0x218   :  { %5478 = vmatmul.mubr.msk.f32.vlgmr.msra.gmra.mrb[14].mxu1 %vm503_vm1, %v5474_v42  ;;  %5865 = vmatprep.subr.bf16.mxu0 %v5848_v1  ;;  %v6622_v42 = vunpack.i.h.bf16 %v8528_v62  ;;  %v6621_v9 = vunpack.i.l.bf16 %v8528_v62  ;;  %v4918_v55 = vsel %vm4855_vm8, %v6606_v14, %v6591_v38  ;;  %v4919_v16 = vsel %vm4855_vm8, %v6607_v61, %v6592_v33 }
 0x219   :  { %5871 = vmatpush1.bf16.msra.mxu1 %v5854_v43  ;;  %v6615_v36 = vpop.permute.xlu1 %6614  ;;  %4781 = vmatprep.mubr.f32.mxu1 %v8789_v32  ;;  %v4906_v1 = vsel %vm4855_vm8, %v6601_v19, %v6606_v14  ;;  %v4907_v43 = vsel %vm4855_vm8, %v6602_v54, %v6607_v61 }
 0x21a   :  { %v6617_v37 = vunpack.i.h.bf16 %v6615_v36  ;;  %v6616_v48 = vunpack.i.l.bf16 %v6615_v36  ;;  %5873 = vmatprep.subr.bf16.mxu1 %v5856_v4  ;;  %v5888_v4 = vpack.c.bf16 %v4919_v16, %v4918_v55  ;;  %v5890_v26 = vpack.c.bf16 %v4907_v43, %v4906_v1 }
 0x21b   :  { %v8546_v25 = vpop.permute.xlu0 %6629  ;;  %5867 = vmatpush1.bf16.msra.mxu0 %v5850_v58 }
 0x21c   :  { %5877 = vmatprep.subr.bf16.mxu0 %v5876_v51  ;;  %v4860_v56 = vsel %vm4855_vm8, %v6616_v48, %v6621_v9  ;;  %v4861_v5 = vsel %vm4855_vm8, %v6617_v37, %v6622_v42  ;;  %v4864_v8 = vsel %vm4855_vm8, %v6611_v49, %v6616_v48  ;;  %v4865_v39 = vsel %vm4855_vm8, %v6612_v52, %v6617_v37 }
 0x21d   :  { %5875 = vmatpush1.bf16.msra.mxu1 %v5858_v29  ;;  %v6625_v21 = vpop.permute.xlu1 %6624  ;;  %v5892_v46 = vpack.c.bf16 %v4861_v5, %v4860_v56  ;;  %v6632_v22 = vunpack.i.h.bf16 %v8546_v25  ;;  %v6631_v60 = vunpack.i.l.bf16 %v8546_v25  ;;  %v5894_v2 = vpack.c.bf16 %v4865_v39, %v4864_v8 }
 0x21e   :  { %v6627_v3 = vunpack.i.h.bf16 %v6625_v21  ;;  %v6626_v41 = vunpack.i.l.bf16 %v6625_v21  ;;  %5885 = vmatprep.subr.bf16.mxu1 %v5884_v24  ;;  %5480 = vmatmul.mubr.msk.f32.vlgmr.msra.gmra.mrb[14].mxu0 %vm503_vm1, %v5479_v30  ;;  %v8833_v24 = vld [vmem:[#allocation3_spill] sm:$0xff] }
 0x21f   :  { %v6640_v6 = vpop.permute.xlu0 %6639  ;;  %5879 = vmatpush1.bf16.msra.mxu0 %v5878_v57  ;;  %4989 = vmatprep.mubr.f32.mxu0 %v8789_v32  ;;  %v941_v57 = vld [vmem:[%s8692_s5] sm:$0xf] }
 0x220   :  { %5481 = vmatmul.mubr.msk.f32.vlgmr.msra.gmra.mrb[14].mxu1 %vm503_vm1, %v5479_v30  ;;  %5881 = vmatprep.subr.bf16.mxu0 %v5880_v23  ;;  %v4868_v0 = vsel %vm4855_vm8, %v6626_v41, %v6611_v49  ;;  %v4869_v28 = vsel %vm4855_vm8, %v6627_v3, %v6612_v52  ;;  %v6642_v45 = vunpack.i.h.bf16 %v6640_v6  ;;  %v6641_v29 = vunpack.i.l.bf16 %v6640_v6  ;;  %v8834_v52 = vld [vmem:[#allocation4_spill] sm:$0xff]  ;;  %v8835_v49 = vld [vmem:[#allocation5_spill] sm:$0xff] }
 0x221   :  { %5887 = vmatpush1.bf16.msra.mxu1 %v5886_v27  ;;  %v6635_v58 = vpop.permute.xlu1 %6634  ;;  %5060 = vmatprep.mubr.f32.mxu1 %v8789_v32  ;;  %v4856_v7 = vsel %vm4855_vm8, %v6621_v9, %v6626_v41  ;;  %v4857_v35 = vsel %vm4855_vm8, %v6622_v42, %v6627_v3  ;;  %v5900_v44 = vpack.c.bf16 %v4869_v28, %v4868_v0  ;;  %v8832_v27 = vld [vmem:[#allocation2_spill] sm:$0xff]  ;;  %v5438_v28 = vld [vmem:[%s8692_s5 + $0x8] sm:$0xf] }
 0x222   :  { %v6637_v34 = vunpack.i.h.bf16 %v6635_v58  ;;  %v6636_v47 = vunpack.i.l.bf16 %v6635_v58  ;;  %5889 = vmatprep.subr.bf16.mxu1 %v5888_v4  ;;  %v5902_v19 = vpack.c.bf16 %v4857_v35, %v4856_v7  ;;  %v946_v53 = vrot.slane %v941_v57, %v8832_v27 }
 0x223   :  { %5883 = vmatpush1.bf16.msra.mxu0 %v5882_v20  ;;  %v950_v30 = vrot.slane %v941_v57, %v8833_v24  ;;  %v954_v42 = vrot.slane %v941_v57, %v8834_v52  ;;  %v958_v21 = vrot.slane %v941_v57, %v8835_v49 }
 0x224   :  { %5893 = vmatprep.subr.bf16.mxu0 %v5892_v46  ;;  %v4862_v15 = vsel %vm4855_vm8, %v6636_v47, %v6641_v29  ;;  %v4863_v12 = vsel %vm4855_vm8, %v6637_v34, %v6642_v45  ;;  %v4866_v17 = vsel %vm4855_vm8, %v6631_v60, %v6636_v47  ;;  %v4867_v63 = vsel %vm4855_vm8, %v6632_v22, %v6637_v34 }
 0x225   :  { %5891 = vmatpush1.bf16.msra.mxu1 %v5890_v26  ;;  %v6645_v10 = vpop.permute.xlu1 %6644  ;;  %v5896_v33 = vpack.c.bf16 %v4863_v12, %v4862_v15  ;;  %v5898_v61 = vpack.c.bf16 %v4867_v63, %v4866_v17  ;;  %v2090_v34 = vrot.slane %v5438_v28, %v8834_v52  ;;  %v2094_v26 = vrot.slane %v5438_v28, %v8835_v49  ;;  %v5447_v17 = vld [vmem:[%s8692_s5 + $0xc] sm:$0xf] }
 0x226   :  { %v6647_v62 = vunpack.i.h.bf16 %v6645_v10  ;;  %v6646_v54 = vunpack.i.l.bf16 %v6645_v10  ;;  %5901 = vmatprep.subr.bf16.mxu1 %v5900_v44  ;;  %5484 = vmatmul.mubr.msk.f32.vlgmr.msra.gmra.mrb[16].mxu0 %vm503_vm1, %v5483_v31  ;;  %v2650_v63 = vrot.slane %v5447_v17, %v8832_v27 }
 0x227   :  { %5895 = vmatpush1.bf16.msra.mxu0 %v5894_v2  ;;  %5131 = vmatprep.mubr.f32.mxu0 %v8789_v32 }
 0x228   :  { %v4858_v59 = vsel %vm4855_vm8, %v6641_v29, %v6646_v54  ;;  %v4859_v11 = vsel %vm4855_vm8, %v6642_v45, %v6647_v62  ;;  %5485 = vmatmul.mubr.msk.f32.vlgmr.msra.gmra.mrb[16].mxu1 %vm503_vm1, %v5483_v31  ;;  %5897 = vmatprep.subr.bf16.mxu0 %v5896_v33  ;;  %v4870_v38 = vsel %vm4855_vm8, %v6646_v54, %v6631_v60 }
 0x229   :  { %v5906_v14 = vpack.c.bf16 %v4859_v11, %v4858_v59  ;;  %5903 = vmatpush1.bf16.msra.mxu1 %v5902_v19  ;;  %v4871_v36 = vsel %vm4855_vm8, %v6647_v62, %v6632_v22  ;;  %5202 = vmatprep.mubr.f32.mxu1 %v8789_v32  ;;  %v2082_v45 = vrot.slane %v5438_v28, %v8832_v27 }
 0x22a   :  { %v5904_v51 = vpack.c.bf16 %v4871_v36, %v4870_v38  ;;  %v2086_v29 = vrot.slane %v5438_v28, %v8833_v24  ;;  %v2654_v62 = vrot.slane %v5447_v17, %v8833_v24  ;;  %v2658_v54 = vrot.slane %v5447_v17, %v8834_v52 }
 0x22b   :  { %5899 = vmatpush1.bf16.msra.mxu0 %v5898_v61  ;;  %v2662_v59 = vrot.slane %v5447_v17, %v8835_v49 }
 0x22c   :  { %5905 = vmatprep.subr.bf16.mxu1 %v5904_v51  ;;  %5909 = vmatprep.subr.bf16.mxu0 %v5892_v46 }
 0x22d   :  { %5907 = vmatpush1.bf16.msra.mxu1 %v5906_v14 }
 0x22e   :  { %5917 = vmatprep.subr.bf16.mxu1 %v5900_v44  ;;  %5486 = vmatmul.mubr.msk.f32.vlgmr.msra.gmra.mrb[16].mxu0 %vm503_vm1, %v5483_v31 }
 0x22f   :  { %5911 = vmatpush1.bf16.msra.mxu0 %v5894_v2  ;;  %5278 = vmatprep.mubr.f32.mxu0 %v8789_v32 }
 0x230   :  { %5487 = vmatmul.mubr.msk.f32.vlgmr.msra.gmra.mrb[16].mxu1 %vm503_vm1, %v5483_v31  ;;  %5913 = vmatprep.subr.bf16.mxu0 %v5896_v33 }
 0x231   :  { %5919 = vmatpush1.bf16.msra.mxu1 %v5902_v19  ;;  %5349 = vmatprep.mubr.f32.mxu1 %v8789_v32  ;;  %v5429_v32 = vld [vmem:[%s8692_s5 + $0x4] sm:$0xf] }
 0x232   :  { %5921 = vmatprep.subr.bf16.mxu1 %v5904_v51  ;;  %v1514_v25 = vrot.slane %v5429_v32, %v8832_v27  ;;  %v1518_v40 = vrot.slane %v5429_v32, %v8833_v24  ;;  %v1522_v9 = vrot.slane %v5429_v32, %v8834_v52  ;;  %v1526_v55 = vrot.slane %v5429_v32, %v8835_v49 }
 0x233   :  { %5915 = vmatpush1.bf16.msra.mxu0 %v5898_v61 }
 0x235   :  { %5923 = vmatpush1.bf16.msra.mxu1 %v5906_v14 }
 0x236   :  { %5489 = vmatmul.mubr.msk.f32.vlgmr.msra.gmra.mrb[16].mxu0 %vm503_vm1, %v5488_v18 }
 0x238   :  { %5490 = vmatmul.mubr.msk.f32.vlgmr.msra.gmra.mrb[16].mxu1 %vm503_vm1, %v5488_v18 }
 0x249   :  { %v861_v37 = vpop.f32.mrb[0].mxu0 }
 0x24a   :  { %v863_v48 = vpop.f32.mrb[1].mxu0  ;;  %v963_v16 = vmul.f32 %v946_v53, %v861_v37 }
 0x24b   :  { %v932_v13 = vpop.f32.mrb[0].mxu1  ;;  %v964_v56 = vmul.f32 %v950_v30, %v863_v48 }
 0x24c   :  { %v934_v50 = vpop.f32.mrb[1].mxu1  ;;  %v965_v1 = vmul.f32 %v954_v42, %v932_v13 }
 0x24d   :  { %v966_v39 = vmul.f32 %v958_v21, %v934_v50  ;;  %v5464_v21 = vld [vmem:[%s8692_s5 + $0x14] sm:$0xf] }
 0x261   :  { %v1428_v23 = vpop.f32.mrb[2].mxu0 }
 0x262   :  { %v1531_v3 = vmul.f32 %v1514_v25, %v1428_v23  ;;  %v1430_v41 = vpop.f32.mrb[3].mxu0  ;;  %v3662_v23 = vrot.slane %v5464_v21, %v8832_v27 }
 0x263   :  { %v1532_v5 = vmul.f32 %v1518_v40, %v1430_v41  ;;  %v1499_v20 = vpop.f32.mrb[2].mxu1  ;;  %v3674_v41 = vrot.slane %v5464_v21, %v8835_v49 }
 0x264   :  { %v1535_v43 = vadd.f32 %v1531_v3, %v963_v16  ;;  %v1533_v6 = vmul.f32 %v1522_v9, %v1499_v20  ;;  %v1501_v8 = vpop.f32.mrb[3].mxu1  ;;  %v3670_v16 = vrot.slane %v5464_v21, %v8834_v52 }
 0x265   :  { %v1536_v4 = vadd.f32 %v1532_v5, %v964_v56  ;;  %v1534_v58 = vmul.f32 %v1526_v55, %v1501_v8  ;;  %v3666_v55 = vrot.slane %v5464_v21, %v8833_v24 }
 0x266   :  { %v1537_v46 = vadd.f32 %v1533_v6, %v965_v1 }
 0x267   :  { %v1538_v0 = vadd.f32 %v1534_v58, %v966_v39 }
 0x279   :  { %v1996_v47 = vpop.f32.mrb[4].mxu0 }
 0x27a   :  { %v2099_v22 = vmul.f32 %v2082_v45, %v1996_v47  ;;  %v1998_v60 = vpop.f32.mrb[5].mxu0 }
 0x27b   :  { %v2100_v7 = vmul.f32 %v2086_v29, %v1998_v60  ;;  %v2067_v31 = vpop.f32.mrb[4].mxu1 }
 0x27c   :  { %v2103_v35 = vadd.f32 %v2099_v22, %v1535_v43  ;;  %v2101_v44 = vmul.f32 %v2090_v34, %v2067_v31  ;;  %v2069_v15 = vpop.f32.mrb[5].mxu1 }
 0x27d   :  { %v2104_v12 = vadd.f32 %v2100_v7, %v1536_v4  ;;  %v2102_v2 = vmul.f32 %v2094_v26, %v2069_v15 }
 0x27e   :  { %v2105_v10 = vadd.f32 %v2101_v44, %v1537_v46 }
 0x27f   :  { %v2106_v33 = vadd.f32 %v2102_v2, %v1538_v0  ;;  %v5473_v0 = vld [vmem:[%s8692_s5 + $0x18] sm:$0xf] }
 0x280   :  { %v4230_v28 = vrot.slane %v5473_v0, %v8832_v27  ;;  %v4234_v45 = vrot.slane %v5473_v0, %v8833_v24  ;;  %v4238_v29 = vrot.slane %v5473_v0, %v8834_v52  ;;  %v4242_v47 = vrot.slane %v5473_v0, %v8835_v49 }
 0x291   :  { %v2564_v19 = vpop.f32.mrb[6].mxu0 }
 0x292   :  { %v2667_v11 = vmul.f32 %v2650_v63, %v2564_v19  ;;  %v2566_v38 = vpop.f32.mrb[7].mxu0 }
 0x293   :  { %v2668_v61 = vmul.f32 %v2654_v62, %v2566_v38  ;;  %v2635_v14 = vpop.f32.mrb[6].mxu1 }
 0x294   :  { %v2669_v36 = vmul.f32 %v2658_v54, %v2635_v14  ;;  %v2637_v51 = vpop.f32.mrb[7].mxu1  ;;  %v2671_v18 = vadd.f32 %v2667_v11, %v2103_v35 }
 0x295   :  { %v2670_v37 = vmul.f32 %v2662_v59, %v2637_v51  ;;  %v2672_v48 = vadd.f32 %v2668_v61, %v2104_v12 }
 0x296   :  { %v2673_v13 = vadd.f32 %v2669_v36, %v2105_v10 }
 0x297   :  { %v2674_v50 = vadd.f32 %v2670_v37, %v2106_v33  ;;  %v5482_v33 = vld [vmem:[%s8692_s5 + $0x1c] sm:$0xf] }
 0x298   :  { %v4798_v17 = vrot.slane %v5482_v33, %v8832_v27  ;;  %v4802_v63 = vrot.slane %v5482_v33, %v8833_v24  ;;  %v4806_v62 = vrot.slane %v5482_v33, %v8834_v52  ;;  %v4810_v19 = vrot.slane %v5482_v33, %v8835_v49 }
 0x2a9   :  { %v3035_v57 = vpop.f32.mrb[8].mxu0 }
 0x2aa   :  { %v3115_v32 = vadd.f32 %v3035_v57, %v2671_v18  ;;  %v3037_v53 = vpop.f32.mrb[9].mxu0 }
 0x2ab   :  { %v3116_v25 = vadd.f32 %v3037_v53, %v2672_v48  ;;  %v3106_v30 = vpop.f32.mrb[8].mxu1 }
 0x2ac   :  { %v3117_v40 = vadd.f32 %v3106_v30, %v2673_v13  ;;  %v3108_v42 = vpop.f32.mrb[9].mxu1 }
 0x2ad   :  { %v3118_v9 = vadd.f32 %v3108_v42, %v2674_v50  ;;  %v5491_v50 = vld [vmem:[%s8692_s5 + $0x20] sm:$0xf] }
 0x2ae   :  { %v5366_v57 = vrot.slane %v5491_v50, %v8832_v27  ;;  %v5374_v53 = vrot.slane %v5491_v50, %v8834_v52  ;;  %v5378_v30 = vrot.slane %v5491_v50, %v8835_v49 }
 0x2c1   :  { %v3576_v3 = vpop.f32.mrb[10].mxu0 }
 0x2c2   :  { %v3679_v56 = vmul.f32 %v3662_v23, %v3576_v3  ;;  %v3578_v5 = vpop.f32.mrb[11].mxu0 }
 0x2c3   :  { %v3680_v20 = vmul.f32 %v3666_v55, %v3578_v5  ;;  %v3647_v1 = vpop.f32.mrb[10].mxu1 }
 0x2c4   :  { %v3683_v43 = vadd.f32 %v3679_v56, %v3115_v32  ;;  %v3681_v6 = vmul.f32 %v3670_v16, %v3647_v1  ;;  %v3649_v8 = vpop.f32.mrb[11].mxu1  ;;  %v5370_v32 = vrot.slane %v5491_v50, %v8833_v24 }
 0x2c5   :  { %v3684_v39 = vadd.f32 %v3680_v20, %v3116_v25  ;;  %v3682_v4 = vmul.f32 %v3674_v41, %v3649_v8 }
 0x2c6   :  { %v3685_v58 = vadd.f32 %v3681_v6, %v3117_v40 }
 0x2c7   :  { %v3686_v46 = vadd.f32 %v3682_v4, %v3118_v9 }
 0x2d9   :  { %v4144_v34 = vpop.f32.mrb[12].mxu0 }
 0x2da   :  { %v4247_v26 = vmul.f32 %v4230_v28, %v4144_v34  ;;  %v4146_v22 = vpop.f32.mrb[13].mxu0 }
 0x2db   :  { %v4248_v60 = vmul.f32 %v4234_v45, %v4146_v22  ;;  %v4215_v7 = vpop.f32.mrb[12].mxu1 }
 0x2dc   :  { %v4251_v31 = vadd.f32 %v4247_v26, %v3683_v43  ;;  %v4249_v35 = vmul.f32 %v4238_v29, %v4215_v7  ;;  %v4217_v44 = vpop.f32.mrb[13].mxu1 }
 0x2dd   :  { %v4252_v15 = vadd.f32 %v4248_v60, %v3684_v39  ;;  %v4250_v12 = vmul.f32 %v4242_v47, %v4217_v44 }
 0x2de   :  { %v4253_v2 = vadd.f32 %v4249_v35, %v3685_v58 }
 0x2df   :  { %v4254_v10 = vadd.f32 %v4250_v12, %v3686_v46 }
 0x2f1   :  { %v4712_v54 = vpop.f32.mrb[14].mxu0 }
 0x2f2   :  { %v4815_v59 = vmul.f32 %v4798_v17, %v4712_v54  ;;  %v4714_v11 = vpop.f32.mrb[15].mxu0 }
 0x2f3   :  { %v4816_v38 = vmul.f32 %v4802_v63, %v4714_v11  ;;  %v4783_v61 = vpop.f32.mrb[14].mxu1 }
 0x2f4   :  { %v4819_v14 = vadd.f32 %v4815_v59, %v4251_v31  ;;  %v4817_v36 = vmul.f32 %v4806_v62, %v4783_v61  ;;  %v4785_v51 = vpop.f32.mrb[15].mxu1 }
 0x2f5   :  { %v4820_v18 = vadd.f32 %v4816_v38, %v4252_v15  ;;  %v4818_v37 = vmul.f32 %v4810_v19, %v4785_v51 }
 0x2f6   :  { %v4821_v48 = vadd.f32 %v4817_v36, %v4253_v2 }
 0x2f7   :  { %v4822_v13 = vadd.f32 %v4818_v37, %v4254_v10 }
 0x309   :  { %v5280_v25 = vpop.f32.mrb[16].mxu0 }
 0x30a   :  { %v5383_v40 = vmul.f32 %v5366_v57, %v5280_v25  ;;  %v5282_v42 = vpop.f32.mrb[17].mxu0 }
 0x30b   :  { %v5384_v9 = vmul.f32 %v5370_v32, %v5282_v42  ;;  %v5351_v21 = vpop.f32.mrb[16].mxu1 }
 0x30c   :  { %v5387_v23 = vadd.f32 %v5383_v40, %v4819_v14  ;;  %v5385_v55 = vmul.f32 %v5374_v53, %v5351_v21  ;;  %v5353_v16 = vpop.f32.mrb[17].mxu1 }
 0x30d   :  { %v5388_v3 = vadd.f32 %v5384_v9, %v4820_v18  ;;  %v5386_v41 = vmul.f32 %v5378_v30, %v5353_v16 }
 0x30e   :  { %5391 = vst [vmem:[%s8693_s6] sm:$0xff] %v5387_v23  ;;  %v5389_v27 = vadd.f32 %v5385_v55, %v4821_v48 }
 0x30f   :  { %5392 = vst [vmem:[%s8693_s6 + $0x8] sm:$0xff] %v5388_v3  ;;  %v5390_v24 = vadd.f32 %v5386_v41, %v4822_v13 }
 0x310   :  { %5393 = vst [vmem:[%s8693_s6 + $0x10] sm:$0xff] %v5389_v27 }
 0x311   :  { %5394 = vst [vmem:[%s8693_s6 + $0x18] sm:$0xff] %v5390_v24 }

</bundles_post_ra>
